<compile_context>
chip_gen: v5e
topology: v5e:2x2
jax: 0.10.0
libtpu: 0.0.40
codegen_flags: <defaults>
</compile_context>

<pallas_src>
import functools

import jax
import jax.numpy as jnp
from jax import lax
from jax.experimental import pallas as pl
from jax.experimental.pallas import tpu as pltpu


# ---------------------------------------------------------------------------
# In-kernel helpers (traced into the kernel body)
# ---------------------------------------------------------------------------
def _layernorm_1pass(x, gamma, beta, eps=1e-5):
    """LayerNorm over the last axis; single pass (sum & sum-of-squares)."""
    inv_n = 1.0 / x.shape[-1]
    s = jnp.sum(x, axis=-1, keepdims=True)
    ss = jnp.sum(x * x, axis=-1, keepdims=True)
    mean = s * inv_n
    var = ss * inv_n - mean * mean
    return (x - mean) * lax.rsqrt(var + eps) * gamma + beta


def _layernorm_ref(x, gamma, beta, eps=1e-5):
    # Two-pass form, used only by the pure-JAX reference (matches PyTorch).
    mean = jnp.mean(x, axis=-1, keepdims=True)
    var = jnp.mean(jnp.square(x - mean), axis=-1, keepdims=True)
    return (x - mean) * lax.rsqrt(var + eps) * gamma + beta


def _gelu_exact(x):
    # torch.nn.functional.gelu default = exact erf formulation.
    return 0.5 * x * (1.0 + lax.erf(x * (1.0 / jnp.sqrt(2.0).astype(x.dtype))))


# ---------------------------------------------------------------------------
# Pallas kernel: one grid step == block_b batch elements
# ---------------------------------------------------------------------------
def gmlp_block_kernel(x_ref,            # (block_b, F, L)  input slab
                      g1_ref, be1_ref,  # (1, L)           outer LN gamma/beta
                      w1u_ref, b1u_ref,  # (L, L), (1, L)  channel_proj1 (u half)
                      w1v_ref, b1v_ref,  # (L, L), (1, L)  channel_proj1 (v half)
                      gs_ref, bs_ref,    # (1, L)          SGU LN gamma/beta
                      wsp_ref, bsp_ref,  # (block_b, F, F), (F, L) spatial conv
                      w2_ref, b2_ref,    # (L, L), (1, L)  channel_proj2
                      out_ref,           # (block_b, F, L) output slab
                      *, block_b, d_ffn, seq_len, matmul_dtype):
    L = seq_len
    rows = block_b * d_ffn

    # ---- LayerNorm(seq_len) on the flattened (block_b*d_ffn, L) rows -------
    xn = _layernorm_1pass(x_ref[...].reshape(rows, L), g1_ref[...], be1_ref[...])
    xn_mm = xn.astype(matmul_dtype)

    # ---- channel_proj1 split into u / v halves + exact GELU ----------------
    # (2L is always even, so the SGU odd-length trim branch never triggers.)
    u = _gelu_exact(
        jnp.dot(xn_mm, w1u_ref[...], preferred_element_type=jnp.float32)
        + b1u_ref[...])
    v = _gelu_exact(
        jnp.dot(xn_mm, w1v_ref[...], preferred_element_type=jnp.float32)
        + b1v_ref[...])

    # ---- SpatialGatingUnit --------------------------------------------------
    vn = _layernorm_1pass(v, gs_ref[...], bs_ref[...]).reshape(block_b, d_ffn, L)
    # Conv1d(d_ffn, d_ffn, kernel_size=1): per-batch channel mixing (K=d_ffn,
    # MXU-trivial — intentionally not tiled further).
    vp = jnp.einsum("bfc,bcl->bfl", wsp_ref[...], vn,
                    preferred_element_type=jnp.float32) + bsp_ref[...][None]
    g = (u.reshape(block_b, d_ffn, L) * vp).reshape(rows, L)

    # ---- channel_proj2 + residual (re-read x_ref, don't keep it live) ------
    y = jnp.dot(g.astype(matmul_dtype), w2_ref[...],
                preferred_element_type=jnp.float32) + b2_ref[...]
    out_ref[...] = (y.reshape(block_b, d_ffn, L) + x_ref[...]).astype(out_ref.dtype)


# ---------------------------------------------------------------------------
# Block-size selection
# ---------------------------------------------------------------------------
def _pick_block_b(batch, d_ffn, target_rows=256):
    """Largest divisor of `batch` so block_b*d_ffn ~ target MXU rows
    (256 fills the v6e/v7x MXU; >=128 saturates v5e), while keeping at least
    two grid steps when the batch allows it (v7x has 2 TensorCores)."""
    divisors = [d for d in range(1, batch + 1) if batch % d == 0]
    want = max(1, -(-target_rows // d_ffn))
    fitting = [d for d in divisors if d <= want]
    block_b = max(fitting) if fitting else 1
    if batch // block_b < 2:
        smaller = [d for d in divisors if d < block_b and d * d_ffn >= 128]
        if smaller:
            block_b = max(smaller)
    return block_b


# ---------------------------------------------------------------------------
# Wrapper
# ---------------------------------------------------------------------------
def gmlp_block(x, params, *, matmul_dtype=jnp.bfloat16, block_b=None):
    """x: (B, d_ffn, seq_len) float32. params: dict of module parameters.

    matmul_dtype: dtype fed to the MXU for the two channel projections
    (bf16 + f32 accumulation on v6e/v7x; pass jnp.float32 for exact math).
    Elementwise math is always f32.
    """
    B, F, L = x.shape
    if block_b is None:
        block_b = _pick_block_b(B, F)
    assert B % block_b == 0, (B, block_b)

    f32 = jnp.float32
    g1 = params["ln1_gamma"].reshape(1, L).astype(f32)
    be1 = params["ln1_beta"].reshape(1, L).astype(f32)
    w1 = params["w1"]                                  # (L, 2L), stored (in, out)
    w1u = w1[:, :L].astype(matmul_dtype)
    w1v = w1[:, L:].astype(matmul_dtype)
    b1 = params["b1"].astype(f32)
    b1u = b1[:L].reshape(1, L)
    b1v = b1[L:].reshape(1, L)
    gs = params["sgu_gamma"].reshape(1, L).astype(f32)
    bs = params["sgu_beta"].reshape(1, L).astype(f32)
    # Conv1d weight pre-broadcast over the batch block (tiny: block_b*F*F f32).
    wsp = jnp.broadcast_to(params["wsp"].astype(f32)[None], (block_b, F, F))
    # Conv1d bias as a lane-dense (F, L) tile instead of a (F, 1) column.
    bsp = jnp.broadcast_to(params["bsp"].astype(f32).reshape(F, 1), (F, L))
    w2 = params["w2"].astype(matmul_dtype)             # (L, L), stored (in, out)
    b2 = params["b2"].reshape(1, L).astype(f32)

    def const_spec(shape):
        zeros = (0,) * len(shape)
        return pl.BlockSpec(shape, lambda b, _z=zeros: _z)

    kernel = functools.partial(
        gmlp_block_kernel,
        block_b=block_b, d_ffn=F, seq_len=L, matmul_dtype=matmul_dtype)

    # NOTE: per-step VMEM here is well under 1 MiB (two (block_b,F,L) f32
    # blocks double-buffered + ~0.2 MiB resident params), so the default
    # scoped-VMEM limit is plenty on v5e/v6e/v7x.  For large real-world
    # F/L/block_b, re-derive the budget (v7x: 64 MiB physical) and set
    # pltpu.CompilerParams(vmem_limit_bytes=...).
    # NOTE: input_output_aliases={0: 0} would be valid here (x is only read),
    # but it is skipped so callers can keep using x after the eager call.
    return pl.pallas_call(
        kernel,
        out_shape=jax.ShapeDtypeStruct((B, F, L), x.dtype),
        grid_spec=pltpu.PrefetchScalarGridSpec(
            num_scalar_prefetch=0,
            grid=(B // block_b,),
            in_specs=[
                pl.BlockSpec((block_b, F, L), lambda b: (b, 0, 0)),   # x
                const_spec((1, L)), const_spec((1, L)),               # outer LN
                const_spec((L, L)), const_spec((1, L)),               # proj1 u
                const_spec((L, L)), const_spec((1, L)),               # proj1 v
                const_spec((1, L)), const_spec((1, L)),               # SGU LN
                const_spec((block_b, F, F)), const_spec((F, L)),      # spatial
                const_spec((L, L)), const_spec((1, L)),               # proj2
            ],
            out_specs=pl.BlockSpec((block_b, F, L), lambda b: (b, 0, 0)),
        ),
        compiler_params=pltpu.CompilerParams(
            dimension_semantics=("parallel",)),
    )(x, g1, be1, w1u, b1u, w1v, b1v, gs, bs, wsp, bsp, w2, b2)


# ---------------------------------------------------------------------------
# Pure-JAX reference (mirrors the PyTorch forward exactly)
# ---------------------------------------------------------------------------
def gmlp_block_ref(x, params):
    B, F, L = x.shape
    residual = x
    xn = _layernorm_ref(x, params["ln1_gamma"], params["ln1_beta"])
    h = _gelu_exact(jnp.einsum("bfl,lm->bfm", xn, params["w1"]) + params["b1"])
    u, v = h[..., :L], h[..., L:]
    vn = _layernorm_ref(v, params["sgu_gamma"], params["sgu_beta"])
    vp = jnp.einsum("oc,bcl->bol", params["wsp"], vn) + params["bsp"][None, :, None]
    g = u * vp
    y = jnp.einsum("bfl,lm->bfm", g, params["w2"]) + params["b2"]
    return y + residual


# ---------------------------------------------------------------------------
# Main
# ---------------------------------------------------------------------------
if __name__ == "__main__":
    B, D_FFN, SEQ_LEN = 32, 8, 128   # small, lane-aligned shapes

    key = jax.random.PRNGKey(0)
    kx, kw1, kb1, kwsp, kw2, kb2 = jax.random.split(key, 6)

    x = jax.random.normal(kx, (B, D_FFN, SEQ_LEN), dtype=jnp.float32)

    params = {
        # nn.LayerNorm(seq_len): gamma=1, beta=0
        "ln1_gamma": jnp.ones((SEQ_LEN,), jnp.float32),
        "ln1_beta": jnp.zeros((SEQ_LEN,), jnp.float32),
        # nn.Linear(seq_len, 2*seq_len); stored transposed: (in, out)
        "w1": 0.02 * jax.random.normal(kw1, (SEQ_LEN, 2 * SEQ_LEN), jnp.float32),
        "b1": 0.01 * jax.random.normal(kb1, (2 * SEQ_LEN,), jnp.float32),
        # SGU LayerNorm(seq_len): gamma=1, beta=0
        "sgu_gamma": jnp.ones((SEQ_LEN,), jnp.float32),
        "sgu_beta": jnp.zeros((SEQ_LEN,), jnp.float32),
        # SGU Conv1d(d_ffn, d_ffn, 1): weight ~ N(0, 1e-6), bias = 1.0
        "wsp": 1e-6 * jax.random.normal(kwsp, (D_FFN, D_FFN), jnp.float32),
        "bsp": jnp.ones((D_FFN,), jnp.float32),
        # nn.Linear(seq_len, seq_len); stored transposed
        "w2": 0.02 * jax.random.normal(kw2, (SEQ_LEN, SEQ_LEN), jnp.float32),
        "b2": 0.01 * jax.random.normal(kb2, (SEQ_LEN,), jnp.float32),
    }

    ref = jax.block_until_ready(gmlp_block_ref(x, params))

    # Exact f32 MXU path: must track the reference tightly.
    out_f32 = jax.block_until_ready(
        gmlp_block(x, params, matmul_dtype=jnp.float32))
    assert out_f32.shape == (B, D_FFN, SEQ_LEN), out_f32.shape
    assert jnp.allclose(out_f32, ref, rtol=1e-4, atol=1e-4), \
        float(jnp.max(jnp.abs(out_f32 - ref)))

    # bf16-input / f32-accumulate fast path (v6e / v7x): looser tolerance.
    out_bf16 = jax.block_until_ready(
        gmlp_block(x, params, matmul_dtype=jnp.bfloat16))
    assert out_bf16.shape == (B, D_FFN, SEQ_LEN), out_bf16.shape
    assert jnp.allclose(out_bf16, ref, rtol=2e-2, atol=2e-2), \
        float(jnp.max(jnp.abs(out_bf16 - ref)))

    print("KERNEL_OK")
</pallas_src>

<mosaic_0001>
module attributes {stable_mosaic.version = 11 : i64} {
  func.func @gmlp_block_kernel(%arg0: i32, %arg1: memref<16x8x128xf32, #tpu.memory_space<vmem>>, %arg2: memref<1x128xf32, #tpu.memory_space<vmem>>, %arg3: memref<1x128xf32, #tpu.memory_space<vmem>>, %arg4: memref<128x128xf32, #tpu.memory_space<vmem>>, %arg5: memref<1x128xf32, #tpu.memory_space<vmem>>, %arg6: memref<128x128xf32, #tpu.memory_space<vmem>>, %arg7: memref<1x128xf32, #tpu.memory_space<vmem>>, %arg8: memref<1x128xf32, #tpu.memory_space<vmem>>, %arg9: memref<1x128xf32, #tpu.memory_space<vmem>>, %arg10: memref<16x8x8xf32, #tpu.memory_space<vmem>>, %arg11: memref<8x128xf32, #tpu.memory_space<vmem>>, %arg12: memref<128x128xf32, #tpu.memory_space<vmem>>, %arg13: memref<1x128xf32, #tpu.memory_space<vmem>>, %arg14: memref<16x8x128xf32, #tpu.memory_space<vmem>>) attributes {dimension_semantics = [#tpu.dimension_semantics<parallel>], iteration_bounds = array<i64: 2>, scalar_prefetch = 0 : i64, scratch_operands = 0 : i64, tpu.core_type = #tpu.core_type<tc>, window_params = [{transform_indices = @transform_0, window_bounds = array<i64: 16, 8, 128>}, {pipeline_mode = #tpu.pipeline_mode<synchronous>, transform_indices = @transform_1, window_bounds = array<i64: 1, 128>}, {pipeline_mode = #tpu.pipeline_mode<synchronous>, transform_indices = @transform_2, window_bounds = array<i64: 1, 128>}, {pipeline_mode = #tpu.pipeline_mode<synchronous>, transform_indices = @transform_3, window_bounds = array<i64: 128, 128>}, {pipeline_mode = #tpu.pipeline_mode<synchronous>, transform_indices = @transform_4, window_bounds = array<i64: 1, 128>}, {pipeline_mode = #tpu.pipeline_mode<synchronous>, transform_indices = @transform_5, window_bounds = array<i64: 128, 128>}, {pipeline_mode = #tpu.pipeline_mode<synchronous>, transform_indices = @transform_6, window_bounds = array<i64: 1, 128>}, {pipeline_mode = #tpu.pipeline_mode<synchronous>, transform_indices = @transform_7, window_bounds = array<i64: 1, 128>}, {pipeline_mode = #tpu.pipeline_mode<synchronous>, transform_indices = @transform_8, window_bounds = array<i64: 1, 128>}, {pipeline_mode = #tpu.pipeline_mode<synchronous>, transform_indices = @transform_9, window_bounds = array<i64: 16, 8, 8>}, {pipeline_mode = #tpu.pipeline_mode<synchronous>, transform_indices = @transform_10, window_bounds = array<i64: 8, 128>}, {pipeline_mode = #tpu.pipeline_mode<synchronous>, transform_indices = @transform_11, window_bounds = array<i64: 128, 128>}, {pipeline_mode = #tpu.pipeline_mode<synchronous>, transform_indices = @transform_12, window_bounds = array<i64: 1, 128>}, {transform_indices = @transform_13, window_bounds = array<i64: 16, 8, 128>}]} {
    %c0 = arith.constant 0 : index
    %c0_0 = arith.constant 0 : index
    %c0_1 = arith.constant 0 : index
    %0 = vector.load %arg1[%c0, %c0_0, %c0_1] : memref<16x8x128xf32, #tpu.memory_space<vmem>>, vector<16x8x128xf32>
    %1 = vector.shape_cast %0 : vector<16x8x128xf32> to vector<128x128xf32>
    %c0_2 = arith.constant 0 : index
    %c0_3 = arith.constant 0 : index
    %2 = vector.load %arg2[%c0_2, %c0_3] : memref<1x128xf32, #tpu.memory_space<vmem>>, vector<1x128xf32>
    %c0_4 = arith.constant 0 : index
    %c0_5 = arith.constant 0 : index
    %3 = vector.load %arg3[%c0_4, %c0_5] : memref<1x128xf32, #tpu.memory_space<vmem>>, vector<1x128xf32>
    %cst = arith.constant dense<0.000000e+00> : vector<128xf32>
    %4 = vector.multi_reduction <add>, %1, %cst [1] : vector<128x128xf32> to vector<128xf32>
    %5 = vector.shape_cast %4 : vector<128xf32> to vector<128x1xf32>
    %6 = arith.mulf %1, %1 : vector<128x128xf32>
    %cst_6 = arith.constant dense<0.000000e+00> : vector<128xf32>
    %7 = vector.multi_reduction <add>, %6, %cst_6 [1] : vector<128x128xf32> to vector<128xf32>
    %8 = vector.shape_cast %7 : vector<128xf32> to vector<128x1xf32>
    %cst_7 = arith.constant 7.812500e-03 : f32
    %9 = vector.broadcast %cst_7 : f32 to vector<128x1xf32>
    %10 = arith.mulf %5, %9 : vector<128x1xf32>
    %cst_8 = arith.constant 7.812500e-03 : f32
    %11 = vector.broadcast %cst_8 : f32 to vector<128x1xf32>
    %12 = arith.mulf %8, %11 : vector<128x1xf32>
    %13 = arith.mulf %10, %10 : vector<128x1xf32>
    %14 = arith.subf %12, %13 : vector<128x1xf32>
    %15 = vector.broadcast %10 : vector<128x1xf32> to vector<128x128xf32>
    %16 = arith.subf %1, %15 : vector<128x128xf32>
    %cst_9 = arith.constant 9.99999974E-6 : f32
    %17 = vector.broadcast %cst_9 : f32 to vector<128x1xf32>
    %18 = arith.addf %14, %17 : vector<128x1xf32>
    %19 = math.rsqrt %18 : vector<128x1xf32>
    %20 = vector.broadcast %19 : vector<128x1xf32> to vector<128x128xf32>
    %21 = arith.mulf %16, %20 : vector<128x128xf32>
    %22 = vector.broadcast %2 : vector<1x128xf32> to vector<128x128xf32>
    %23 = arith.mulf %21, %22 : vector<128x128xf32>
    %24 = vector.broadcast %3 : vector<1x128xf32> to vector<128x128xf32>
    %25 = arith.addf %23, %24 : vector<128x128xf32>
    %c0_10 = arith.constant 0 : index
    %c0_11 = arith.constant 0 : index
    %26 = vector.load %arg4[%c0_10, %c0_11] : memref<128x128xf32, #tpu.memory_space<vmem>>, vector<128x128xf32>
    %cst_12 = arith.constant dense<0.000000e+00> : vector<128x128xf32>
    %27 = tpu.matmul %25, %26, %cst_12 {dimension_numbers = #tpu.dot_dimension_numbers<[1], [0], [0], [1], [0, 0, 1, 1], [], []>} : vector<128x128xf32>, vector<128x128xf32>, vector<128x128xf32> -> vector<128x128xf32>
    %c0_13 = arith.constant 0 : index
    %c0_14 = arith.constant 0 : index
    %28 = vector.load %arg5[%c0_13, %c0_14] : memref<1x128xf32, #tpu.memory_space<vmem>>, vector<1x128xf32>
    %29 = vector.broadcast %28 : vector<1x128xf32> to vector<128x128xf32>
    %30 = arith.addf %27, %29 : vector<128x128xf32>
    %cst_15 = arith.constant 5.000000e-01 : f32
    %31 = vector.broadcast %cst_15 : f32 to vector<128x128xf32>
    %32 = arith.mulf %31, %30 : vector<128x128xf32>
    %cst_16 = arith.constant 2.000000e+00 : f32
    %33 = math.sqrt %cst_16 : f32
    %cst_17 = arith.constant 1.000000e+00 : f32
    %34 = arith.divf %cst_17, %33 : f32
    %35 = vector.broadcast %34 : f32 to vector<128x128xf32>
    %36 = arith.mulf %30, %35 : vector<128x128xf32>
    %37 = math.erf %36 : vector<128x128xf32>
    %cst_18 = arith.constant 1.000000e+00 : f32
    %38 = vector.broadcast %cst_18 : f32 to vector<128x128xf32>
    %39 = arith.addf %38, %37 : vector<128x128xf32>
    %40 = arith.mulf %32, %39 : vector<128x128xf32>
    %c0_19 = arith.constant 0 : index
    %c0_20 = arith.constant 0 : index
    %41 = vector.load %arg6[%c0_19, %c0_20] : memref<128x128xf32, #tpu.memory_space<vmem>>, vector<128x128xf32>
    %cst_21 = arith.constant dense<0.000000e+00> : vector<128x128xf32>
    %42 = tpu.matmul %25, %41, %cst_21 {dimension_numbers = #tpu.dot_dimension_numbers<[1], [0], [0], [1], [0, 0, 1, 1], [], []>} : vector<128x128xf32>, vector<128x128xf32>, vector<128x128xf32> -> vector<128x128xf32>
    %c0_22 = arith.constant 0 : index
    %c0_23 = arith.constant 0 : index
    %43 = vector.load %arg7[%c0_22, %c0_23] : memref<1x128xf32, #tpu.memory_space<vmem>>, vector<1x128xf32>
    %44 = vector.broadcast %43 : vector<1x128xf32> to vector<128x128xf32>
    %45 = arith.addf %42, %44 : vector<128x128xf32>
    %cst_24 = arith.constant 5.000000e-01 : f32
    %46 = vector.broadcast %cst_24 : f32 to vector<128x128xf32>
    %47 = arith.mulf %46, %45 : vector<128x128xf32>
    %cst_25 = arith.constant 2.000000e+00 : f32
    %48 = math.sqrt %cst_25 : f32
    %cst_26 = arith.constant 1.000000e+00 : f32
    %49 = arith.divf %cst_26, %48 : f32
    %50 = vector.broadcast %49 : f32 to vector<128x128xf32>
    %51 = arith.mulf %45, %50 : vector<128x128xf32>
    %52 = math.erf %51 : vector<128x128xf32>
    %cst_27 = arith.constant 1.000000e+00 : f32
    %53 = vector.broadcast %cst_27 : f32 to vector<128x128xf32>
    %54 = arith.addf %53, %52 : vector<128x128xf32>
    %55 = arith.mulf %47, %54 : vector<128x128xf32>
    %c0_28 = arith.constant 0 : index
    %c0_29 = arith.constant 0 : index
    %56 = vector.load %arg8[%c0_28, %c0_29] : memref<1x128xf32, #tpu.memory_space<vmem>>, vector<1x128xf32>
    %c0_30 = arith.constant 0 : index
    %c0_31 = arith.constant 0 : index
    %57 = vector.load %arg9[%c0_30, %c0_31] : memref<1x128xf32, #tpu.memory_space<vmem>>, vector<1x128xf32>
    %cst_32 = arith.constant dense<0.000000e+00> : vector<128xf32>
    %58 = vector.multi_reduction <add>, %55, %cst_32 [1] : vector<128x128xf32> to vector<128xf32>
    %59 = vector.shape_cast %58 : vector<128xf32> to vector<128x1xf32>
    %60 = arith.mulf %55, %55 : vector<128x128xf32>
    %cst_33 = arith.constant dense<0.000000e+00> : vector<128xf32>
    %61 = vector.multi_reduction <add>, %60, %cst_33 [1] : vector<128x128xf32> to vector<128xf32>
    %62 = vector.shape_cast %61 : vector<128xf32> to vector<128x1xf32>
    %cst_34 = arith.constant 7.812500e-03 : f32
    %63 = vector.broadcast %cst_34 : f32 to vector<128x1xf32>
    %64 = arith.mulf %59, %63 : vector<128x1xf32>
    %cst_35 = arith.constant 7.812500e-03 : f32
    %65 = vector.broadcast %cst_35 : f32 to vector<128x1xf32>
    %66 = arith.mulf %62, %65 : vector<128x1xf32>
    %67 = arith.mulf %64, %64 : vector<128x1xf32>
    %68 = arith.subf %66, %67 : vector<128x1xf32>
    %69 = vector.broadcast %64 : vector<128x1xf32> to vector<128x128xf32>
    %70 = arith.subf %55, %69 : vector<128x128xf32>
    %cst_36 = arith.constant 9.99999974E-6 : f32
    %71 = vector.broadcast %cst_36 : f32 to vector<128x1xf32>
    %72 = arith.addf %68, %71 : vector<128x1xf32>
    %73 = math.rsqrt %72 : vector<128x1xf32>
    %74 = vector.broadcast %73 : vector<128x1xf32> to vector<128x128xf32>
    %75 = arith.mulf %70, %74 : vector<128x128xf32>
    %76 = vector.broadcast %56 : vector<1x128xf32> to vector<128x128xf32>
    %77 = arith.mulf %75, %76 : vector<128x128xf32>
    %78 = vector.broadcast %57 : vector<1x128xf32> to vector<128x128xf32>
    %79 = arith.addf %77, %78 : vector<128x128xf32>
    %80 = vector.shape_cast %79 : vector<128x128xf32> to vector<16x8x128xf32>
    %c0_37 = arith.constant 0 : index
    %c0_38 = arith.constant 0 : index
    %c0_39 = arith.constant 0 : index
    %81 = vector.load %arg10[%c0_37, %c0_38, %c0_39] : memref<16x8x8xf32, #tpu.memory_space<vmem>>, vector<16x8x8xf32>
    "tpu.trace_start"() <{level = 10 : i32, message = "bfc,bcl->bfl"}> : () -> ()
    %cst_40 = arith.constant dense<0.000000e+00> : vector<16x8x128xf32>
    %82 = tpu.matmul %81, %80, %cst_40 {dimension_numbers = #tpu.dot_dimension_numbers<[2], [1], [1], [2], [0, 0, 0, 1, 1, 2], [0], [0]>} : vector<16x8x8xf32>, vector<16x8x128xf32>, vector<16x8x128xf32> -> vector<16x8x128xf32>
    "tpu.trace_stop"() : () -> ()
    %c0_41 = arith.constant 0 : index
    %c0_42 = arith.constant 0 : index
    %83 = vector.load %arg11[%c0_41, %c0_42] : memref<8x128xf32, #tpu.memory_space<vmem>>, vector<8x128xf32>
    %84 = vector.shape_cast %83 : vector<8x128xf32> to vector<1x8x128xf32>
    %85 = vector.broadcast %84 : vector<1x8x128xf32> to vector<16x8x128xf32>
    %86 = arith.addf %82, %85 : vector<16x8x128xf32>
    %87 = vector.shape_cast %40 : vector<128x128xf32> to vector<16x8x128xf32>
    %88 = arith.mulf %87, %86 : vector<16x8x128xf32>
    %89 = vector.shape_cast %88 : vector<16x8x128xf32> to vector<128x128xf32>
    %c0_43 = arith.constant 0 : index
    %c0_44 = arith.constant 0 : index
    %90 = vector.load %arg12[%c0_43, %c0_44] : memref<128x128xf32, #tpu.memory_space<vmem>>, vector<128x128xf32>
    %cst_45 = arith.constant dense<0.000000e+00> : vector<128x128xf32>
    %91 = tpu.matmul %89, %90, %cst_45 {dimension_numbers = #tpu.dot_dimension_numbers<[1], [0], [0], [1], [0, 0, 1, 1], [], []>} : vector<128x128xf32>, vector<128x128xf32>, vector<128x128xf32> -> vector<128x128xf32>
    %c0_46 = arith.constant 0 : index
    %c0_47 = arith.constant 0 : index
    %92 = vector.load %arg13[%c0_46, %c0_47] : memref<1x128xf32, #tpu.memory_space<vmem>>, vector<1x128xf32>
    %93 = vector.broadcast %92 : vector<1x128xf32> to vector<128x128xf32>
    %94 = arith.addf %91, %93 : vector<128x128xf32>
    %95 = vector.shape_cast %94 : vector<128x128xf32> to vector<16x8x128xf32>
    %c0_48 = arith.constant 0 : index
    %c0_49 = arith.constant 0 : index
    %c0_50 = arith.constant 0 : index
    %96 = vector.load %arg1[%c0_48, %c0_49, %c0_50] : memref<16x8x128xf32, #tpu.memory_space<vmem>>, vector<16x8x128xf32>
    %97 = arith.addf %95, %96 : vector<16x8x128xf32>
    %c0_51 = arith.constant 0 : index
    %c0_52 = arith.constant 0 : index
    %c0_53 = arith.constant 0 : index
    %98 = vector.load %arg14[%c0_51, %c0_52, %c0_53] : memref<16x8x128xf32, #tpu.memory_space<vmem>>, vector<16x8x128xf32>
    tpu.vector_store %arg14[%c0_51, %c0_52, %c0_53], %97 {strides = array<i32>} : memref<16x8x128xf32, #tpu.memory_space<vmem>>, vector<16x8x128xf32>,
    return
  }
  func.func @transform_0(%arg0: i32) -> (i32, i32, i32) {
    %c0_i32 = arith.constant 0 : i32
    %c0_i32_0 = arith.constant 0 : i32
    %c0_i32_1 = arith.constant 0 : i32
    return %arg0, %c0_i32, %c0_i32_0 : i32, i32, i32
  }
  func.func @transform_1(%arg0: i32) -> (i32, i32) {
    %c0_i32 = arith.constant 0 : i32
    %c0_i32_0 = arith.constant 0 : i32
    %c0_i32_1 = arith.constant 0 : i32
    return %c0_i32, %c0_i32_0 : i32, i32
  }
  func.func @transform_2(%arg0: i32) -> (i32, i32) {
    %c0_i32 = arith.constant 0 : i32
    %c0_i32_0 = arith.constant 0 : i32
    %c0_i32_1 = arith.constant 0 : i32
    return %c0_i32, %c0_i32_0 : i32, i32
  }
  func.func @transform_3(%arg0: i32) -> (i32, i32) {
    %c0_i32 = arith.constant 0 : i32
    %c0_i32_0 = arith.constant 0 : i32
    %c0_i32_1 = arith.constant 0 : i32
    return %c0_i32, %c0_i32_0 : i32, i32
  }
  func.func @transform_4(%arg0: i32) -> (i32, i32) {
    %c0_i32 = arith.constant 0 : i32
    %c0_i32_0 = arith.constant 0 : i32
    %c0_i32_1 = arith.constant 0 : i32
    return %c0_i32, %c0_i32_0 : i32, i32
  }
  func.func @transform_5(%arg0: i32) -> (i32, i32) {
    %c0_i32 = arith.constant 0 : i32
    %c0_i32_0 = arith.constant 0 : i32
    %c0_i32_1 = arith.constant 0 : i32
    return %c0_i32, %c0_i32_0 : i32, i32
  }
  func.func @transform_6(%arg0: i32) -> (i32, i32) {
    %c0_i32 = arith.constant 0 : i32
    %c0_i32_0 = arith.constant 0 : i32
    %c0_i32_1 = arith.constant 0 : i32
    return %c0_i32, %c0_i32_0 : i32, i32
  }
  func.func @transform_7(%arg0: i32) -> (i32, i32) {
    %c0_i32 = arith.constant 0 : i32
    %c0_i32_0 = arith.constant 0 : i32
    %c0_i32_1 = arith.constant 0 : i32
    return %c0_i32, %c0_i32_0 : i32, i32
  }
  func.func @transform_8(%arg0: i32) -> (i32, i32) {
    %c0_i32 = arith.constant 0 : i32
    %c0_i32_0 = arith.constant 0 : i32
    %c0_i32_1 = arith.constant 0 : i32
    return %c0_i32, %c0_i32_0 : i32, i32
  }
  func.func @transform_9(%arg0: i32) -> (i32, i32, i32) {
    %c0_i32 = arith.constant 0 : i32
    %c0_i32_0 = arith.constant 0 : i32
    %c0_i32_1 = arith.constant 0 : i32
    %c0_i32_2 = arith.constant 0 : i32
    return %c0_i32, %c0_i32_0, %c0_i32_1 : i32, i32, i32
  }
  func.func @transform_10(%arg0: i32) -> (i32, i32) {
    %c0_i32 = arith.constant 0 : i32
    %c0_i32_0 = arith.constant 0 : i32
    %c0_i32_1 = arith.constant 0 : i32
    return %c0_i32, %c0_i32_0 : i32, i32
  }
  func.func @transform_11(%arg0: i32) -> (i32, i32) {
    %c0_i32 = arith.constant 0 : i32
    %c0_i32_0 = arith.constant 0 : i32
    %c0_i32_1 = arith.constant 0 : i32
    return %c0_i32, %c0_i32_0 : i32, i32
  }
  func.func @transform_12(%arg0: i32) -> (i32, i32) {
    %c0_i32 = arith.constant 0 : i32
    %c0_i32_0 = arith.constant 0 : i32
    %c0_i32_1 = arith.constant 0 : i32
    return %c0_i32, %c0_i32_0 : i32, i32
  }
  func.func @transform_13(%arg0: i32) -> (i32, i32, i32) {
    %c0_i32 = arith.constant 0 : i32
    %c0_i32_0 = arith.constant 0 : i32
    %c0_i32_1 = arith.constant 0 : i32
    return %arg0, %c0_i32, %c0_i32_0 : i32, i32, i32
  }
}

</mosaic_0001>

<bundles_post_ra>
// kernel: tpu_custom_call.1
= control target key start
LH: loop header
LB: loop body
LE: loop exit
PB: predicated region body
PF: predicated region fallthrough
CT: control target
= control target key end

     0   :  { %s6723_s0 = inlined_call_operand.hbm [shape: f32[32,8,128], index: 0, kind: input, shape index: {}]   ;;  %s6724_s1 = inlined_call_operand.vmem [shape: f32[1,128], index: 1, kind: input, shape index: {}]   ;;  %s6725_s2 = inlined_call_operand.vmem [shape: f32[1,128], index: 2, kind: input, shape index: {}]   ;;  %s6726_s3 = inlined_call_operand.vmem [shape: f32[128,128], index: 3, kind: input, shape index: {}]   ;;  %s6727_s4 = inlined_call_operand.vmem [shape: f32[1,128], index: 4, kind: input, shape index: {}]   ;;  %s6728_s5 = inlined_call_operand.hbm [shape: f32[128,128], index: 5, kind: input, shape index: {}]   ;;  %s6729_s6 = inlined_call_operand.vmem [shape: f32[1,128], index: 6, kind: input, shape index: {}]   ;;  %s6730_s7 = inlined_call_operand.vmem [shape: f32[1,128], index: 7, kind: input, shape index: {}]   ;;  %s6731_s8 = inlined_call_operand.vmem [shape: f32[1,128], index: 8, kind: input, shape index: {}]   ;;  %s6732_s9 = inlined_call_operand.vmem [shape: f32[16,8,8], index: 9, kind: input, shape index: {}]   ;;  %s6733_s10 = inlined_call_operand.vmem [shape: f32[8,128], index: 10, kind: input, shape index: {}]   ;;  %s6734_s11 = inlined_call_operand.hbm [shape: f32[128,128], index: 11, kind: input, shape index: {}]   ;;  %s6735_s12 = inlined_call_operand.vmem [shape: f32[1,128], index: 12, kind: input, shape index: {}]   ;;  %s6736_s13 = inlined_call_operand.hbm [shape: f32[32,8,128], index: 13, kind: output, shape index: {}]  }
   0x1   :  { %6747 = sst [smem:[#allocation27_spill]] %s6728_s5 }
   0x2   :  { %6748 = sst [smem:[#allocation28_spill]] %s6734_s11 }
   0x3   :  { %18 = vsyncpa [#allocation3], 0 }
   0x4   :  { %20 = vsyncpa [#allocation3 + $0x1], 0 }
   0x5   :  { %21 = vsyncpa [#allocation6], 0 }
   0x6   :  { %22 = vsyncpa [#allocation4], 0 }
   0x7   :  { %24 = vsyncpa [#allocation4 + $0x1], 0  ;;  %s4049_s25 = smov 0   ;;  %s4051_s26 = smov 0  }
   0x8   :  { %s4053_s27 = smov 0   ;;  %s4055_s28 = smov 0  }
   0x9 LB: > { %6749 = sst [smem:[#allocation12_spill]] %s3959_s25  ;;  %s4070_s29 = sadd.s32 4294967295, %s3971_s28   ;;  %s3971_s28 = sphi %s4055_s28, %s6862_s28   ;;  %s3967_s27 = sphi %s4053_s27, %s6864_s27   ;;  %s3963_s26 = sphi %s4051_s26, %s6866_s26   ;;  %s3959_s25 = sphi %s4049_s25, %s6865_s25  }
   0xa   : > { %6750 = sst [smem:[#allocation13_spill]] %s3967_s27  ;;  %s3517_s30 = sadd.s32 4294967294, %s3971_s28  }
   0xb   : > { %p50_p0 = scmp.ne.s32.totalorder %s3963_s26, %s3959_s25  ;;  %p51_p1 = scmp.eq.s32.totalorder %s4070_s29, 0 }
   0xc   : > { %p326_p2 = scmp.eq.s32.totalorder %s4070_s29, 1  ;;  %p332_p3 = scmp.eq.s32.totalorder %s3517_s30, 1 }
   0xd   : > { %p4079_p4 = por %p51_p1, %p50_p0  ;;  %p3518_p5 = scmp.ge.s32.totalorder %s3971_s28, 1 }
   0xe   : > { %p4084_p6 = por %p332_p3, %p50_p0  ;;  %p339_p7 = scmp.lt.s32.totalorder %s3971_s28, 3 }
   0xf   : > { %s6754_s5 = sld [smem:[#allocation27_spill]]  ;;  %s3973_s20 = smov [#allocation5]  }
  0x10   : > { %s6752_s15 = scalar_select %p4084_p6, 1, 0 }
  0x11   : > { %p4092_p8 = pnand %p3518_p5, %p339_p7  ;;  %s364_s21 = sshll.u32 %s3973_s20, 4  ;;  %s365_s21 = int_to_ptr.vmem [resolvable:$true] %s364_s21 }
  0x12   : > { %6753 = sst [smem:[#allocation14_spill]] %s6752_s15  ;;  %s6737_s30 = smov 128  }
  0x13   : > { %p3613_p9 = pneg %p4092_p8  ;;  %s6756_s11 = sld [smem:[#allocation28_spill]] }
  0x14   : > { %s6738_s16 = smov 8   ;;  %s3976_s17 = smov [#allocation7]  }
  0x15   : > { %s362_s18 = sshll.u32 %s6754_s5, 4  ;;  %p3614_p10 = pnand %p3613_p9, %p51_p1  ;;  %s363_s18 = int_to_ptr.hbm [resolvable:$true] %s362_s18 }
  0x16   : > { %s393_s20 = sshll.u32 %s3976_s17, 4  ;;  %s4111_s22 = sadd.s32 1, %s3971_s28   ;;  %s394_s20 = int_to_ptr.vmem [resolvable:$true] %s393_s20 }
  0x17   : > { %3616 = dma.hbm_to_vmem [thread:$0]  (!%p3614_p10), %s363_s18, 2048, %s365_s21, [#allocation6], %s6737_s30, %s6737_s30, %s6738_s16  }
  0x18   : > { %6757 = sst [smem:[#allocation15_spill]] %s4111_s22  ;;  %s37_s23 = sadd.s32 1, %s3967_s27 }
  0x19   : > { %s391_s24 = sshll.u32 %s6756_s11, 4  ;;  %s34_s5 = ssub.s32 %s3971_s28, %s4111_s22  ;;  %s392_s24 = int_to_ptr.hbm [resolvable:$true] %s391_s24 }
  0x1a   : > { %3619 = dma.hbm_to_vmem [thread:$0]  (!%p3614_p10), %s392_s24, 2048, %s394_s20, [#allocation6], %s6737_s30, %s6737_s30, %s6738_s16  }
  0x1b   : > { %p44_p12 = scmp.ne.s32.totalorder %s3967_s27, %s3963_s26  ;;  %p35_p13 = scmp.eq.s32.totalorder %s34_s5, 0 }
  0x1c   : > { %p45_p0 = scmp.eq.s32.totalorder %s3971_s28, 0  ;;  %p3630_p5 = scmp.lt.s32.totalorder %s3971_s28, 2 }
  0x1d   : > { %p4121_p3 = por %p326_p2, %p44_p12  ;;  %s410_s21 = sand.u32 1, %s3967_s27  }
  0x1e   : > { %s4127_s18 = scalar_select %p35_p13, %s3967_s27, %s37_s23  }
  0x1f   : > { %p46_p7 = por %p45_p0, %p44_p12  ;;  %s3522_s17 = sshll.u32 %s410_s21, 7 }
  0x20   : > { %6759 = sst [smem:[#allocation16_spill]] %s4127_s18  ;;  %s3583_s24 = sshll.u32 %s3971_s28, 7 }
  0x21   : > { %s419_s16 = scalar_lea.hbm %s6723_s0, %s3583_s24  ;;  %s414_s22 = scalar_lea.vmem [#allocation2], %s3522_s17 }
  0x22   : > { %s422_s15 = sshll.u32 %s414_s22, 4  ;;  %s420_s5 = sshll.u32 %s419_s16, 4  ;;  %s423_s15 = int_to_ptr.vmem [resolvable:$true] %s422_s15  ;;  %s421_s5 = int_to_ptr.hbm [resolvable:$true] %s420_s5 }
  0x23   : > { %p4134_p2 = pnand %p3630_p5, %p46_p7  ;;  %s411_s23 = scalar_lea.sflag [#allocation3], %s410_s21 }
  0x24   : > { %s3871_s18 = sshra.s32 %s421_s5, 4  ;;  %s3878_s16 = scalar_lea.hbm %s6723_s0, 256  ;;  %s3872_s18 = int_to_ptr.hbm [resolvable:$true] %s3871_s18 }
  0x25   : > { %s3873_s27 = scalar_lea.hbm %s3872_s18, 128  ;;  %p3875_p10 = pneg %p4134_p2 }
  0x26   : > { %p3874_p9 = scmp.ne.s32.totalorder %s3872_s18, %s3873_s27  ;;  %p3879_p0 = scmp.lt.s32.totalorder %s3872_s18, %s6723_s0 }
  0x27   : > { %p3880_p5 = scmp.lt.s32.totalorder %s3878_s16, %s3873_s27 }
  0x28   : > { %p3876_p12 = pnand %p3875_p10, %p3874_p9 }
  0x29   : > { %p3881_p7 = por %p3880_p5, %p3879_p0 }
  0x2a   : > { %p3877_p13 = pneg %p3876_p12 }
  0x2c   : > { %p3882_p11 = pnand %p3881_p7, %p3877_p13 }
  0x2e   : > { %3885 = shalt.err (!%p3882_p11)
}
  0x2f   : > { %s6761_s21 = smov 8   ;;  %s6762_s20 = smov 128  }
  0x30   : > { %3623 = dma.hbm_to_vmem [thread:$0]  (!%p4134_p2), %s421_s5, 2048, %s423_s15, %s411_s23, %s6762_s20, %s6762_s20, %s6761_s21  }
  0x31   : > { %434 = sbr.rel (%p4092_p8) target bundleno = 988 (0x3dc), region = 72 }
  0x36   : > { %s4154_s30 = sand.u32 1, %s3963_s26  }
  0x37   : > { %s3526_s27 = sshll.u32 %s4154_s30, 7  ;;  %s437_s18 = scalar_lea.sflag [#allocation3], %s4154_s30 }
  0x38   : > { %s4160_s17 = scalar_lea.vmem [#allocation2], %s3526_s27 }
  0x39   : > { %3946 = dma.done.wait (%p4079_p4), %s437_s18, 2048  }
  0x3a   : > { %3948 = vsyncadd (%p4079_p4), %s437_s18, 4294965248 }
  0x3b   : > { %3950 = dma.done.wait (%p51_p1), [#allocation6], 4096  }
  0x3c   : > { %3952 = vsyncadd (%p51_p1), [#allocation6], 4294963200  ;;  %v4171_v0 = vld [vmem:[%s4160_s17 + $0x10] sm:$0xff]  ;;  %v4174_v1 = vld [vmem:[%s4160_s17 + $0x8] sm:$0xff]  ;;  %s6641_s5 = scalar_lea.vmem [#allocation8], %s3526_s27  ;;  %s3584_s27 = sshll.u32 %s4070_s29, 7 }
  0x3d   : > { %v4177_v2 = vld [vmem:[%s4160_s17] sm:$0xff]  ;;  %518 = vadd.xlane.f32.xlu2 %v4171_v0  ;;  %516 = vadd.xlane.f32.xlu1 %v4174_v1  ;;  %v548_v3 = vmul.f32 %v4171_v0, %v4171_v0  ;;  %v547_v4 = vmul.f32 %v4174_v1, %v4174_v1  ;;  %v4189_v6 = vld [vmem:[%s4160_s17 + $0x18] sm:$0xff]  ;;  %v4199_v9 = vld [vmem:[%s4160_s17 + $0x28] sm:$0xff]  ;;  %s3421_s22 = scalar_lea.hbm %s6736_s13, %s3584_s27  ;;  %s3422_s24 = sshll.u32 %s6641_s5, 4  ;;  %s3423_s24 = int_to_ptr.vmem [resolvable:$true] %s3422_s24 }
  0x3e   : > { %514 = vadd.xlane.f32.xlu0 %v4177_v2  ;;  %v546_v5 = vmul.f32 %v4177_v2, %v4177_v2  ;;  %v549_v7 = vmul.f32 %v4189_v6, %v4189_v6  ;;  %v4194_v8 = vld [vmem:[%s4160_s17 + $0x20] sm:$0xff]  ;;  %v551_v10 = vmul.f32 %v4199_v9, %v4199_v9  ;;  %v4207_v12 = vld [vmem:[%s4160_s17 + $0x30] sm:$0xff]  ;;  %v4212_v14 = vld [vmem:[%s4160_s17 + $0x38] sm:$0xff]  ;;  %s3424_s21 = sshll.u32 %s3421_s22, 4  ;;  %s3410_s20 = scalar_lea.sflag [#allocation4], %s4154_s30  ;;  %s3425_s21 = int_to_ptr.hbm [resolvable:$true] %s3424_s21 }
  0x3f   : > { %v550_v11 = vmul.f32 %v4194_v8, %v4194_v8  ;;  %v552_v13 = vmul.f32 %v4207_v12, %v4207_v12  ;;  %v4217_v15 = vld [vmem:[%s4160_s17 + $0x40] sm:$0xff]  ;;  %v553_v17 = vmul.f32 %v4212_v14, %v4212_v14  ;;  %v4225_v18 = vld [vmem:[%s4160_s17 + $0x48] sm:$0xff]  ;;  %v4230_v20 = vld [vmem:[%s4160_s17 + $0x50] sm:$0xff]  ;;  %s3915_s18 = sshra.s32 %s3425_s21, 4  ;;  %s3921_s15 = scalar_lea.hbm %s6736_s13, 256  ;;  %s3916_s18 = int_to_ptr.hbm [resolvable:$true] %s3915_s18 }
  0x40   : > { %v554_v16 = vmul.f32 %v4217_v15, %v4217_v15  ;;  %v555_v19 = vmul.f32 %v4225_v18, %v4225_v18  ;;  %v4235_v21 = vld [vmem:[%s4160_s17 + $0x58] sm:$0xff]  ;;  %v556_v23 = vmul.f32 %v4230_v20, %v4230_v20  ;;  %v4243_v24 = vld [vmem:[%s4160_s17 + $0x60] sm:$0xff]  ;;  %v4248_v26 = vld [vmem:[%s4160_s17 + $0x68] sm:$0xff]  ;;  %s3917_s29 = scalar_lea.hbm %s3916_s18, 128  ;;  %p3922_p11 = scmp.lt.s32.totalorder %s3916_s18, %s6736_s13 }
  0x41   : > { %v557_v22 = vmul.f32 %v4235_v21, %v4235_v21  ;;  %v558_v25 = vmul.f32 %v4243_v24, %v4243_v24  ;;  %v4253_v27 = vld [vmem:[%s4160_s17 + $0x70] sm:$0xff]  ;;  %v559_v29 = vmul.f32 %v4248_v26, %v4248_v26  ;;  %v4261_v30 = vld [vmem:[%s4160_s17 + $0x78] sm:$0xff]  ;;  %v917_v36 = vld [vmem:[%s6726_s3 + $0x68] sm:$0xff]  ;;  %p3918_p1 = scmp.ne.s32.totalorder %s3916_s18, %s3917_s29  ;;  %p3923_p2 = scmp.lt.s32.totalorder %s3921_s15, %s3917_s29 }
  0x42   : > { %v560_v28 = vmul.f32 %v4253_v27, %v4253_v27  ;;  %v561_v31 = vmul.f32 %v4261_v30, %v4261_v30  ;;  %v919_v32 = vld [vmem:[%s6726_s3 + $0x78] sm:$0xff]  ;;  %v918_v34 = vld [vmem:[%s6726_s3 + $0x70] sm:$0xff]  ;;  %v1706_v37 = vld [vmem:[#allocation5 + $0x68] sm:$0xff] }
  0x43   : > { %v1708_v33 = vld [vmem:[#allocation5 + $0x78] sm:$0xff]  ;;  %924 = vmatpush.msra.mxu0 %v919_v32  ;;  %v1707_v35 = vld [vmem:[#allocation5 + $0x70] sm:$0xff]  ;;  %v916_v38 = vld [vmem:[%s6726_s3 + $0x60] sm:$0xff]  ;;  %p3919_p4 = pnand %p3918_p1, %p4121_p3  ;;  %p3924_p9 = por %p3923_p2, %p3922_p11 }
  0x44   : > { %1713 = vmatpush.msra.mxu1 %v1708_v33  ;;  %v1705_v39 = vld [vmem:[#allocation5 + $0x60] sm:$0xff]  ;;  %v915_v40 = vld [vmem:[%s6726_s3 + $0x58] sm:$0xff]  ;;  %v914_v42 = vld [vmem:[%s6726_s3 + $0x50] sm:$0xff] }
  0x45   : > { %566 = vadd.xlane.f32.xlu2 %v548_v3  ;;  %564 = vadd.xlane.f32.xlu1 %v547_v4  ;;  %v1704_v41 = vld [vmem:[#allocation5 + $0x58] sm:$0xff]  ;;  %v1703_v43 = vld [vmem:[#allocation5 + $0x50] sm:$0xff]  ;;  %v913_v44 = vld [vmem:[%s6726_s3 + $0x48] sm:$0xff]  ;;  %p3920_p8 = pneg %p3919_p4 }
  0x46   : > { %562 = vadd.xlane.f32.xlu0 %v546_v5  ;;  %925 = vmatpush.msra.mxu0 %v918_v34  ;;  %v1702_v45 = vld [vmem:[#allocation5 + $0x48] sm:$0xff]  ;;  %v912_v46 = vld [vmem:[%s6726_s3 + $0x40] sm:$0xff]  ;;  %v911_v48 = vld [vmem:[%s6726_s3 + $0x38] sm:$0xff] }
  0x47   : > { %1714 = vmatpush.msra.mxu1 %v1707_v35  ;;  %v1701_v47 = vld [vmem:[#allocation5 + $0x40] sm:$0xff]  ;;  %v1700_v49 = vld [vmem:[#allocation5 + $0x38] sm:$0xff]  ;;  %v910_v50 = vld [vmem:[%s6726_s3 + $0x30] sm:$0xff]  ;;  %p3925_p10 = pnand %p3924_p9, %p3920_p8 }
  0x48   : > { %926 = vmatpush.msra.mxu0 %v917_v36  ;;  %v1699_v51 = vld [vmem:[#allocation5 + $0x30] sm:$0xff]  ;;  %v909_v52 = vld [vmem:[%s6726_s3 + $0x28] sm:$0xff]  ;;  %v908_v54 = vld [vmem:[%s6726_s3 + $0x20] sm:$0xff] }
  0x49   : > { %1715 = vmatpush.msra.mxu1 %v1706_v37  ;;  %v1698_v53 = vld [vmem:[#allocation5 + $0x28] sm:$0xff]  ;;  %v1697_v55 = vld [vmem:[#allocation5 + $0x20] sm:$0xff]  ;;  %v907_v59 = vld [vmem:[%s6726_s3 + $0x18] sm:$0xff] }
  0x4a   : > { %927 = vmatpush.msra.mxu0 %v916_v38  ;;  %v1696_v60 = vld [vmem:[#allocation5 + $0x18] sm:$0xff]  ;;  %v906_v63 = vld [vmem:[%s6726_s3 + $0x10] sm:$0xff]  ;;  %v905_v4 = vld [vmem:[%s6726_s3 + $0x8] sm:$0xff] }
  0x4b   : > { %1716 = vmatpush.msra.mxu1 %v1705_v39  ;;  %v1695_v3 = vld [vmem:[#allocation5 + $0x10] sm:$0xff]  ;;  %v1694_v5 = vld [vmem:[#allocation5 + $0x8] sm:$0xff] }
  0x4c   : > { %928 = vmatpush.msra.mxu0 %v915_v40 }
  0x4d   : > { %568 = vadd.xlane.f32.xlu1 %v549_v7  ;;  %522 = vadd.xlane.f32.xlu2 %v4194_v8 }
  0x4e   : > { %520 = vadd.xlane.f32.xlu0 %v4189_v6  ;;  %1717 = vmatpush.msra.mxu1 %v1704_v41 }
  0x4f   : > { %929 = vmatpush.msra.mxu0 %v914_v42 }
  0x50   : > { %1718 = vmatpush.msra.mxu1 %v1703_v43 }
  0x51   : > { %930 = vmatpush.msra.mxu0 %v913_v44 }
  0x52   : > { %1719 = vmatpush.msra.mxu1 %v1702_v45 }
  0x53   : > { %931 = vmatpush.msra.mxu0 %v912_v46 }
  0x54   : > { %1720 = vmatpush.msra.mxu1 %v1701_v47 }
  0x55   : > { %524 = vadd.xlane.f32.xlu1 %v4199_v9  ;;  %572 = vadd.xlane.f32.xlu2 %v551_v10 }
  0x56   : > { %570 = vadd.xlane.f32.xlu0 %v550_v11  ;;  %932 = vmatpush.msra.mxu0 %v911_v48 }
  0x57   : > { %1721 = vmatpush.msra.mxu1 %v1700_v49 }
  0x58   : > { %933 = vmatpush.msra.mxu0 %v910_v50 }
  0x59   : > { %1722 = vmatpush.msra.mxu1 %v1699_v51 }
  0x5a   : > { %934 = vmatpush.msra.mxu0 %v909_v52 }
  0x5b   : > { %1723 = vmatpush.msra.mxu1 %v1698_v53 }
  0x5c   : > { %935 = vmatpush.msra.mxu0 %v908_v54 }
  0x5d   : > { %574 = vadd.xlane.f32.xlu1 %v552_v13  ;;  %528 = vadd.xlane.f32.xlu2 %v4212_v14  ;;  %v904_v13 = vld [vmem:[%s6726_s3] sm:$0xff] }
  0x5e   : > { %526 = vadd.xlane.f32.xlu0 %v4207_v12  ;;  %1724 = vmatpush.msra.mxu1 %v1697_v55 }
  0x5f   : > { %936 = vmatpush.msra.mxu0 %v907_v59 }
  0x60   : > { %1725 = vmatpush.msra.mxu1 %v1696_v60 }
  0x61   : > { %937 = vmatpush.msra.mxu0 %v906_v63 }
  0x62   : > { %1726 = vmatpush.msra.mxu1 %v1695_v3 }
  0x63   : > { %938 = vmatpush.msra.mxu0 %v905_v4 }
  0x64   : > { %1727 = vmatpush.msra.mxu1 %v1694_v5 }
  0x65   : > { %530 = vadd.xlane.f32.xlu1 %v4217_v15  ;;  %578 = vadd.xlane.f32.xlu2 %v554_v16  ;;  %v1693_v16 = vld [vmem:[#allocation5] sm:$0xff] }
  0x66   : > { %576 = vadd.xlane.f32.xlu0 %v553_v17  ;;  %939 = vmatpush.msra.mxu0 %v904_v13 }
  0x67   : > { %1728 = vmatpush.msra.mxu1 %v1693_v16 }
  0x6d   : > { %580 = vadd.xlane.f32.xlu1 %v555_v19  ;;  %534 = vadd.xlane.f32.xlu2 %v4230_v20 }
  0x6e   : > { %532 = vadd.xlane.f32.xlu0 %v4225_v18 }
  0x75   : > { %536 = vadd.xlane.f32.xlu1 %v4235_v21  ;;  %584 = vadd.xlane.f32.xlu2 %v557_v22 }
  0x76   : > { %582 = vadd.xlane.f32.xlu0 %v556_v23 }
  0x7d   : > { %586 = vadd.xlane.f32.xlu1 %v558_v25  ;;  %540 = vadd.xlane.f32.xlu2 %v4248_v26 }
  0x7e   : > { %538 = vadd.xlane.f32.xlu0 %v4243_v24 }
  0x85   : > { %542 = vadd.xlane.f32.xlu1 %v4253_v27  ;;  %590 = vadd.xlane.f32.xlu2 %v560_v28 }
  0x86   : > { %588 = vadd.xlane.f32.xlu0 %v559_v29 }
  0x8d   : > { %592 = vadd.xlane.f32.xlu1 %v561_v31 }
  0x8e   : > { %544 = vadd.xlane.f32.xlu0 %v4261_v30 }
  0xb0   : > { %v519_v56 = vpop.xlane.xlu2 %518  ;;  %v517_v57 = vpop.xlane.xlu1 %516 }
  0xb1   : > { %v515_v58 = vpop.xlane.xlu0 %514  ;;  %v4305_v61 = vmul.f32 0.0078125, %v519_v56  ;;  %v4307_v62 = vmul.f32 0.0078125, %v517_v57 }
  0xb2   : > { %v4315_v7 = vmul.f32 0.0078125, %v515_v58 }
  0xb3   : > { %v628_v10 = vmul.f32 %v4305_v61, %v4305_v61  ;;  %v627_v11 = vmul.f32 %v4307_v62, %v4307_v62 }
  0xb4   : > { %v626_v28 = vmul.f32 %v4315_v7, %v4315_v7 }
  0xb8   : > { %v567_v17 = vpop.xlane.xlu2 %566  ;;  %v565_v19 = vpop.xlane.xlu1 %564 }
  0xb9   : > { %v612_v22 = vmul.f32 0.0078125, %v567_v17  ;;  %v611_v23 = vmul.f32 0.0078125, %v565_v19  ;;  %v563_v25 = vpop.xlane.xlu0 %562 }
  0xba   : > { %v610_v29 = vmul.f32 0.0078125, %v563_v25 }
  0xbb   : > { %v644_v31 = vsub.f32 %v612_v22, %v628_v10  ;;  %v643_v32 = vsub.f32 %v611_v23, %v627_v11 }
  0xbc   : > { %v642_v33 = vsub.f32 %v610_v29, %v626_v28 }
  0xbd   : > { %v4326_v34 = vadd.f32 1e-05, %v644_v31  ;;  %v675_v35 = vadd.f32 1e-05, %v643_v32  ;;  %v658_v32 = vsub.f32 %v4177_v2, %v4315_v7 }
  0xbe   : > { %v674_v36 = vadd.f32 1e-05, %v642_v33 }
  0xbf   : > { %3679 = vrsqrt.f32 %v4326_v34  ;;  %vm706_vm3 = vweird.f32 %v675_v35  ;;  %vm716_vm6 = vweird.f32 %v4326_v34 }
  0xc0   : > { %3681 = vrsqrt.f32 %v675_v35  ;;  %v569_v37 = vpop.xlane.xlu1 %568  ;;  %v523_v38 = vpop.xlane.xlu2 %522  ;;  %vm696_vm1 = vweird.f32 %v674_v36 }
  0xc1   : > { %3683 = vrsqrt.f32 %v674_v36  ;;  %v521_v39 = vpop.xlane.xlu0 %520  ;;  %v613_v40 = vmul.f32 0.0078125, %v569_v37  ;;  %v4335_v44 = vmul.f32 0.0078125, %v523_v38 }
  0xc2   : > { %v4329_v41 = vmul.f32 0.0078125, %v521_v39 }
  0xc3   : > { %v630_v55 = vmul.f32 %v4335_v44, %v4335_v44 }
  0xc4   : > { %v629_v42 = vmul.f32 %v4329_v41, %v4329_v41 }
  0xc5   : > { %v4333_v43 = vpop.eup %3679 }
  0xc6   : > { %v4337_v45 = vpop.eup %3681  ;;  %v711_v46 = vmul.f32 %v4333_v43, %v4326_v34  ;;  %v645_v47 = vsub.f32 %v613_v40, %v629_v42  ;;  %vm717_vm7 = vweird.f32 %v4333_v43  ;;  %v661_v42 = vsub.f32 %v4189_v6, %v4329_v41 }
  0xc7   : > { %v3684_v48 = vpop.eup %3683  ;;  %v701_v49 = vmul.f32 %v4337_v45, %v675_v35  ;;  %vm707_vm2 = vweird.f32 %v4337_v45  ;;  %vm4404_vm8 = vmor %vm716_vm6, %vm717_vm7 }
  0xc8   : > { %v691_v50 = vmul.f32 %v3684_v48, %v674_v36  ;;  %v4342_v51 = vadd.f32 1e-05, %v645_v47  ;;  %v525_v52 = vpop.xlane.xlu1 %524  ;;  %v573_v53 = vpop.xlane.xlu2 %572  ;;  %v712_v58 = vmul.f32 %v4333_v43, %v711_v46  ;;  %vm697_vm0 = vweird.f32 %v3684_v48  ;;  %v4369_v36 = vld [vmem:[%s6724_s1] ss:$0 sm:$0xff]  ;;  %vm4376_vm5 = vmor %vm706_vm3, %vm707_vm2 }
  0xc9   : > { %v702_v54 = vmul.f32 %v4337_v45, %v701_v49  ;;  %v4347_v56 = vmul.f32 0.0078125, %v525_v52  ;;  %v571_v57 = vpop.xlane.xlu0 %570  ;;  %v615_v4 = vmul.f32 0.0078125, %v573_v53  ;;  %vm698_vm4 = vmor %vm696_vm1, %vm697_vm0  ;;  %v4385_v46 = vld [vmem:[%s6725_s2] ss:$0 sm:$0xff]  ;;  %v659_v49 = vsub.f32 %v4174_v1, %v4307_v62 }
  0xca   : > { %v692_v59 = vmul.f32 %v3684_v48, %v691_v50  ;;  %3685 = vrsqrt.f32 %v4342_v51  ;;  %v614_v3 = vmul.f32 0.0078125, %v571_v57  ;;  %v713_v16 = vmul.f32 0.5, %v712_v58 }
  0xcb   : > { %v703_v60 = vmul.f32 0.5, %v702_v54  ;;  %v631_v63 = vmul.f32 %v4347_v56, %v4347_v56  ;;  %vm726_vm9 = vweird.f32 %v4342_v51 }
  0xcc   : > { %v693_v5 = vmul.f32 0.5, %v692_v59  ;;  %v646_v11 = vsub.f32 %v614_v3, %v630_v55  ;;  %v714_v37 = vsub.f32 1.5, %v713_v16 }
  0xcd   : > { %v704_v10 = vsub.f32 1.5, %v703_v60  ;;  %v647_v19 = vsub.f32 %v615_v4, %v631_v63 }
  0xce   : > { %v694_v13 = vsub.f32 1.5, %v693_v5  ;;  %v4353_v17 = vadd.f32 1e-05, %v646_v11  ;;  %v715_v54 = vmul.f32 %v4333_v43, %v714_v37  ;;  %v660_v11 = vsub.f32 %v4171_v0, %v4305_v61 }
  0xcf   : > { %v705_v31 = vmul.f32 %v4337_v45, %v704_v10  ;;  %v4372_v39 = vadd.f32 1e-05, %v647_v19 }
  0xd0   : > { %v4355_v22 = vpop.eup %3685  ;;  %v695_v23 = vmul.f32 %v3684_v48, %v694_v13  ;;  %3687 = vrsqrt.f32 %v4353_v17  ;;  %v575_v29 = vpop.xlane.xlu1 %574  ;;  %v719_v60 = vsel %vm4404_vm8, %v4333_v43, %v715_v54  ;;  %vm736_vm12 = vweird.f32 %v4353_v17 }
  0xd1   : > { %v721_v25 = vmul.f32 %v4355_v22, %v4342_v51  ;;  %v527_v28 = vpop.xlane.xlu0 %526  ;;  %v616_v7 = vmul.f32 0.0078125, %v575_v29  ;;  %v529_v47 = vpop.xlane.xlu2 %528  ;;  %3689 = vrsqrt.f32 %v4372_v39  ;;  %vm727_vm10 = vweird.f32 %v4355_v22 }
  0xd2   : > { %v4364_v33 = vmul.f32 0.0078125, %v527_v28  ;;  %v699_v40 = vsel %vm698_vm4, %v3684_v48, %v695_v23  ;;  %v709_v48 = vsel %vm4376_vm5, %v4337_v45, %v705_v31  ;;  %v4400_v45 = vmul.f32 0.0078125, %v529_v47  ;;  %vm4428_vm11 = vmor %vm726_vm9, %vm727_vm10 }
  0xd3   : > { %v722_v38 = vmul.f32 %v4355_v22, %v721_v25  ;;  %v850_v35 = vmul.f32 %v699_v40, %v658_v32  ;;  %v851_v58 = vmul.f32 %v709_v48, %v659_v49  ;;  %v852_v19 = vmul.f32 %v719_v60, %v660_v11 }
  0xd4   : > { %v632_v2 = vmul.f32 %v4364_v33, %v4364_v33  ;;  %v633_v3 = vmul.f32 %v4400_v45, %v4400_v45  ;;  %vm746_vm15 = vweird.f32 %v4372_v39 }
  0xd5   : > { %v869_v50 = vmul.f32 %v4369_v36, %v850_v35  ;;  %v723_v53 = vmul.f32 0.5, %v722_v38  ;;  %v870_v5 = vmul.f32 %v4369_v36, %v851_v58  ;;  %v871_v31 = vmul.f32 %v4369_v36, %v852_v19 }
  0xd6   : > { %v4394_v52 = vpop.eup %3687  ;;  %v648_v55 = vsub.f32 %v616_v7, %v632_v2 }
  0xd7   : > { %v888_v57 = vadd.f32 %v4385_v46, %v869_v50  ;;  %v731_v1 = vmul.f32 %v4394_v52, %v4353_v17  ;;  %v724_v59 = vsub.f32 1.5, %v723_v53  ;;  %v4416_v10 = vpop.eup %3689  ;;  %v889_v25 = vadd.f32 %v4385_v46, %v870_v5 }
  0xd8   : > { %v4411_v63 = vadd.f32 1e-05, %v648_v55  ;;  %v531_v16 = vpop.xlane.xlu1 %530  ;;  %v741_v61 = vmul.f32 %v4416_v10, %v4372_v39  ;;  %vm737_vm13 = vweird.f32 %v4394_v52  ;;  %v890_v49 = vadd.f32 %v4385_v46, %v871_v31 }
  0xd9   : > { %v577_v62 = vpop.xlane.xlu0 %576  ;;  %940 = vmatmul.f32.vlgmr.msra.gmra.mxu0 %v888_v57  ;;  %1729 = vmatmul.f32.vlgmr.msra.gmra.mxu1 %v888_v57  ;;  %v732_v13 = vmul.f32 %v4394_v52, %v731_v1  ;;  %v725_v43 = vmul.f32 %v4355_v22, %v724_v59  ;;  %v4426_v28 = vmul.f32 0.0078125, %v531_v16  ;;  %v579_v51 = vpop.xlane.xlu2 %578  ;;  %vm4456_vm14 = vmor %vm736_vm12, %vm737_vm13  ;;  %vm747_vm0 = vweird.f32 %v4416_v10 }
  0xda   : > { %v617_v4 = vmul.f32 0.0078125, %v577_v62  ;;  %3691 = vrsqrt.f32 %v4411_v63  ;;  %v618_v40 = vmul.f32 0.0078125, %v579_v51  ;;  %v742_v7 = vmul.f32 %v4416_v10, %v741_v61  ;;  %vm4482_vm1 = vmor %vm746_vm15, %vm747_vm0 }
  0xdb   : > { %v733_v0 = vmul.f32 0.5, %v732_v13  ;;  %v729_v32 = vsel %vm4428_vm11, %v4355_v22, %v725_v43  ;;  %v634_v38 = vmul.f32 %v4426_v28, %v4426_v28  ;;  %vm756_vm2 = vweird.f32 %v4411_v63 }
  0xdc   : > { %v649_v23 = vsub.f32 %v617_v4, %v633_v3  ;;  %v853_v48 = vmul.f32 %v729_v32, %v661_v42  ;;  %v743_v53 = vmul.f32 0.5, %v742_v7  ;;  %v662_v4 = vsub.f32 %v4194_v8, %v4335_v44 }
  0xdd   : > { %v734_v2 = vsub.f32 1.5, %v733_v0  ;;  %v650_v22 = vsub.f32 %v618_v40, %v634_v38  ;;  %v663_v44 = vsub.f32 %v4199_v9, %v4347_v56 }
  0xde   : > { %v4438_v37 = vadd.f32 1e-05, %v649_v23  ;;  %v872_v17 = vmul.f32 %v4369_v36, %v853_v48  ;;  %v744_v62 = vsub.f32 1.5, %v743_v53 }
  0xdf   : > { %v735_v54 = vmul.f32 %v4394_v52, %v734_v2  ;;  %v4461_v57 = vadd.f32 1e-05, %v650_v22 }
  0xe0   : > { %v4445_v47 = vpop.eup %3691  ;;  %3693 = vrsqrt.f32 %v4438_v37  ;;  %v581_v41 = vpop.xlane.xlu1 %580  ;;  %v891_v5 = vadd.f32 %v4385_v46, %v872_v17  ;;  %v745_v23 = vmul.f32 %v4416_v10, %v744_v62  ;;  %vm766_vm5 = vweird.f32 %v4438_v37 }
  0xe1   : > { %943 = vmatmul.f32.gmra.mxu0 %v889_v25  ;;  %1732 = vmatmul.f32.gmra.mxu1 %v889_v25  ;;  %v533_v35 = vpop.xlane.xlu0 %532  ;;  %v751_v6 = vmul.f32 %v4445_v47, %v4411_v63  ;;  %v619_v1 = vmul.f32 0.0078125, %v581_v41  ;;  %v535_v59 = vpop.xlane.xlu2 %534  ;;  %v739_v60 = vsel %vm4456_vm14, %v4394_v52, %v735_v54  ;;  %3695 = vrsqrt.f32 %v4461_v57 }
  0xe2   : > { %v4451_v50 = vmul.f32 0.0078125, %v533_v35  ;;  %v4477_v13 = vmul.f32 0.0078125, %v535_v59  ;;  %v854_v16 = vmul.f32 %v739_v60, %v662_v4  ;;  %v749_v32 = vsel %vm4482_vm1, %v4416_v10, %v745_v23 }
  0xe3   : > { %v752_v34 = vmul.f32 %v4445_v47, %v751_v6  ;;  %vm757_vm3 = vweird.f32 %v4445_v47  ;;  %v855_v2 = vmul.f32 %v749_v32, %v663_v44  ;;  %vm776_vm8 = vweird.f32 %v4461_v57 }
  0xe4   : > { %v635_v58 = vmul.f32 %v4451_v50, %v4451_v50  ;;  %v636_v25 = vmul.f32 %v4477_v13, %v4477_v13  ;;  %v873_v0 = vmul.f32 %v4369_v36, %v854_v16  ;;  %vm4508_vm4 = vmor %vm756_vm2, %vm757_vm3 }
  0xe5   : > { %v753_v43 = vmul.f32 0.5, %v752_v34  ;;  %v874_v6 = vmul.f32 %v4369_v36, %v855_v2 }
  0xe6   : > { %v4469_v3 = vpop.eup %3693  ;;  %v651_v11 = vsub.f32 %v619_v1, %v635_v58  ;;  %v892_v40 = vadd.f32 %v4385_v46, %v873_v0 }
  0xe7   : > { %v761_v52 = vmul.f32 %v4469_v3, %v4438_v37  ;;  %v754_v51 = vsub.f32 1.5, %v753_v43  ;;  %v4497_v38 = vpop.eup %3695  ;;  %vm767_vm6 = vweird.f32 %v4469_v3 }
  0xe8   : > { %v4488_v39 = vadd.f32 1e-05, %v651_v11  ;;  %v537_v61 = vpop.xlane.xlu1 %536  ;;  %v771_v35 = vmul.f32 %v4497_v38, %v4461_v57  ;;  %vm4534_vm7 = vmor %vm766_vm5, %vm767_vm6  ;;  %vm777_vm9 = vweird.f32 %v4497_v38  ;;  %v666_v57 = vsub.f32 %v4217_v15, %v4426_v28 }
  0xe9   : > { %946 = vmatmul.f32.gmra.mxu0 %v890_v49  ;;  %1735 = vmatmul.f32.gmra.mxu1 %v890_v49  ;;  %v583_v19 = vpop.xlane.xlu0 %582  ;;  %v762_v31 = vmul.f32 %v4469_v3, %v761_v52  ;;  %v4501_v9 = vmul.f32 0.0078125, %v537_v61  ;;  %v585_v42 = vpop.xlane.xlu2 %584  ;;  %v755_v10 = vmul.f32 %v4445_v47, %v754_v51  ;;  %v664_v49 = vsub.f32 %v4207_v12, %v4364_v33  ;;  %vm4560_vm10 = vmor %vm776_vm8, %vm777_vm9 }
  0xea   : > { %v620_v29 = vmul.f32 0.0078125, %v583_v19  ;;  %3697 = vrsqrt.f32 %v4488_v39  ;;  %v621_v22 = vmul.f32 0.0078125, %v585_v42  ;;  %v772_v54 = vmul.f32 %v4497_v38, %v771_v35 }
  0xeb   : > { %v763_v7 = vmul.f32 0.5, %v762_v31  ;;  %v637_v63 = vmul.f32 %v4501_v9, %v4501_v9  ;;  %v759_v17 = vsel %vm4508_vm4, %v4445_v47, %v755_v10  ;;  %v893_v12 = vadd.f32 %v4385_v46, %v874_v6 }
  0xec   : > { %v652_v56 = vsub.f32 %v620_v29, %v636_v25  ;;  %v856_v62 = vmul.f32 %v759_v17, %v664_v49  ;;  %v773_v34 = vmul.f32 0.5, %v772_v54  ;;  %vm786_vm11 = vweird.f32 %v4488_v39 }
  0xed   : > { %v764_v41 = vsub.f32 1.5, %v763_v7  ;;  %v653_v1 = vsub.f32 %v621_v22, %v637_v63  ;;  %v667_v17 = vsub.f32 %v4225_v18, %v4451_v50 }
  0xee   : > { %v4516_v53 = vadd.f32 1e-05, %v652_v56  ;;  %v875_v43 = vmul.f32 %v4369_v36, %v856_v62  ;;  %v774_v52 = vsub.f32 1.5, %v773_v34 }
  0xef   : > { %v765_v47 = vmul.f32 %v4469_v3, %v764_v41  ;;  %v4538_v37 = vadd.f32 1e-05, %v653_v1 }
  0xf0   : > { %v4523_v58 = vpop.eup %3697  ;;  %3699 = vrsqrt.f32 %v4516_v53  ;;  %v587_v60 = vpop.xlane.xlu1 %586  ;;  %vm796_vm14 = vweird.f32 %v4516_v53 }
  0xf1   : > { %949 = vmatmul.f32.gmra.mxu0 %v891_v5  ;;  %1738 = vmatmul.f32.gmra.mxu1 %v891_v5  ;;  %v539_v55 = vpop.xlane.xlu0 %538  ;;  %v781_v59 = vmul.f32 %v4523_v58, %v4488_v39  ;;  %v665_v5 = vsub.f32 %v4212_v14, %v4400_v45  ;;  %v622_v16 = vmul.f32 0.0078125, %v587_v60  ;;  %v541_v23 = vpop.xlane.xlu2 %540  ;;  %v769_v8 = vsel %vm4534_vm7, %v4469_v3, %v765_v47 }
  0xf2   : > { %v4529_v33 = vmul.f32 0.0078125, %v539_v55  ;;  %3701 = vrsqrt.f32 %v4538_v37  ;;  %v894_v45 = vadd.f32 %v4385_v46, %v875_v43  ;;  %v4555_v25 = vmul.f32 0.0078125, %v541_v23 }
  0xf3   : > { %v782_v19 = vmul.f32 %v4523_v58, %v781_v59  ;;  %v857_v29 = vmul.f32 %v769_v8, %v665_v5  ;;  %v775_v3 = vmul.f32 %v4497_v38, %v774_v52  ;;  %vm787_vm12 = vweird.f32 %v4523_v58 }
  0xf4   : > { %v638_v11 = vmul.f32 %v4529_v33, %v4529_v33  ;;  %v639_v56 = vmul.f32 %v4555_v25, %v4555_v25  ;;  %vm4586_vm13 = vmor %vm786_vm11, %vm787_vm12  ;;  %vm806_vm1 = vweird.f32 %v4538_v37 }
  0xf5   : > { %v783_v0 = vmul.f32 0.5, %v782_v19  ;;  %v876_v42 = vmul.f32 %v4369_v36, %v857_v29  ;;  %v779_v48 = vsel %vm4560_vm10, %v4497_v38, %v775_v3 }
  0xf6   : > { %v4549_v44 = vpop.eup %3699  ;;  %v654_v14 = vsub.f32 %v622_v16, %v638_v11  ;;  %v858_v49 = vmul.f32 %v779_v48, %v666_v57 }
  0xf7   : > { %v791_v61 = vmul.f32 %v4549_v44, %v4516_v53  ;;  %v784_v35 = vsub.f32 1.5, %v783_v0  ;;  %v895_v63 = vadd.f32 %v4385_v46, %v876_v42  ;;  %vm797_vm15 = vweird.f32 %v4549_v44 }
  0xf8   : > { %v4566_v32 = vadd.f32 1e-05, %v654_v14  ;;  %v543_v2 = vpop.xlane.xlu1 %542  ;;  %v4571_v7 = vpop.eup %3701  ;;  %vm4612_vm0 = vmor %vm796_vm14, %vm797_vm15  ;;  %v668_v53 = vsub.f32 %v4230_v20, %v4477_v13 }
  0xf9   : > { %952 = vmatmul.f32.gmra.mxu0 %v892_v40  ;;  %1741 = vmatmul.f32.gmra.mxu1 %v892_v40  ;;  %v589_v51 = vpop.xlane.xlu0 %588  ;;  %v792_v10 = vmul.f32 %v4549_v44, %v791_v61  ;;  %v4579_v15 = vmul.f32 0.0078125, %v543_v2  ;;  %v591_v22 = vpop.xlane.xlu2 %590  ;;  %v801_v41 = vmul.f32 %v4571_v7, %v4538_v37  ;;  %v785_v54 = vmul.f32 %v4523_v58, %v784_v35 }
  0xfa   : > { %v623_v40 = vmul.f32 0.0078125, %v589_v51  ;;  %3703 = vrsqrt.f32 %v4566_v32  ;;  %v624_v55 = vmul.f32 0.0078125, %v591_v22  ;;  %vm807_vm2 = vweird.f32 %v4571_v7 }
  0xfb   : > { %v793_v6 = vmul.f32 0.5, %v792_v10  ;;  %v640_v39 = vmul.f32 %v4579_v15, %v4579_v15  ;;  %v802_v34 = vmul.f32 %v4571_v7, %v801_v41  ;;  %v789_v60 = vsel %vm4586_vm13, %v4523_v58, %v785_v54  ;;  %vm808_vm3 = vmor %vm806_vm1, %vm807_vm2 }
  0xfc   : > { %v655_v28 = vsub.f32 %v623_v40, %v639_v56  ;;  %v859_v5 = vmul.f32 %v789_v60, %v667_v17  ;;  %vm816_vm4 = vweird.f32 %v4566_v32 }
  0xfd   : > { %v794_v62 = vsub.f32 1.5, %v793_v6  ;;  %v656_v4 = vsub.f32 %v624_v55, %v640_v39  ;;  %v803_v11 = vmul.f32 0.5, %v802_v34 }
  0xfe   : > { %v4594_v1 = vadd.f32 1e-05, %v655_v28  ;;  %v878_v14 = vmul.f32 %v4369_v36, %v859_v5 }
  0xff   : > { %v795_v58 = vmul.f32 %v4549_v44, %v794_v62  ;;  %v4618_v19 = vadd.f32 1e-05, %v656_v4 }
 0x100   : > { %v4601_v47 = vpop.eup %3703  ;;  %3705 = vrsqrt.f32 %v4594_v1  ;;  %v593_v43 = vpop.xlane.xlu1 %592  ;;  %v897_v13 = vadd.f32 %v4385_v46, %v878_v14  ;;  %vm826_vm7 = vweird.f32 %v4594_v1 }
 0x101   : > { %955 = vmatmul.f32.gmra.mxu0 %v893_v12  ;;  %1744 = vmatmul.f32.gmra.mxu1 %v893_v12  ;;  %v877_v12 = vmul.f32 %v4369_v36, %v858_v49  ;;  %v545_v59 = vpop.xlane.xlu0 %544  ;;  %v811_v16 = vmul.f32 %v4601_v47, %v4566_v32  ;;  %v625_v8 = vmul.f32 0.0078125, %v593_v43  ;;  %v799_v0 = vsel %vm4612_vm0, %v4549_v44, %v795_v58 }
 0x102   : > { %v4607_v50 = vmul.f32 0.0078125, %v545_v59  ;;  %3707 = vrsqrt.f32 %v4618_v19  ;;  %v860_v51 = vmul.f32 %v799_v0, %v668_v53  ;;  %v669_v44 = vsub.f32 %v4235_v21, %v4501_v9 }
 0x103   : > { %v896_v18 = vadd.f32 %v4385_v46, %v877_v12  ;;  %v812_v29 = vmul.f32 %v4601_v47, %v811_v16  ;;  %vm817_vm5 = vweird.f32 %v4601_v47  ;;  %v670_v9 = vsub.f32 %v4243_v24, %v4529_v33 }
 0x104   : > { %v641_v23 = vmul.f32 %v4607_v50, %v4607_v50  ;;  %v879_v56 = vmul.f32 %v4369_v36, %v860_v51  ;;  %vm818_vm6 = vmor %vm816_vm4, %vm817_vm5  ;;  %v671_v24 = vsub.f32 %v4248_v26, %v4555_v25  ;;  %vm836_vm10 = vweird.f32 %v4618_v19 }
 0x105   : > { %v813_v3 = vmul.f32 0.5, %v812_v29  ;;  %v673_v16 = vsub.f32 %v4261_v30, %v4607_v50 }
 0x106   : > { %v3706_v61 = vpop.eup %3705  ;;  %v657_v20 = vsub.f32 %v625_v8, %v641_v23  ;;  %v898_v10 = vadd.f32 %v4385_v46, %v879_v56 }
 0x107   : > { %v821_v31 = vmul.f32 %v3706_v61, %v4594_v1  ;;  %v814_v40 = vsub.f32 1.5, %v813_v3  ;;  %vm827_vm8 = vweird.f32 %v3706_v61 }
 0x108   : > { %v689_v37 = vadd.f32 1e-05, %v657_v20  ;;  %v3708_v35 = vpop.eup %3707  ;;  %vm828_vm9 = vmor %vm826_vm7, %vm827_vm8 }
 0x109   : > { %958 = vmatmul.f32.gmra.mxu0 %v894_v45  ;;  %1747 = vmatmul.f32.gmra.mxu1 %v894_v45  ;;  %v804_v45 = vsub.f32 1.5, %v803_v11  ;;  %v822_v42 = vmul.f32 %v3706_v61, %v821_v31  ;;  %v815_v21 = vmul.f32 %v4601_v47, %v814_v40  ;;  %vm837_vm11 = vweird.f32 %v3708_v35 }
 0x10a   : > { %3709 = vrsqrt.f32 %v689_v37  ;;  %vm838_vm12 = vmor %vm836_vm10, %vm837_vm11  ;;  %vm846_vm13 = vweird.f32 %v689_v37 }
 0x10b   : > { %v805_v57 = vmul.f32 %v4571_v7, %v804_v45  ;;  %v823_v28 = vmul.f32 0.5, %v822_v42  ;;  %v819_v49 = vsel %vm818_vm6, %v4601_v47, %v815_v21  ;;  %v672_v47 = vsub.f32 %v4253_v27, %v4579_v15 }
 0x10c   : > { %v862_v54 = vmul.f32 %v819_v49, %v670_v9 }
 0x10d   : > { %v809_v2 = vsel %vm808_vm3, %v4571_v7, %v805_v57  ;;  %v824_v32 = vsub.f32 1.5, %v823_v28 }
 0x10e   : > { %v861_v48 = vmul.f32 %v809_v2, %v669_v44  ;;  %v881_v33 = vmul.f32 %v4369_v36, %v862_v54 }
 0x10f   : > { %v825_v55 = vmul.f32 %v3706_v61, %v824_v32 }
 0x110   : > { %v880_v7 = vmul.f32 %v4369_v36, %v861_v48  ;;  %v3710_v6 = vpop.eup %3709  ;;  %v900_v1 = vadd.f32 %v4385_v46, %v881_v33 }
 0x111   : > { %961 = vmatmul.f32.gmra.mxu0 %v895_v63  ;;  %1750 = vmatmul.f32.gmra.mxu1 %v895_v63  ;;  %v831_v63 = vmul.f32 %v3708_v35, %v4618_v19  ;;  %v841_v39 = vmul.f32 %v3710_v6, %v689_v37  ;;  %v829_v62 = vsel %vm828_vm9, %v3706_v61, %v825_v55  ;;  %vm847_vm14 = vweird.f32 %v3710_v6  ;;  %v4666_v19 = vld [vmem:[%s6729_s6] ss:$0 sm:$0xff] }
 0x112   : > { %v899_v41 = vadd.f32 %v4385_v46, %v880_v7  ;;  %v863_v34 = vmul.f32 %v829_v62, %v671_v24  ;;  %vm848_vm15 = vmor %vm846_vm13, %vm847_vm14 }
 0x113   : > { %v832_v22 = vmul.f32 %v3708_v35, %v831_v63  ;;  %v842_v12 = vmul.f32 %v3710_v6, %v841_v39 }
 0x114   : > { %v882_v26 = vmul.f32 %v4369_v36, %v863_v34 }
 0x115   : > { %v833_v38 = vmul.f32 0.5, %v832_v22  ;;  %v843_v59 = vmul.f32 0.5, %v842_v12 }
 0x117   : > { %v834_v17 = vsub.f32 1.5, %v833_v38  ;;  %v844_v25 = vsub.f32 1.5, %v843_v59 }
 0x119   : > { %964 = vmatmul.f32.gmra.mxu0 %v896_v18  ;;  %1753 = vmatmul.f32.gmra.mxu1 %v896_v18  ;;  %v835_v60 = vmul.f32 %v3708_v35, %v834_v17  ;;  %v901_v18 = vadd.f32 %v4385_v46, %v882_v26  ;;  %v845_v11 = vmul.f32 %v3710_v6, %v844_v25 }
 0x11b   : > { %v839_v4 = vsel %vm838_vm12, %v3708_v35, %v835_v60  ;;  %v849_v58 = vsel %vm848_vm15, %v3710_v6, %v845_v11 }
 0x11c   : > { %v864_v5 = vmul.f32 %v839_v4, %v672_v47  ;;  %v865_v15 = vmul.f32 %v849_v58, %v673_v16 }
 0x11e   : > { %v883_v43 = vmul.f32 %v4369_v36, %v864_v5  ;;  %v884_v52 = vmul.f32 %v4369_v36, %v865_v15 }
 0x120   : > { %v902_v27 = vadd.f32 %v4385_v46, %v883_v43  ;;  %v903_v53 = vadd.f32 %v4385_v46, %v884_v52 }
 0x121   : > { %967 = vmatmul.f32.gmra.mxu0 %v897_v13  ;;  %1756 = vmatmul.f32.gmra.mxu1 %v897_v13 }
 0x129   : > { %970 = vmatmul.f32.gmra.mxu0 %v898_v10  ;;  %1759 = vmatmul.f32.gmra.mxu1 %v898_v10 }
 0x131   : > { %973 = vmatmul.f32.gmra.mxu0 %v899_v41  ;;  %1762 = vmatmul.f32.gmra.mxu1 %v899_v41 }
 0x139   : > { %976 = vmatmul.f32.gmra.mxu0 %v900_v1  ;;  %1765 = vmatmul.f32.gmra.mxu1 %v900_v1 }
 0x141   : > { %979 = vmatmul.f32.gmra.mxu0 %v901_v18  ;;  %1768 = vmatmul.f32.gmra.mxu1 %v901_v18 }
 0x149   : > { %982 = vmatmul.f32.gmra.mxu0 %v902_v27  ;;  %1771 = vmatmul.f32.gmra.mxu1 %v902_v27 }
 0x151   : > { %985 = vmatmul.f32.gmra.mxu0 %v903_v53  ;;  %1774 = vmatmul.f32.gmra.mxu1 %v903_v53 }
 0x156   : > { %v1730_v30 = vpop.f32.mrf.mxu1 }
 0x157   : > { %v4669_v50 = vadd.f32 %v4666_v19, %v1730_v30 }
 0x159   : > { %v4672_v23 = vmul.f32 0.70710677, %v4669_v50 }
 0x15b   : > { %v1810_v8 = vmul.f32 %v4672_v23, %v4672_v23 }
 0x15d   : > { %v4676_v36 = vmin.f32 %v1810_v8, 16.0 }
 0x15e   : > { %v1733_v46 = vpop.f32.mrf.mxu1 }
 0x15f   : > { %v1823_v14 = vmul.f32 3.8918573e-05, %v4676_v36  ;;  %v4680_v45 = vadd.f32 %v4666_v19, %v1733_v46  ;;  %v1812_v21 = vmul.f32 2.1237322e-06, %v4676_v36 }
 0x161   : > { %v1824_v29 = vadd.f32 0.001143296, %v1823_v14  ;;  %v4683_v0 = vmul.f32 0.70710677, %v4680_v45  ;;  %v1813_v49 = vadd.f32 0.00028619796, %v1812_v21 }
 0x163   : > { %v1825_v61 = vmul.f32 %v1824_v29, %v4676_v36  ;;  %v1850_v20 = vmul.f32 %v4683_v0, %v4683_v0  ;;  %v1814_v39 = vmul.f32 %v1813_v49, %v4676_v36 }
 0x165   : > { %v1826_v51 = vadd.f32 0.014752088, %v1825_v61  ;;  %v4688_v3 = vmin.f32 %v1850_v20, 16.0  ;;  %v1815_v17 = vadd.f32 0.0036580483, %v1814_v39 }
 0x166   : > { %v1736_v13 = vpop.f32.mrf.mxu1 }
 0x167   : > { %v4691_v31 = vadd.f32 %v4666_v19, %v1736_v13  ;;  %v1827_v57 = vmul.f32 %v1826_v51, %v4676_v36  ;;  %v1863_v44 = vmul.f32 3.8918573e-05, %v4688_v3  ;;  %v1852_v1 = vmul.f32 2.1237322e-06, %v4688_v3 }
 0x168   : > { %v1816_v59 = vmul.f32 %v1815_v17, %v4676_v36 }
 0x169   : > { %v4696_v37 = vmul.f32 0.70710677, %v4691_v31  ;;  %v1828_v56 = vadd.f32 0.112945676, %v1827_v57  ;;  %v1864_v40 = vadd.f32 0.001143296, %v1863_v44 }
 0x16a   : > { %v1853_v4 = vadd.f32 0.00028619796, %v1852_v1  ;;  %v1817_v5 = vadd.f32 0.05243302, %v1816_v59 }
 0x16b   : > { %v1890_v42 = vmul.f32 %v4696_v37, %v4696_v37  ;;  %v1829_v2 = vmul.f32 %v1828_v56, %v4676_v36  ;;  %v1865_v35 = vmul.f32 %v1864_v40, %v4688_v3 }
 0x16c   : > { %v1854_v27 = vmul.f32 %v1853_v4, %v4688_v3  ;;  %v1818_v52 = vmul.f32 %v1817_v5, %v4676_v36 }
 0x16d   : > { %v4702_v10 = vmin.f32 %v1890_v42, 16.0  ;;  %v1830_v48 = vadd.f32 0.4994258, %v1829_v2  ;;  %v1866_v28 = vadd.f32 0.014752088, %v1865_v35 }
 0x16e   : > { %v1739_v63 = vpop.f32.mrf.mxu1  ;;  %v1855_v14 = vadd.f32 0.0036580483, %v1854_v27  ;;  %v1819_v29 = vadd.f32 0.18741608, %v1818_v52 }
 0x16f   : > { %v1903_v9 = vmul.f32 3.8918573e-05, %v4702_v10  ;;  %v4707_v7 = vadd.f32 %v4666_v19, %v1739_v63  ;;  %v1831_v32 = vmul.f32 %v1830_v48, %v4676_v36  ;;  %v1867_v22 = vmul.f32 %v1866_v28, %v4688_v3 }
 0x170   : > { %v1892_v13 = vmul.f32 2.1237322e-06, %v4702_v10  ;;  %v1856_v56 = vmul.f32 %v1855_v14, %v4688_v3  ;;  %v1820_v40 = vmul.f32 %v1819_v29, %v4676_v36 }
 0x171   : > { %v1904_v6 = vadd.f32 0.001143296, %v1903_v9  ;;  %v4712_v41 = vmul.f32 0.70710677, %v4707_v7  ;;  %v4714_v54 = vadd.f32 1.0, %v1831_v32 }
 0x172   : > { %v1868_v38 = vadd.f32 0.112945676, %v1867_v22  ;;  %v1893_v28 = vadd.f32 0.00028619796, %v1892_v13  ;;  %v1857_v32 = vadd.f32 0.05243302, %v1856_v56 }
 0x173   : > { %v1905_v55 = vmul.f32 %v1904_v6, %v4702_v10  ;;  %v1930_v24 = vmul.f32 %v4712_v41, %v4712_v41  ;;  %3711 = vrcp.f32 %v4714_v54  ;;  %v1844_v48 = vand.u32 2147483648, %v4714_v54 }
 0x174   : > { %v1869_v33 = vmul.f32 %v1868_v38, %v4688_v3  ;;  %vm1838_vm1 = vweird.f32 %v4714_v54  ;;  %v1842_v9 = vand.u32 2147483647, %v4714_v54  ;;  %v1821_v22 = vadd.f32 1.1283791, %v1820_v40 }
 0x175   : > { %v1906_v12 = vadd.f32 0.014752088, %v1905_v55  ;;  %v4722_v62 = vmin.f32 %v1930_v24, 16.0  ;;  %v1845_v39 = vor.u32 1.1754944e-38, %v1844_v48  ;;  %v1894_v55 = vmul.f32 %v1893_v28, %v4702_v10 }
 0x176   : > { %v1870_v34 = vadd.f32 0.4994258, %v1869_v33  ;;  %v1742_v26 = vpop.f32.mrf.mxu1  ;;  %vm1843_vm3 = vcmp.eq.f32.partialorder %v1842_v9, 8.507059e+37  ;;  %v1822_v1 = vmul.f32 %v1821_v22, %v4672_v23 }
 0x177   : > { %v1907_v47 = vmul.f32 %v1906_v12, %v4702_v10  ;;  %v1943_v25 = vmul.f32 3.8918573e-05, %v4722_v62  ;;  %v4731_v16 = vadd.f32 %v4666_v19, %v1742_v26  ;;  %v1858_v12 = vmul.f32 %v1857_v32, %v4688_v3 }
 0x178   : > { %v1871_v18 = vmul.f32 %v1870_v34, %v4688_v3  ;;  %v1932_v27 = vmul.f32 2.1237322e-06, %v4722_v62 }
 0x179   : > { %v3712_v60 = vpop.eup %3711  ;;  %v1908_v43 = vadd.f32 0.112945676, %v1907_v47  ;;  %v1944_v58 = vadd.f32 0.001143296, %v1943_v25  ;;  %v4738_v30 = vmul.f32 0.70710677, %v4731_v16 }
 0x17a   : > { %v1834_v11 = vmul.f32 %v3712_v60, %v4714_v54  ;;  %v4734_v15 = vadd.f32 1.0, %v1871_v18  ;;  %vm1839_vm0 = vweird.f32 %v3712_v60  ;;  %v1859_v18 = vadd.f32 0.18741608, %v1858_v12 }
 0x17b   : > { %v1909_v8 = vmul.f32 %v1908_v43, %v4702_v10  ;;  %v1945_v46 = vmul.f32 %v1944_v58, %v4722_v62  ;;  %v1970_v20 = vmul.f32 %v4738_v30, %v4738_v30  ;;  %vm1840_vm2 = vmor %vm1838_vm1, %vm1839_vm0  ;;  %v1933_v56 = vadd.f32 0.00028619796, %v1932_v27 }
 0x17c   : > { %v1835_v53 = vsub.f32 1.0, %v1834_v11  ;;  %3713 = vrcp.f32 %v4734_v15  ;;  %v1860_v14 = vmul.f32 %v1859_v18, %v4688_v3  ;;  %vm1878_vm5 = vweird.f32 %v4734_v15 }
 0x17d   : > { %v1910_v51 = vadd.f32 0.4994258, %v1909_v8  ;;  %v1946_v57 = vadd.f32 0.014752088, %v1945_v46  ;;  %v4748_v2 = vmin.f32 %v1970_v20, 16.0  ;;  %v1778_v46 = vmul.f32 0.5, %v4669_v50 }
 0x17e   : > { %v1836_v61 = vmul.f32 %v3712_v60, %v1835_v53  ;;  %v1745_v44 = vpop.f32.mrf.mxu1  ;;  %v1882_v50 = vand.u32 2147483647, %v4734_v15  ;;  %v1861_v28 = vadd.f32 1.1283791, %v1860_v14 }
 0x17f   : > { %v1911_v63 = vmul.f32 %v1910_v51, %v4702_v10  ;;  %v4755_v21 = vadd.f32 %v4666_v19, %v1745_v44  ;;  %v1947_v36 = vmul.f32 %v1946_v57, %v4722_v62  ;;  %v1983_v38 = vmul.f32 3.8918573e-05, %v4748_v2 }
 0x180   : > { %v1837_v42 = vadd.f32 %v3712_v60, %v1836_v61  ;;  %v1884_v51 = vand.u32 2147483648, %v4734_v15  ;;  %vm1883_vm7 = vcmp.eq.f32.partialorder %v1882_v50, 8.507059e+37 }
 0x181   : > { %v4764_v24 = vadd.f32 1.0, %v1911_v63  ;;  %v4767_v33 = vmul.f32 0.70710677, %v4755_v21  ;;  %v1948_v54 = vadd.f32 0.112945676, %v1947_v36 }
 0x182   : > { %v4750_v35 = vpop.eup %3713  ;;  %v1841_v49 = vsel %vm1840_vm2, %v3712_v60, %v1837_v42  ;;  %v1984_v59 = vadd.f32 0.001143296, %v1983_v38  ;;  %v1895_v60 = vadd.f32 0.0036580483, %v1894_v55  ;;  %v1885_v36 = vor.u32 1.1754944e-38, %v1884_v51 }
 0x183   : > { %v1874_v6 = vmul.f32 %v4750_v35, %v4734_v15  ;;  %v1846_v17 = vsel %vm1843_vm3, %v1845_v39, %v1841_v49  ;;  %3715 = vrcp.f32 %v4764_v24  ;;  %v2010_v47 = vmul.f32 %v4767_v33, %v4767_v33 }
 0x184   : > { %v1847_v25 = vmul.f32 %v1846_v17, %v1822_v1  ;;  %v1949_v4 = vmul.f32 %v1948_v54, %v4722_v62  ;;  %v1985_v11 = vmul.f32 %v1984_v59, %v4748_v2  ;;  %v1896_v23 = vmul.f32 %v1895_v60, %v4702_v10 }
 0x185   : > { %v1875_v34 = vsub.f32 1.0, %v1874_v6  ;;  %v4781_v58 = vmin.f32 %v2010_v47, 16.0  ;;  %vm1879_vm4 = vweird.f32 %v4750_v35  ;;  %v1934_v38 = vmul.f32 %v1933_v56, %v4722_v62 }
 0x186   : > { %v1748_v26 = vpop.f32.mrf.mxu1  ;;  %v1950_v52 = vadd.f32 0.4994258, %v1949_v4  ;;  %v3546_v53 = vclamps-f32 %v1847_v25, 1.0  ;;  %v1986_v61 = vadd.f32 0.014752088, %v1985_v11  ;;  %vm4800_vm6 = vmor %vm1878_vm5, %vm1879_vm4  ;;  %v1862_v55 = vmul.f32 %v1861_v28, %v4683_v0 }
 0x187   : > { %v1876_v5 = vmul.f32 %v4750_v35, %v1875_v34  ;;  %v4778_v43 = vadd.f32 %v4666_v19, %v1748_v26  ;;  %v1897_v57 = vadd.f32 0.05243302, %v1896_v23  ;;  %v2023_v44 = vmul.f32 3.8918573e-05, %v4781_v58 }
 0x188   : > { %v2450_v13 = vadd.f32 1.0, %v3546_v53  ;;  %v1951_v40 = vmul.f32 %v1950_v52, %v4722_v62  ;;  %v1987_v9 = vmul.f32 %v1986_v61, %v4748_v2  ;;  %v1935_v60 = vadd.f32 0.0036580483, %v1934_v38 }
 0x189   : > { %v4784_v8 = vpop.eup %3715  ;;  %v1877_v29 = vadd.f32 %v4750_v35, %v1876_v5  ;;  %v4791_v20 = vmul.f32 0.70710677, %v4778_v43  ;;  %v1898_v32 = vmul.f32 %v1897_v57, %v4702_v10  ;;  %v2024_v22 = vadd.f32 0.001143296, %v2023_v44 }
 0x18a   : > { %v1914_v3 = vmul.f32 %v4784_v8, %v4764_v24  ;;  %v4804_v48 = vmul.f32 %v2450_v13, %v1778_v46  ;;  %v4817_v39 = vadd.f32 1.0, %v1951_v40  ;;  %v1988_v54 = vadd.f32 0.112945676, %v1987_v9 }
 0x18b   : > { %v1881_v63 = vsel %vm4800_vm6, %v4750_v35, %v1877_v29  ;;  %v2050_v15 = vmul.f32 %v4791_v20, %v4791_v20  ;;  %v1899_v12 = vadd.f32 0.18741608, %v1898_v32  ;;  %v2025_v1 = vmul.f32 %v2024_v22, %v4781_v58 }
 0x18c   : > { %2484 = vadd.xlane.f32.xlu2 %v4804_v48  ;;  %v2516_v49 = vmul.f32 %v4804_v48, %v4804_v48  ;;  %v1915_v6 = vsub.f32 1.0, %v1914_v3  ;;  %v1886_v35 = vsel %vm1883_vm7, %v1885_v36, %v1881_v63  ;;  %3717 = vrcp.f32 %v4817_v39 }
 0x18d   : > { %v4820_v17 = vmin.f32 %v2050_v15, 16.0  ;;  %v1887_v34 = vmul.f32 %v1886_v35, %v1862_v55  ;;  %v1989_v47 = vmul.f32 %v1988_v54, %v4748_v2  ;;  %v1779_v25 = vmul.f32 0.5, %v4680_v45 }
 0x18e   : > { %2532 = vadd.xlane.f32.xlu0 %v2516_v49  ;;  %v1916_v59 = vmul.f32 %v4784_v8, %v1915_v6  ;;  %v1900_v0 = vmul.f32 %v1899_v12, %v4702_v10  ;;  %v2026_v4 = vadd.f32 0.014752088, %v2025_v1  ;;  %v1751_v18 = vpop.f32.mrf.mxu1  ;;  %vm1919_vm8 = vweird.f32 %v4784_v8 }
 0x18f   : > { %v2063_v26 = vmul.f32 3.8918573e-05, %v4820_v17  ;;  %v1936_v11 = vmul.f32 %v1935_v60, %v4722_v62  ;;  %v3547_v23 = vclamps-f32 %v1887_v34, 1.0  ;;  %vm1918_vm9 = vweird.f32 %v4764_v24 }
 0x190   : > { %v1917_v5 = vadd.f32 %v4784_v8, %v1916_v59  ;;  %v1922_v27 = vand.u32 2147483647, %v4764_v24  ;;  %v1924_v52 = vand.u32 2147483648, %v4764_v24  ;;  %v1972_v53 = vmul.f32 2.1237322e-06, %v4748_v2  ;;  %vm1920_vm10 = vmor %vm1918_vm9, %vm1919_vm8 }
 0x191   : > { %v1990_v10 = vadd.f32 0.4994258, %v1989_v47  ;;  %v2064_v46 = vadd.f32 0.001143296, %v2063_v26  ;;  %v4839_v14 = vadd.f32 %v4666_v19, %v1751_v18  ;;  %v2451_v29 = vadd.f32 1.0, %v3547_v23 }
 0x192   : > { %v4836_v45 = vpop.eup %3717  ;;  %v2027_v61 = vmul.f32 %v2026_v4, %v4781_v58  ;;  %v1901_v13 = vadd.f32 1.1283791, %v1900_v0  ;;  %v1921_v51 = vsel %vm1920_vm10, %v4784_v8, %v1917_v5  ;;  %v1925_v44 = vor.u32 1.1754944e-38, %v1924_v52 }
 0x193   : > { %v4843_v57 = vmul.f32 %v2451_v29, %v1779_v25  ;;  %v1937_v24 = vadd.f32 0.05243302, %v1936_v11  ;;  %v1954_v50 = vmul.f32 %v4836_v45, %v4817_v39  ;;  %v1973_v3 = vadd.f32 0.00028619796, %v1972_v53 }
 0x194   : > { %vm1923_vm11 = vcmp.eq.f32.partialorder %v1922_v27, 8.507059e+37  ;;  %v1991_v56 = vmul.f32 %v1990_v10, %v4748_v2  ;;  %v2065_v40 = vmul.f32 %v2064_v46, %v4820_v17  ;;  %v4850_v42 = vmul.f32 0.70710677, %v4839_v14 }
 0x195   : > { %2486 = vadd.xlane.f32.xlu1 %v4843_v57  ;;  %v1926_v28 = vsel %vm1923_vm11, %v1925_v44, %v1921_v51  ;;  %v2028_v8 = vadd.f32 0.112945676, %v2027_v61  ;;  %v2517_v63 = vmul.f32 %v4843_v57, %v4843_v57  ;;  %v1902_v9 = vmul.f32 %v1901_v13, %v4696_v37 }
 0x196   : > { %v1938_v15 = vmul.f32 %v1937_v24, %v4722_v62  ;;  %v1955_v36 = vsub.f32 1.0, %v1954_v50  ;;  %v1974_v32 = vmul.f32 %v1973_v3, %v4748_v2  ;;  %v4858_v49 = vadd.f32 1.0, %v1991_v56  ;;  %v1754_v55 = vpop.f32.mrf.mxu1 }
 0x197   : > { %2534 = vadd.xlane.f32.xlu2 %v2517_v63  ;;  %v1927_v22 = vmul.f32 %v1926_v28, %v1902_v9  ;;  %v2066_v6 = vadd.f32 0.014752088, %v2065_v40  ;;  %v2090_v38 = vmul.f32 %v4850_v42, %v4850_v42  ;;  %v2029_v35 = vmul.f32 %v2028_v8, %v4781_v58 }
 0x198   : > { %v1939_v54 = vadd.f32 0.18741608, %v1938_v15  ;;  %v1956_v12 = vmul.f32 %v4836_v45, %v1955_v36  ;;  %v1975_v37 = vadd.f32 0.0036580483, %v1974_v32  ;;  %3719 = vrcp.f32 %v4858_v49 }
 0x199   : > { %v2067_v1 = vmul.f32 %v2066_v6, %v4820_v17  ;;  %v4866_v34 = vmin.f32 %v2090_v38, 16.0  ;;  %v3548_v59 = vclamps-f32 %v1927_v22, 1.0  ;;  %v2012_v60 = vmul.f32 2.1237322e-06, %v4781_v58 }
 0x19a   : > { %v2030_v47 = vadd.f32 0.4994258, %v2029_v35  ;;  %v1780_v26 = vmul.f32 0.5, %v4691_v31  ;;  %v4871_v25 = vadd.f32 %v4666_v19, %v1754_v55  ;;  %v1940_v4 = vmul.f32 %v1939_v54, %v4722_v62 }
 0x19b   : > { %v2452_v0 = vadd.f32 1.0, %v3548_v59  ;;  %vm1959_vm12 = vweird.f32 %v4836_v45  ;;  %v1976_v18 = vmul.f32 %v1975_v37, %v4748_v2  ;;  %v1957_v5 = vadd.f32 %v4836_v45, %v1956_v12 }
 0x19c   : > { %v2068_v11 = vadd.f32 0.112945676, %v2067_v1  ;;  %v2103_v23 = vmul.f32 3.8918573e-05, %v4866_v34  ;;  %v1964_v52 = vand.u32 2147483648, %v4817_v39  ;;  %v2031_v53 = vmul.f32 %v2030_v47, %v4781_v58 }
 0x19d   : > { %v4878_v27 = vmul.f32 %v2452_v0, %v1780_v26  ;;  %v2013_v31 = vadd.f32 0.00028619796, %v2012_v60  ;;  %vm1958_vm13 = vweird.f32 %v4817_v39  ;;  %v1962_v62 = vand.u32 2147483647, %v4817_v39 }
 0x19e   : > { %v4882_v10 = vpop.eup %3719  ;;  %v4887_v46 = vmul.f32 0.70710677, %v4871_v25  ;;  %v1941_v29 = vadd.f32 1.1283791, %v1940_v4  ;;  %vm4892_vm14 = vmor %vm1958_vm13, %vm1959_vm12  ;;  %v1757_v51 = vpop.f32.mrf.mxu1  ;;  %v1977_v44 = vadd.f32 0.05243302, %v1976_v18  ;;  %v2069_v24 = vmul.f32 %v2068_v11, %v4820_v17 }
 0x19f   : > { %2488 = vadd.xlane.f32.xlu0 %v4878_v27  ;;  %v2518_v13 = vmul.f32 %v4878_v27, %v4878_v27  ;;  %v1961_v39 = vsel %vm4892_vm14, %v4836_v45, %v1957_v5  ;;  %v2104_v50 = vadd.f32 0.001143296, %v2103_v23  ;;  %v1965_v3 = vor.u32 1.1754944e-38, %v1964_v52 }
 0x1a0   : > { %v1994_v56 = vmul.f32 %v4882_v10, %v4858_v49  ;;  %v2014_v40 = vmul.f32 %v2013_v31, %v4781_v58  ;;  %v4905_v28 = vadd.f32 1.0, %v2031_v53  ;;  %vm1963_vm15 = vcmp.eq.f32.partialorder %v1962_v62, 8.507059e+37 }
 0x1a1   : > { %2536 = vadd.xlane.f32.xlu2 %v2518_v13  ;;  %v2130_v8 = vmul.f32 %v4887_v46, %v4887_v46  ;;  %v4910_v63 = vadd.f32 %v4666_v19, %v1757_v51  ;;  %v1966_v45 = vsel %vm1963_vm15, %v1965_v3, %v1961_v39  ;;  %v1942_v9 = vmul.f32 %v1941_v29, %v4712_v41 }
 0x1a2   : > { %v2070_v15 = vadd.f32 0.4994258, %v2069_v24  ;;  %v2105_v36 = vmul.f32 %v2104_v50, %v4866_v34  ;;  %v1978_v32 = vmul.f32 %v1977_v44, %v4748_v2  ;;  %v1995_v22 = vsub.f32 1.0, %v1994_v56 }
 0x1a3   : > { %v2015_v6 = vadd.f32 0.0036580483, %v2014_v40  ;;  %3721 = vrcp.f32 %v4905_v28  ;;  %v1967_v38 = vmul.f32 %v1966_v45, %v1942_v9  ;;  %v4916_v35 = vmin.f32 %v2130_v8, 16.0 }
 0x1a4   : > { %v4919_v55 = vmul.f32 0.70710677, %v4910_v63  ;;  %v2052_v54 = vmul.f32 2.1237322e-06, %v4820_v17  ;;  %v2071_v12 = vmul.f32 %v2070_v15, %v4820_v17  ;;  %v2106_v41 = vadd.f32 0.014752088, %v2105_v36 }
 0x1a5   : > { %v1979_v37 = vadd.f32 0.18741608, %v1978_v32  ;;  %v1996_v1 = vmul.f32 %v4882_v10, %v1995_v22  ;;  %v2016_v59 = vmul.f32 %v2015_v6, %v4781_v58  ;;  %v2143_v60 = vmul.f32 3.8918573e-05, %v4916_v35 }
 0x1a6   : > { %v2170_v47 = vmul.f32 %v4919_v55, %v4919_v55  ;;  %v3549_v26 = vclamps-f32 %v1967_v38, 1.0  ;;  %v2053_v4 = vadd.f32 0.00028619796, %v2052_v54  ;;  %v1781_v18 = vmul.f32 0.5, %v4707_v7  ;;  %v1760_v22 = vpop.f32.mrf.mxu1 }
 0x1a7   : > { %v4931_v5 = vadd.f32 1.0, %v2071_v12  ;;  %v2107_v11 = vmul.f32 %v2106_v41, %v4866_v34  ;;  %v1980_v52 = vmul.f32 %v1979_v37, %v4748_v2  ;;  %v1997_v31 = vadd.f32 %v4882_v10, %v1996_v1 }
 0x1a8   : > { %v2453_v23 = vadd.f32 1.0, %v3549_v26  ;;  %vm1999_vm0 = vweird.f32 %v4882_v10  ;;  %v2017_v53 = vadd.f32 0.05243302, %v2016_v59  ;;  %v2004_v62 = vand.u32 2147483648, %v4858_v49 }
 0x1a9   : > { %v4928_v0 = vpop.eup %3721  ;;  %v2144_v61 = vadd.f32 0.001143296, %v2143_v60  ;;  %v4940_v13 = vmin.f32 %v2170_v47, 16.0  ;;  %vm1998_vm1 = vweird.f32 %v4858_v49  ;;  %v2002_v7 = vand.u32 2147483647, %v4858_v49 }
 0x1aa   : > { %v2034_v29 = vmul.f32 %v4928_v0, %v4905_v28  ;;  %v2054_v51 = vmul.f32 %v2053_v4, %v4820_v17  ;;  %v4945_v2 = vmul.f32 %v2453_v23, %v1781_v18  ;;  %vm4947_vm2 = vmor %vm1998_vm1, %vm1999_vm0  ;;  %3723 = vrcp.f32 %v4931_v5 }
 0x1ab   : > { %v2108_v44 = vadd.f32 0.112945676, %v2107_v11  ;;  %v1981_v24 = vadd.f32 1.1283791, %v1980_v52  ;;  %v2001_v50 = vsel %vm4947_vm2, %v4882_v10, %v1997_v31  ;;  %v2018_v3 = vmul.f32 %v2017_v53, %v4781_v58 }
 0x1ac   : > { %2490 = vadd.xlane.f32.xlu1 %v4945_v2  ;;  %v2519_v49 = vmul.f32 %v4945_v2, %v4945_v2  ;;  %v2005_v56 = vor.u32 1.1754944e-38, %v2004_v62  ;;  %v2035_v40 = vsub.f32 1.0, %v2034_v29  ;;  %v2145_v8 = vmul.f32 %v2144_v61, %v4916_v35 }
 0x1ad   : > { %v2183_v45 = vmul.f32 3.8918573e-05, %v4940_v13  ;;  %vm2003_vm3 = vcmp.eq.f32.partialorder %v2002_v7, 8.507059e+37  ;;  %v2055_v9 = vadd.f32 0.0036580483, %v2054_v51  ;;  %v2109_v36 = vmul.f32 %v2108_v44, %v4866_v34 }
 0x1ae   : > { %2538 = vadd.xlane.f32.xlu0 %v2519_v49  ;;  %v2006_v15 = vsel %vm2003_vm3, %v2005_v56, %v2001_v50  ;;  %v1982_v10 = vmul.f32 %v1981_v24, %v4738_v30  ;;  %v2019_v32 = vadd.f32 0.18741608, %v2018_v3  ;;  %v2036_v38 = vmul.f32 %v4928_v0, %v2035_v40 }
 0x1af   : > { %v2146_v54 = vadd.f32 0.014752088, %v2145_v8  ;;  %v2184_v12 = vadd.f32 0.001143296, %v2183_v45  ;;  %v2056_v37 = vmul.f32 %v2055_v9, %v4820_v17  ;;  %v2092_v1 = vmul.f32 2.1237322e-06, %v4866_v34 }
 0x1b0   : > { %v4963_v6 = vpop.eup %3723  ;;  %v2007_v41 = vmul.f32 %v2006_v15, %v1982_v10  ;;  %v2110_v59 = vadd.f32 0.4994258, %v2109_v36  ;;  %v4969_v60 = vadd.f32 %v4666_v19, %v1760_v22  ;;  %v2020_v47 = vmul.f32 %v2019_v32, %v4781_v58 }
 0x1b1   : > { %vm2039_vm4 = vweird.f32 %v4928_v0  ;;  %v2074_v30 = vmul.f32 %v4963_v6, %v4931_v5  ;;  %v2037_v26 = vadd.f32 %v4928_v0, %v2036_v38  ;;  %v2147_v4 = vmul.f32 %v2146_v54, %v4916_v35 }
 0x1b2   : > { %v2185_v18 = vmul.f32 %v2184_v12, %v4940_v13  ;;  %v4979_v11 = vmul.f32 0.70710677, %v4969_v60  ;;  %vm2038_vm5 = vweird.f32 %v4905_v28  ;;  %v2044_v23 = vand.u32 2147483648, %v4905_v28  ;;  %v1763_v12 = vpop.f32.mrf.mxu1 }
 0x1b3   : > { %v2057_v52 = vadd.f32 0.05243302, %v2056_v37  ;;  %v3550_v58 = vclamps-f32 %v2007_v41, 1.0  ;;  %v2042_v31 = vand.u32 2147483647, %v4905_v28  ;;  %v2111_v62 = vmul.f32 %v2110_v59, %v4866_v34  ;;  %vm2040_vm6 = vmor %vm2038_vm5, %vm2039_vm4 }
 0x1b4   : > { %v2093_v53 = vadd.f32 0.00028619796, %v2092_v1  ;;  %v2210_v29 = vmul.f32 %v4979_v11, %v4979_v11  ;;  %v1782_v61 = vmul.f32 0.5, %v4731_v16  ;;  %v2075_v7 = vsub.f32 1.0, %v2074_v30 }
 0x1b5   : > { %v2132_v51 = vmul.f32 2.1237322e-06, %v4916_v35  ;;  %v2021_v39 = vadd.f32 1.1283791, %v2020_v47  ;;  %v2041_v44 = vsel %vm2040_vm6, %v4928_v0, %v2037_v26  ;;  %v2148_v24 = vadd.f32 0.112945676, %v2147_v4 }
 0x1b6   : > { %v2186_v50 = vadd.f32 0.014752088, %v2185_v18  ;;  %v2045_v28 = vor.u32 1.1754944e-38, %v2044_v23  ;;  %v2058_v3 = vmul.f32 %v2057_v52, %v4820_v17  ;;  %v4993_v49 = vmin.f32 %v2210_v29, 16.0 }
 0x1b7   : > { %v2454_v56 = vadd.f32 1.0, %v3550_v58  ;;  %vm2043_vm7 = vcmp.eq.f32.partialorder %v2042_v31, 8.507059e+37  ;;  %v2094_v16 = vmul.f32 %v2093_v53, %v4866_v34  ;;  %v4996_v40 = vadd.f32 1.0, %v2111_v62 }
 0x1b8   : > { %v2046_v8 = vsel %vm2043_vm7, %v2045_v28, %v2041_v44  ;;  %v2076_v45 = vmul.f32 %v4963_v6, %v2075_v7  ;;  %v2133_v9 = vadd.f32 0.00028619796, %v2132_v51  ;;  %v2022_v0 = vmul.f32 %v2021_v39, %v4767_v33 }
 0x1b9   : > { %v4999_v15 = vmul.f32 %v2454_v56, %v1782_v61  ;;  %v2149_v36 = vmul.f32 %v2148_v24, %v4916_v35  ;;  %v2187_v10 = vmul.f32 %v2186_v50, %v4940_v13  ;;  %v2223_v32 = vmul.f32 3.8918573e-05, %v4993_v49 }
 0x1ba   : > { %v2059_v22 = vadd.f32 0.18741608, %v2058_v3  ;;  %v2047_v38 = vmul.f32 %v2046_v8, %v2022_v0  ;;  %v2095_v54 = vadd.f32 0.0036580483, %v2094_v16  ;;  %3725 = vrcp.f32 %v4996_v40 }
 0x1bb   : > { %2492 = vadd.xlane.f32.xlu1 %v4999_v15  ;;  %v2077_v41 = vadd.f32 %v4963_v6, %v2076_v45  ;;  %vm2079_vm8 = vweird.f32 %v4963_v6  ;;  %v2134_v33 = vmul.f32 %v2133_v9, %v4916_v35  ;;  %v2172_v37 = vmul.f32 2.1237322e-06, %v4940_v13 }
 0x1bc   : > { %v2150_v1 = vadd.f32 0.4994258, %v2149_v36  ;;  %v2188_v59 = vadd.f32 0.112945676, %v2187_v10  ;;  %v2224_v47 = vadd.f32 0.001143296, %v2223_v32  ;;  %v2520_v30 = vmul.f32 %v4999_v15, %v4999_v15 }
 0x1bd   : > { %v2060_v26 = vmul.f32 %v2059_v22, %v4820_v17  ;;  %vm2078_vm9 = vweird.f32 %v4931_v5  ;;  %v2084_v4 = vand.u32 2147483648, %v4931_v5  ;;  %v5017_v18 = vadd.f32 %v4666_v19, %v1763_v12 }
 0x1be   : > { %v2082_v23 = vand.u32 2147483647, %v4931_v5  ;;  %v2096_v52 = vmul.f32 %v2095_v54, %v4866_v34  ;;  %v2225_v58 = vmul.f32 %v2224_v47, %v4993_v49  ;;  %2540 = vadd.xlane.f32.xlu0 %v2520_v30  ;;  %v3551_v31 = vclamps-f32 %v2047_v38, 1.0  ;;  %vm5024_vm10 = vmor %vm2078_vm9, %vm2079_vm8  ;;  %v1766_v47 = vpop.f32.mrf.mxu1 }
 0x1bf   : > { %v2135_v17 = vadd.f32 0.0036580483, %v2134_v33  ;;  %v2173_v62 = vadd.f32 0.00028619796, %v2172_v37  ;;  %v2081_v5 = vsel %vm5024_vm10, %v4963_v6, %v2077_v41  ;;  %v2151_v61 = vmul.f32 %v2150_v1, %v4916_v35 }
 0x1c0   : > { %v5028_v29 = vpop.eup %3725  ;;  %v2189_v7 = vmul.f32 %v2188_v59, %v4940_v13  ;;  %v2226_v51 = vadd.f32 0.014752088, %v2225_v58  ;;  %v1783_v39 = vmul.f32 0.5, %v4755_v21  ;;  %v2061_v44 = vadd.f32 1.1283791, %v2060_v26 }
 0x1c1   : > { %v2085_v24 = vor.u32 1.1754944e-38, %v2084_v4  ;;  %v5037_v50 = vmul.f32 0.70710677, %v5017_v18  ;;  %vm2083_vm11 = vcmp.eq.f32.partialorder %v2082_v23, 8.507059e+37  ;;  %v2097_v28 = vadd.f32 0.05243302, %v2096_v52 }
 0x1c2   : > { %v2227_v3 = vmul.f32 %v2226_v51, %v4993_v49  ;;  %v2455_v56 = vadd.f32 1.0, %v3551_v31  ;;  %v2114_v6 = vmul.f32 %v5028_v29, %v4996_v40  ;;  %v2136_v8 = vmul.f32 %v2135_v17, %v4916_v35 }
 0x1c3   : > { %v2086_v16 = vsel %vm2083_vm11, %v2085_v24, %v2081_v5  ;;  %v2174_v45 = vmul.f32 %v2173_v62, %v4940_v13  ;;  %v5044_v9 = vadd.f32 1.0, %v2151_v61  ;;  %v2190_v21 = vadd.f32 0.4994258, %v2189_v7 }
 0x1c4   : > { %v2228_v0 = vadd.f32 0.112945676, %v2227_v3  ;;  %v2250_v36 = vmul.f32 %v5037_v50, %v5037_v50  ;;  %v2062_v10 = vmul.f32 %v2061_v44, %v4791_v20  ;;  %v2212_v32 = vmul.f32 2.1237322e-06, %v4993_v49 }
 0x1c5   : > { %v5050_v22 = vmul.f32 %v2455_v56, %v1783_v39  ;;  %v2098_v38 = vmul.f32 %v2097_v28, %v4866_v34  ;;  %v2137_v33 = vadd.f32 0.05243302, %v2136_v8  ;;  %v2115_v1 = vsub.f32 1.0, %v2114_v6 }
 0x1c6   : > { %v2229_v54 = vmul.f32 %v2228_v0, %v4993_v49  ;;  %v5054_v12 = vmin.f32 %v2250_v36, 16.0  ;;  %v2087_v41 = vmul.f32 %v2086_v16, %v2062_v10  ;;  %3727 = vrcp.f32 %v5044_v9 }
 0x1c7   : > { %2494 = vadd.xlane.f32.xlu2 %v5050_v22  ;;  %v2521_v37 = vmul.f32 %v5050_v22, %v5050_v22  ;;  %v2175_v20 = vadd.f32 0.0036580483, %v2174_v45  ;;  %v2191_v59 = vmul.f32 %v2190_v21, %v4940_v13  ;;  %v2213_v30 = vadd.f32 0.00028619796, %v2212_v32 }
 0x1c8   : > { %v2263_v26 = vmul.f32 3.8918573e-05, %v5054_v12  ;;  %v2099_v4 = vadd.f32 0.18741608, %v2098_v38  ;;  %v2230_v23 = vadd.f32 0.4994258, %v2229_v54  ;;  %v2138_v52 = vmul.f32 %v2137_v33, %v4916_v35 }
 0x1c9   : > { %2542 = vadd.xlane.f32.xlu1 %v2521_v37  ;;  %v5064_v31 = vadd.f32 %v4666_v19, %v1766_v47  ;;  %v3552_v53 = vclamps-f32 %v2087_v41, 1.0  ;;  %v1784_v17 = vmul.f32 0.5, %v4778_v43  ;;  %v2116_v62 = vmul.f32 %v5028_v29, %v2115_v1 }
 0x1ca   : > { %v2264_v58 = vadd.f32 0.001143296, %v2263_v26  ;;  %v2176_v5 = vmul.f32 %v2175_v20, %v4940_v13  ;;  %v5069_v61 = vadd.f32 1.0, %v2191_v59  ;;  %v2214_v7 = vmul.f32 %v2213_v30, %v4993_v49 }
 0x1cb   : > { %v5074_v39 = vmul.f32 0.70710677, %v5064_v31  ;;  %v2456_v44 = vadd.f32 1.0, %v3552_v53  ;;  %v2100_v28 = vmul.f32 %v2099_v4, %v4866_v34  ;;  %v2124_v43 = vand.u32 2147483648, %v4996_v40 }
 0x1cc   : > { %v2265_v51 = vmul.f32 %v2264_v58, %v5054_v12  ;;  %v5076_v24 = vpop.eup %3727  ;;  %v2231_v3 = vmul.f32 %v2230_v23, %v4993_v49  ;;  %v2252_v56 = vmul.f32 2.1237322e-06, %v5054_v12  ;;  %vm2119_vm12 = vweird.f32 %v5028_v29 }
 0x1cd   : > { %v2139_v16 = vadd.f32 0.18741608, %v2138_v52  ;;  %v2290_v8 = vmul.f32 %v5074_v39, %v5074_v39  ;;  %v2117_v45 = vadd.f32 %v5028_v29, %v2116_v62  ;;  %v2177_v21 = vadd.f32 0.05243302, %v2176_v5 }
 0x1ce   : > { %v2266_v6 = vadd.f32 0.014752088, %v2265_v51  ;;  %3729 = vrcp.f32 %v5069_v61  ;;  %v5087_v0 = vmul.f32 %v2456_v44, %v1784_v17  ;;  %v2154_v34 = vmul.f32 %v5076_v24, %v5044_v9  ;;  %v1769_v17 = vpop.f32.mrf.mxu1 }
 0x1cf   : > { %v2215_v36 = vadd.f32 0.0036580483, %v2214_v7  ;;  %v5092_v32 = vmin.f32 %v2290_v8, 16.0  ;;  %v2101_v38 = vadd.f32 1.1283791, %v2100_v28  ;;  %v5094_v54 = vadd.f32 1.0, %v2231_v3 }
 0x1d0   : > { %v2267_v10 = vmul.f32 %v2266_v6, %v5054_v12  ;;  %v2253_v41 = vadd.f32 0.00028619796, %v2252_v56  ;;  %2496 = vadd.xlane.f32.xlu2 %v5087_v0  ;;  %v2522_v33 = vmul.f32 %v5087_v0, %v5087_v0  ;;  %vm2118_vm13 = vweird.f32 %v4996_v40 }
 0x1d1   : > { %v2122_v37 = vand.u32 2147483647, %v4996_v40  ;;  %v2140_v1 = vmul.f32 %v2139_v16, %v4916_v35  ;;  %v5103_v59 = vmul.f32 0.5, %v4839_v14  ;;  %vm5107_vm14 = vmor %vm2118_vm13, %vm2119_vm12  ;;  %v5112_v30 = vmul.f32 0.5, %v4871_v25 }
 0x1d2   : > { %v2268_v20 = vadd.f32 0.112945676, %v2267_v10  ;;  %v2178_v26 = vmul.f32 %v2177_v21, %v4940_v13  ;;  %v2303_v4 = vmul.f32 3.8918573e-05, %v5092_v32  ;;  %2544 = vadd.xlane.f32.xlu1 %v2522_v33  ;;  %v2121_v35 = vsel %vm5107_vm14, %v5028_v29, %v2117_v45 }
 0x1d3   : > { %v2125_v14 = vor.u32 1.1754944e-38, %v2124_v43  ;;  %v2155_v40 = vsub.f32 1.0, %v2154_v34  ;;  %v2216_v23 = vmul.f32 %v2215_v36, %v4993_v49  ;;  %3731 = vrcp.f32 %v5094_v54 }
 0x1d4   : > { %v5120_v52 = vpop.eup %3729  ;;  %v2254_v25 = vmul.f32 %v2253_v41, %v5054_v12  ;;  %v2269_v58 = vmul.f32 %v2268_v20, %v5054_v12  ;;  %v2304_v53 = vadd.f32 0.001143296, %v2303_v4  ;;  %v2102_v62 = vmul.f32 %v2101_v38, %v4850_v42 }
 0x1d5   : > { %vm2123_vm15 = vcmp.eq.f32.partialorder %v2122_v37, 8.507059e+37  ;;  %v2141_v5 = vadd.f32 1.1283791, %v2140_v1  ;;  %v2292_v29 = vmul.f32 2.1237322e-06, %v5092_v32  ;;  %v2156_v43 = vmul.f32 %v5076_v24, %v2155_v40 }
 0x1d6   : > { %v2126_v7 = vsel %vm2123_vm15, %v2125_v14, %v2121_v35  ;;  %v2179_v51 = vadd.f32 0.18741608, %v2178_v26  ;;  %v2270_v44 = vadd.f32 0.4994258, %v2269_v58  ;;  %v2305_v28 = vmul.f32 %v2304_v53, %v5092_v32  ;;  %v1772_v26 = vpop.f32.mrf.mxu1 }
 0x1d7   : > { %v2194_v3 = vmul.f32 %v5120_v52, %v5069_v61  ;;  %v2217_v56 = vadd.f32 0.05243302, %v2216_v23  ;;  %v5132_v16 = vadd.f32 %v4666_v19, %v1769_v17  ;;  %v2162_v42 = vand.u32 2147483647, %v5044_v9 }
 0x1d8   : > { %v2255_v6 = vadd.f32 0.0036580483, %v2254_v25  ;;  %v2271_v8 = vmul.f32 %v2270_v44, %v5054_v12  ;;  %v2306_v45 = vadd.f32 0.014752088, %v2305_v28  ;;  %v2127_v21 = vmul.f32 %v2126_v7, %v2102_v62 }
 0x1d9   : > { %v2164_v34 = vand.u32 2147483648, %v5044_v9  ;;  %v5138_v36 = vmul.f32 0.5, %v4910_v63  ;;  %v2293_v10 = vadd.f32 0.00028619796, %v2292_v29  ;;  %v5140_v38 = vpop.eup %3731  ;;  %vm2159_vm0 = vweird.f32 %v5076_v24 }
 0x1da   : > { %v2180_v19 = vmul.f32 %v2179_v51, %v4940_v13  ;;  %v5144_v41 = vadd.f32 1.0, %v2271_v8  ;;  %v2307_v33 = vmul.f32 %v2306_v45, %v5092_v32  ;;  %v2157_v37 = vadd.f32 %v5076_v24, %v2156_v43 }
 0x1db   : > { %v2195_v1 = vsub.f32 1.0, %v2194_v3  ;;  %v2218_v20 = vmul.f32 %v2217_v56, %v4993_v49  ;;  %v5150_v47 = vmul.f32 0.70710677, %v5132_v16  ;;  %v2142_v63 = vmul.f32 %v2141_v5, %v4887_v46 }
 0x1dc   : > { %vm2158_vm1 = vweird.f32 %v5044_v9  ;;  %vm5154_vm2 = vcmp.eq.f32.partialorder %v2162_v42, 8.507059e+37  ;;  %v2256_v13 = vmul.f32 %v2255_v6, %v5054_v12  ;;  %v2165_v4 = vor.u32 1.1754944e-38, %v2164_v34 }
 0x1dd   : > { %v5160_v35 = vmul.f32 0.5, %v4969_v60  ;;  %v2234_v14 = vmul.f32 %v5140_v38, %v5094_v54  ;;  %v2294_v40 = vmul.f32 %v2293_v10, %v5092_v32  ;;  %vm5167_vm3 = vmor %vm2158_vm1, %vm2159_vm0  ;;  %v2181_v9 = vadd.f32 1.1283791, %v2180_v19 }
 0x1de   : > { %3733 = vrcp.f32 %v5144_v41  ;;  %v2308_v23 = vadd.f32 0.112945676, %v2307_v33  ;;  %v2330_v25 = vmul.f32 %v5150_v47, %v5150_v47  ;;  %v2161_v60 = vsel %vm5167_vm3, %v5076_v24, %v2157_v37 }
 0x1df   : > { %v2196_v58 = vmul.f32 %v5120_v52, %v2195_v1  ;;  %v2219_v53 = vadd.f32 0.18741608, %v2218_v20  ;;  %v3553_v17 = vclamps-f32 %v2127_v21, 1.0  ;;  %vm2198_vm4 = vweird.f32 %v5069_v61 }
 0x1e0   : > { %v2257_v62 = vadd.f32 0.05243302, %v2256_v13  ;;  %v2309_v5 = vmul.f32 %v2308_v23, %v5092_v32  ;;  %v5180_v29 = vmin.f32 %v2330_v25, 16.0  ;;  %v2202_v7 = vand.u32 2147483647, %v5069_v61 }
 0x1e1   : > { %v2235_v51 = vsub.f32 1.0, %v2234_v14  ;;  %v2295_v44 = vadd.f32 0.0036580483, %v2294_v40  ;;  %v2457_v28 = vadd.f32 1.0, %v3553_v17  ;;  %v2166_v43 = vsel %vm5154_vm2, %v2165_v4, %v2161_v60  ;;  %v5226_v60 = vld [vmem:[%s6729_s6] ss:$0 sm:$0xff] }
 0x1e2   : > { %v2310_v24 = vadd.f32 0.4994258, %v2309_v5  ;;  %v2332_v3 = vmul.f32 2.1237322e-06, %v5180_v29  ;;  %v2343_v56 = vmul.f32 3.8918573e-05, %v5180_v29  ;;  %v2197_v42 = vadd.f32 %v5120_v52, %v2196_v58 }
 0x1e3   : > { %vm2199_vm5 = vweird.f32 %v5120_v52  ;;  %v2204_v6 = vand.u32 2147483648, %v5069_v61  ;;  %v2220_v8 = vmul.f32 %v2219_v53, %v4993_v49  ;;  %v2258_v21 = vmul.f32 %v2257_v62, %v5054_v12 }
 0x1e4   : > { %v5191_v45 = vpop.eup %3733  ;;  %v2311_v34 = vmul.f32 %v2310_v24, %v5092_v32  ;;  %v2333_v10 = vadd.f32 0.00028619796, %v2332_v3  ;;  %v2344_v19 = vadd.f32 0.001143296, %v2343_v56  ;;  %v2167_v33 = vmul.f32 %v2166_v43, %v2142_v63  ;;  %vm5205_vm7 = vmor %vm2198_vm4, %vm2199_vm5 }
 0x1e5   : > { %vm5195_vm6 = vcmp.eq.f32.partialorder %v2202_v7, 8.507059e+37  ;;  %v2296_v1 = vmul.f32 %v2295_v44, %v5092_v32  ;;  %v5201_v20 = vmul.f32 %v2457_v28, %v5103_v59  ;;  %v2236_v13 = vmul.f32 %v5140_v38, %v2235_v51 }
 0x1e6   : > { %v5210_v4 = vadd.f32 1.0, %v2311_v34  ;;  %v2334_v63 = vmul.f32 %v2333_v10, %v5180_v29  ;;  %v2345_v14 = vmul.f32 %v2344_v19, %v5180_v29  ;;  %v2201_v59 = vsel %vm5205_vm7, %v5120_v52, %v2197_v42 }
 0x1e7   : > { %v2205_v40 = vor.u32 1.1754944e-38, %v2204_v6  ;;  %v2274_v61 = vmul.f32 %v5191_v45, %v5144_v41  ;;  %2498 = vadd.xlane.f32.xlu0 %v5201_v20  ;;  %v2523_v46 = vmul.f32 %v5201_v20, %v5201_v20  ;;  %v2221_v23 = vadd.f32 1.1283791, %v2220_v8 }
 0x1e8   : > { %v2259_v25 = vadd.f32 0.18741608, %v2258_v21  ;;  %3735 = vrcp.f32 %v5210_v4  ;;  %v5229_v52 = vadd.f32 %v5226_v60, %v1772_v26  ;;  %v2182_v58 = vmul.f32 %v2181_v9, %v4919_v55 }
 0x1e9   : > { %v2297_v53 = vadd.f32 0.05243302, %v2296_v1  ;;  %v2335_v17 = vadd.f32 0.0036580483, %v2334_v63  ;;  %v2346_v62 = vadd.f32 0.014752088, %v2345_v14  ;;  %2546 = vadd.xlane.f32.xlu2 %v2523_v46  ;;  %v2206_v5 = vsel %vm5195_vm6, %v2205_v40, %v2201_v59 }
 0x1ea   : > { %v2237_v7 = vadd.f32 %v5140_v38, %v2236_v13  ;;  %vm2239_vm8 = vweird.f32 %v5140_v38  ;;  %v2242_v51 = vand.u32 2147483647, %v5094_v54  ;;  %v2244_v44 = vand.u32 2147483648, %v5094_v54 }
 0x1eb   : > { %v2275_v28 = vsub.f32 1.0, %v2274_v61  ;;  %v2336_v43 = vmul.f32 %v2335_v17, %v5180_v29  ;;  %v2347_v55 = vmul.f32 %v2346_v62, %v5180_v29  ;;  %vm2238_vm9 = vweird.f32 %v5094_v54 }
 0x1ec   : > { %v2260_v9 = vmul.f32 %v2259_v25, %v5054_v12  ;;  %v5243_v24 = vmul.f32 0.70710677, %v5229_v52  ;;  %v3554_v3 = vclamps-f32 %v2167_v33, 1.0  ;;  %v5245_v56 = vmul.f32 %v2206_v5, %v2182_v58  ;;  %vm5248_vm10 = vmor %vm2238_vm9, %vm2239_vm8  ;;  %v1775_v58 = vpop.f32.mrf.mxu1 }
 0x1ed   : > { %v2222_v42 = vmul.f32 %v2221_v23, %v4979_v11  ;;  %v2298_v8 = vmul.f32 %v2297_v53, %v5092_v32  ;;  %v2348_v21 = vadd.f32 0.112945676, %v2347_v55  ;;  %v2241_v12 = vsel %vm5248_vm10, %v5140_v38, %v2237_v7 }
 0x1ee   : > { %v5253_v34 = vpop.eup %3735  ;;  %vm2243_vm11 = vcmp.eq.f32.partialorder %v2242_v51, 8.507059e+37  ;;  %v2370_v54 = vmul.f32 %v5243_v24, %v5243_v24  ;;  %v2458_v10 = vadd.f32 1.0, %v3554_v3  ;;  %v2245_v19 = vor.u32 1.1754944e-38, %v2244_v44 }
 0x1ef   : > { %v2276_v11 = vmul.f32 %v5191_v45, %v2275_v28  ;;  %v2314_v33 = vmul.f32 %v5253_v34, %v5210_v4  ;;  %v2337_v37 = vadd.f32 0.05243302, %v2336_v43  ;;  %v2261_v1 = vadd.f32 1.1283791, %v2260_v9 }
 0x1f0   : > { %v2349_v26 = vmul.f32 %v2348_v21, %v5180_v29  ;;  %v5264_v49 = vmin.f32 %v2370_v54, 16.0  ;;  %v5267_v13 = vmul.f32 %v2458_v10, %v5112_v30  ;;  %v2246_v38 = vsel %vm2243_vm11, %v2245_v19, %v2241_v12 }
 0x1f1   : > { %vm2278_vm12 = vweird.f32 %v5144_v41  ;;  %v2299_v63 = vadd.f32 0.18741608, %v2298_v8  ;;  %v2315_v14 = vsub.f32 1.0, %v2314_v33  ;;  %vm2279_vm13 = vweird.f32 %v5191_v45 }
 0x1f2   : > { %v2350_v59 = vadd.f32 0.4994258, %v2349_v26  ;;  %v2372_v40 = vmul.f32 2.1237322e-06, %v5264_v49  ;;  %2500 = vadd.xlane.f32.xlu0 %v5267_v13  ;;  %v2524_v61 = vmul.f32 %v5267_v13, %v5267_v13  ;;  %v2277_v46 = vadd.f32 %v5191_v45, %v2276_v11  ;;  %vm5288_vm15 = vmor %vm2278_vm12, %vm2279_vm13 }
 0x1f3   : > { %v2316_v30 = vmul.f32 %v5253_v34, %v2315_v14  ;;  %v2338_v23 = vmul.f32 %v2337_v37, %v5180_v29  ;;  %v2383_v25 = vmul.f32 3.8918573e-05, %v5264_v49  ;;  %v2282_v53 = vand.u32 2147483647, %v5144_v41 }
 0x1f4   : > { %v2284_v17 = vand.u32 2147483648, %v5144_v41  ;;  %v2351_v62 = vmul.f32 %v2350_v59, %v5180_v29  ;;  %v2373_v5 = vadd.f32 0.00028619796, %v2372_v40  ;;  %2548 = vadd.xlane.f32.xlu2 %v2524_v61  ;;  %v2247_v7 = vmul.f32 %v2246_v38, %v2222_v42 }
 0x1f5   : > { %v2300_v51 = vmul.f32 %v2299_v63, %v5092_v32  ;;  %vm2319_vm14 = vweird.f32 %v5253_v34  ;;  %v2384_v44 = vadd.f32 0.001143296, %v2383_v25  ;;  %v2317_v43 = vadd.f32 %v5253_v34, %v2316_v30 }
 0x1f6   : > { %v5293_v55 = vadd.f32 1.0, %v2351_v62  ;;  %v2374_v9 = vmul.f32 %v2373_v5, %v5264_v49  ;;  %v5297_v3 = vadd.f32 %v5226_v60, %v1775_v58  ;;  %v2281_v32 = vsel %vm5288_vm15, %v5191_v45, %v2277_v46 }
 0x1f7   : > { %v2324_v42 = vand.u32 2147483648, %v5210_v4  ;;  %v2339_v41 = vadd.f32 0.18741608, %v2338_v23  ;;  %v2385_v6 = vmul.f32 %v2384_v44, %v5264_v49  ;;  %v2285_v8 = vor.u32 1.1754944e-38, %v2284_v17 }
 0x1f8   : > { %vm2318_vm0 = vweird.f32 %v5210_v4  ;;  %v2322_v21 = vand.u32 2147483647, %v5210_v4  ;;  %3737 = vrcp.f32 %v5293_v55  ;;  %v2262_v12 = vmul.f32 %v2261_v1, %v5037_v50 }
 0x1f9   : > { %vm2283_vm1 = vcmp.eq.f32.partialorder %v2282_v53, 8.507059e+37  ;;  %v2301_v60 = vadd.f32 1.1283791, %v2300_v51  ;;  %vm5310_vm2 = vmor %vm2318_vm0, %vm2319_vm14  ;;  %v2375_v54 = vadd.f32 0.0036580483, %v2374_v9  ;;  %v2325_v33 = vor.u32 1.1754944e-38, %v2324_v42 }
 0x1fa   : > { %v2286_v10 = vsel %vm2283_vm1, %v2285_v8, %v2281_v32  ;;  %v2321_v19 = vsel %vm5310_vm2, %v5253_v34, %v2317_v43  ;;  %v2386_v11 = vadd.f32 0.014752088, %v2385_v6  ;;  %v5318_v4 = vmul.f32 0.70710677, %v5297_v3 }
 0x1fb   : > { %v2340_v50 = vmul.f32 %v2339_v41, %v5180_v29  ;;  %v2376_v37 = vmul.f32 %v2375_v54, %v5264_v49  ;;  %v3555_v1 = vclamps-f32 %v5245_v56, 1.0  ;;  %vm2323_vm3 = vcmp.eq.f32.partialorder %v2322_v21, 8.507059e+37 }
 0x1fc   : > { %v2387_v26 = vmul.f32 %v2386_v11, %v5264_v49  ;;  %v2410_v38 = vmul.f32 %v5318_v4, %v5318_v4  ;;  %v3556_v63 = vclamps-f32 %v2247_v7, 1.0  ;;  %v1789_v34 = vmul.f32 0.5, %v5017_v18 }
 0x1fd   : > { %v2287_v14 = vmul.f32 %v2286_v10, %v2262_v12  ;;  %v2326_v59 = vsel %vm2323_vm3, %v2325_v33, %v2321_v19  ;;  %v2459_v40 = vadd.f32 1.0, %v3555_v1  ;;  %v2302_v46 = vmul.f32 %v2301_v60, %v5074_v39 }
 0x1fe   : > { %v3738_v61 = vpop.eup %3737  ;;  %v2388_v29 = vadd.f32 0.112945676, %v2387_v26  ;;  %v5328_v30 = vmin.f32 %v2410_v38, 16.0  ;;  %v2460_v23 = vadd.f32 1.0, %v3556_v63  ;;  %v2341_v56 = vadd.f32 1.1283791, %v2340_v50 }
 0x1ff   : > { %v2354_v25 = vmul.f32 %v3738_v61, %v5293_v55  ;;  %v2362_v58 = vand.u32 2147483647, %v5293_v55  ;;  %v2377_v53 = vadd.f32 0.05243302, %v2376_v37  ;;  %v2327_v17 = vmul.f32 %v2326_v59, %v2302_v46  ;;  %v2485_v38 = vpop.xlane.xlu2 %2484 }
 0x200   : > { %v2389_v62 = vmul.f32 %v2388_v29, %v5264_v49  ;;  %v2412_v18 = vmul.f32 2.1237322e-06, %v5328_v30  ;;  %v2423_v5 = vmul.f32 3.8918573e-05, %v5328_v30  ;;  %v2364_v39 = vand.u32 2147483648, %v5293_v55 }
 0x201   : > { %v2355_v7 = vsub.f32 1.0, %v2354_v25  ;;  %v5337_v51 = vmul.f32 %v2459_v40, %v5138_v36  ;;  %v3557_v44 = vclamps-f32 %v2287_v14, 1.0  ;;  %vm2359_vm4 = vweird.f32 %v3738_v61  ;;  %v2533_v63 = vpop.xlane.xlu0 %2532 }
 0x202   : > { %v2390_v28 = vadd.f32 0.4994258, %v2389_v62  ;;  %v2413_v43 = vadd.f32 0.00028619796, %v2412_v18  ;;  %v5340_v9 = vmul.f32 %v2460_v23, %v5160_v35  ;;  %v2378_v42 = vmul.f32 %v2377_v53, %v5264_v49 }
 0x203   : > { %v2356_v32 = vmul.f32 %v3738_v61, %v2355_v7  ;;  %v2424_v41 = vadd.f32 0.001143296, %v2423_v5  ;;  %2502 = vadd.xlane.f32.xlu1 %v5337_v51  ;;  %v2525_v6 = vmul.f32 %v5337_v51, %v5337_v51  ;;  %v2342_v8 = vmul.f32 %v2341_v56, %v5150_v47 }
 0x204   : > { %v2391_v36 = vmul.f32 %v2390_v28, %v5264_v49  ;;  %v2414_v21 = vmul.f32 %v2413_v43, %v5328_v30  ;;  %v2526_v12 = vmul.f32 %v5340_v9, %v5340_v9  ;;  %vm2358_vm5 = vweird.f32 %v5293_v55 }
 0x205   : > { %v2357_v35 = vadd.f32 %v3738_v61, %v2356_v32  ;;  %v2425_v60 = vmul.f32 %v2424_v41, %v5328_v30  ;;  %2550 = vadd.xlane.f32.xlu0 %v2525_v6  ;;  %v2461_v45 = vadd.f32 1.0, %v3557_v44  ;;  %vm2360_vm6 = vmor %vm2358_vm5, %vm2359_vm4  ;;  %v2365_v54 = vor.u32 1.1754944e-38, %v2364_v39 }
 0x206   : > { %v5354_v10 = vadd.f32 1.0, %v2391_v36  ;;  %v2415_v47 = vadd.f32 0.0036580483, %v2414_v21  ;;  %2552 = vadd.xlane.f32.xlu2 %v2526_v12  ;;  %v3558_v19 = vclamps-f32 %v2327_v17, 1.0  ;;  %vm2363_vm7 = vcmp.eq.f32.partialorder %v2362_v58, 8.507059e+37 }
 0x207   : > { %v2361_v11 = vsel %vm2360_vm6, %v3738_v61, %v2357_v35  ;;  %v2379_v33 = vadd.f32 0.18741608, %v2378_v42  ;;  %v2426_v50 = vadd.f32 0.014752088, %v2425_v60  ;;  %v5358_v26 = vmul.f32 %v2461_v45, %v1789_v34 }
 0x208   : > { %v2366_v37 = vsel %vm2363_vm7, %v2365_v54, %v2361_v11  ;;  %3739 = vrcp.f32 %v5354_v10  ;;  %v2416_v1 = vmul.f32 %v2415_v47, %v5328_v30  ;;  %v1790_v14 = vmul.f32 0.5, %v5064_v31  ;;  %v2487_v42 = vpop.xlane.xlu1 %2486 }
 0x209   : > { %v2367_v55 = vmul.f32 %v2366_v37, %v2342_v8  ;;  %v2427_v59 = vmul.f32 %v2426_v50, %v5328_v30  ;;  %v2462_v40 = vadd.f32 1.0, %v3558_v19  ;;  %v2380_v61 = vmul.f32 %v2379_v33, %v5264_v49 }
 0x20a   : > { %v5366_v56 = vmul.f32 0.0078125, %v2485_v38  ;;  %v2580_v25 = vmul.f32 0.0078125, %v2533_v63  ;;  %v2417_v34 = vadd.f32 0.05243302, %v2416_v1  ;;  %v1791_v31 = vmul.f32 0.5, %v5132_v16  ;;  %v2535_v41 = vpop.xlane.xlu2 %2534 }
 0x20b   : > { %2504 = vadd.xlane.f32.xlu1 %v5340_v9  ;;  %v3559_v46 = vclamps-f32 %v2367_v55, 1.0  ;;  %v2428_v29 = vadd.f32 0.112945676, %v2427_v59  ;;  %v5364_v23 = vmul.f32 %v2462_v40, %v1790_v14  ;;  %v2527_v18 = vmul.f32 %v5358_v26, %v5358_v26 }
 0x20c   : > { %v2596_v49 = vmul.f32 %v5366_v56, %v5366_v56  ;;  %v2381_v5 = vadd.f32 1.1283791, %v2380_v61  ;;  %v2404_v16 = vand.u32 2147483648, %v5354_v10  ;;  %v2418_v43 = vmul.f32 %v2417_v34, %v5328_v30 }
 0x20d   : > { %2506 = vadd.xlane.f32.xlu0 %v5358_v26  ;;  %v2463_v58 = vadd.f32 1.0, %v3559_v46  ;;  %v2429_v17 = vmul.f32 %v2428_v29, %v5328_v30  ;;  %v2528_v32 = vmul.f32 %v5364_v23, %v5364_v23  ;;  %v5388_v21 = vmul.f32 0.0078125, %v2487_v42 }
 0x20e   : > { %v3740_v53 = vpop.eup %3739  ;;  %2508 = vadd.xlane.f32.xlu2 %v5364_v23  ;;  %v2612_v44 = vsub.f32 %v2580_v25, %v2596_v49  ;;  %v2402_v60 = vand.u32 2147483647, %v5354_v10  ;;  %v2581_v45 = vmul.f32 0.0078125, %v2535_v41  ;;  %vm2398_vm9 = vweird.f32 %v5354_v10  ;;  %v5423_v41 = vld [vmem:[%s6727_s4] ss:$0 sm:$0xff] }
 0x20f   : > { %v2394_v62 = vmul.f32 %v3740_v53, %v5354_v10  ;;  %v2430_v7 = vadd.f32 0.4994258, %v2429_v17  ;;  %v5377_v39 = vmul.f32 %v2463_v58, %v1791_v31  ;;  %vm2399_vm8 = vweird.f32 %v3740_v53 }
 0x210   : > { %v5386_v36 = vadd.f32 1e-05, %v2612_v44  ;;  %v2597_v47 = vmul.f32 %v5388_v21, %v5388_v21  ;;  %vm2400_vm10 = vmor %vm2398_vm9, %vm2399_vm8  ;;  %v2405_v33 = vor.u32 1.1754944e-38, %v2404_v16  ;;  %v2419_v50 = vadd.f32 0.18741608, %v2418_v43 }
 0x211   : > { %v2395_v28 = vsub.f32 1.0, %v2394_v62  ;;  %v2431_v6 = vmul.f32 %v2430_v7, %v5328_v30  ;;  %v2529_v8 = vmul.f32 %v5377_v39, %v5377_v39  ;;  %v2382_v37 = vmul.f32 %v2381_v5, %v5243_v24 }
 0x212   : > { %v2489_v12 = vpop.xlane.xlu0 %2488  ;;  %3741 = vrsqrt.f32 %v5386_v36  ;;  %vm2403_vm11 = vcmp.eq.f32.partialorder %v2402_v60, 8.507059e+37  ;;  %v2613_v1 = vsub.f32 %v2581_v45, %v2597_v47  ;;  %v2420_v46 = vmul.f32 %v2419_v50, %v5328_v30 }
 0x213   : > { %v2396_v35 = vmul.f32 %v3740_v53, %v2395_v28  ;;  %2554 = vadd.xlane.f32.xlu1 %v2527_v18  ;;  %v5391_v54 = vadd.f32 1.0, %v2431_v6  ;;  %v5396_v19 = vmul.f32 0.0078125, %v2489_v12  ;;  %v1792_v62 = vmul.f32 0.5, %v5229_v52  ;;  %v941_v12 = vpop.f32.mrf.mxu0 }
 0x214   : > { %v5403_v59 = vadd.f32 1e-05, %v2613_v1  ;;  %v2537_v10 = vpop.xlane.xlu2 %2536  ;;  %v2421_v7 = vadd.f32 1.1283791, %v2420_v46  ;;  %vm2666_vm0 = vweird.f32 %v5386_v36  ;;  %vm2891_vm5 = vcmask 64512  }
 0x215   : > { %v2397_v11 = vadd.f32 %v3740_v53, %v2396_v35  ;;  %2556 = vadd.xlane.f32.xlu0 %v2528_v32  ;;  %3743 = vrcp.f32 %v5391_v54  ;;  %v2598_v63 = vmul.f32 %v5396_v19, %v5396_v19  ;;  %v2582_v29 = vmul.f32 0.0078125, %v2537_v10 }
 0x216   : > { %2558 = vadd.xlane.f32.xlu2 %v2529_v8  ;;  %3745 = vrsqrt.f32 %v5403_v59  ;;  %v2442_v43 = vand.u32 2147483647, %v5391_v54  ;;  %v2444_v52 = vand.u32 2147483648, %v5391_v54  ;;  %vm2438_vm14 = vweird.f32 %v5391_v54 }
 0x217   : > { %v2401_v55 = vsel %vm2400_vm10, %v3740_v53, %v2397_v11  ;;  %v2614_v31 = vsub.f32 %v2582_v29, %v2598_v63  ;;  %v2422_v63 = vmul.f32 %v2421_v7, %v5318_v4  ;;  %vm2676_vm4 = vweird.f32 %v5403_v59 }
 0x218   : > { %v2406_v38 = vsel %vm2403_vm11, %v2405_v33, %v2401_v55  ;;  %v3742_v61 = vpop.eup %3741  ;;  %v2445_v55 = vor.u32 1.1754944e-38, %v2444_v52  ;;  %vm2443_vm2 = vcmp.eq.f32.partialorder %v2442_v43, 8.507059e+37 }
 0x219   : > { %v2407_v14 = vmul.f32 %v2406_v38, %v2382_v37  ;;  %v2661_v58 = vmul.f32 %v3742_v61, %v5386_v36  ;;  %v5415_v44 = vadd.f32 1e-05, %v2614_v31  ;;  %vm2667_vm13 = vweird.f32 %v3742_v61  ;;  %v5453_v38 = vld [vmem:[%s6730_s7] ss:$0 sm:$0xff] }
 0x21a   : > { %v5445_v37 = vadd.f32 %v5423_v41, %v941_v12  ;;  %vm2668_vm1 = vmor %vm2666_vm0, %vm2667_vm13 }
 0x21b   : > { %2510 = vadd.xlane.f32.xlu1 %v5377_v39  ;;  %v3560_v24 = vclamps-f32 %v2407_v14, 1.0  ;;  %v3744_v53 = vpop.eup %3743  ;;  %v2662_v5 = vmul.f32 %v3742_v61, %v2661_v58  ;;  %3747 = vrsqrt.f32 %v5415_v44  ;;  %v944_v7 = vpop.f32.mrf.mxu0  ;;  %vm2686_vm8 = vweird.f32 %v5415_v44 }
 0x21c   : > { %v2434_v30 = vmul.f32 %v3744_v53, %v5391_v54  ;;  %vm2439_vm12 = vweird.f32 %v3744_v53  ;;  %v5429_v8 = vpop.eup %3745  ;;  %v2628_v54 = vsub.f32 %v4804_v48, %v5366_v56  ;;  %v5461_v48 = vld [vmem:[%s6731_s8] ss:$0 sm:$0xff]  ;;  %v5467_v4 = vmul.f32 0.70710677, %v5445_v37 }
 0x21d   : > { %v2464_v18 = vadd.f32 1.0, %v3560_v24  ;;  %v2663_v42 = vmul.f32 0.5, %v2662_v5  ;;  %v2671_v47 = vmul.f32 %v5429_v8, %v5403_v59  ;;  %vm5439_vm15 = vmor %vm2438_vm14, %vm2439_vm12  ;;  %vm2677_vm3 = vweird.f32 %v5429_v8 }
 0x21e   : > { %v2435_v16 = vsub.f32 1.0, %v2434_v30  ;;  %vm2678_vm6 = vmor %vm2676_vm4, %vm2677_vm3  ;;  %v2629_v59 = vsub.f32 %v4843_v57, %v5388_v21  ;;  %v1021_v52 = vmul.f32 %v5467_v4, %v5467_v4 }
 0x21f   : > { %v2491_v40 = vpop.xlane.xlu1 %2490  ;;  %v5418_v32 = vmul.f32 %v2464_v18, %v1792_v62  ;;  %v2664_v45 = vsub.f32 1.5, %v2663_v42  ;;  %v2672_v1 = vmul.f32 %v5429_v8, %v2671_v47  ;;  %v2874_v18 = vld [vmem:[%s6732_s9] sm:$0xff] }
 0x220   : > { %v5406_v25 = vmul.f32 0.0078125, %v2491_v40  ;;  %v2436_v35 = vmul.f32 %v3744_v53, %v2435_v16  ;;  %v5497_v33 = vmin.f32 %v1021_v52, 16.0 }
 0x221   : > { %v2539_v34 = vpop.xlane.xlu0 %2538  ;;  %2512 = vadd.xlane.f32.xlu0 %v5418_v32  ;;  %v2530_v60 = vmul.f32 %v5418_v32, %v5418_v32  ;;  %v2665_v50 = vmul.f32 %v3742_v61, %v2664_v45  ;;  %v3748_v10 = vpop.eup %3747  ;;  %v2673_v46 = vmul.f32 0.5, %v2672_v1  ;;  %v2875_v1 = vld [vmem:[%s6732_s9 + $0x8] sm:$0xff] }
 0x222   : > { %v2599_v17 = vmul.f32 %v5406_v25, %v5406_v25  ;;  %v2583_v49 = vmul.f32 0.0078125, %v2539_v34  ;;  %v2437_v11 = vadd.f32 %v3744_v53, %v2436_v35  ;;  %v2681_v34 = vmul.f32 %v3748_v10, %v5415_v44 }
 0x223   : > { %2560 = vadd.xlane.f32.xlu1 %v2530_v60  ;;  %v2669_v14 = vsel %vm2668_vm1, %v3742_v61, %v2665_v50  ;;  %v2674_v58 = vsub.f32 1.5, %v2673_v46  ;;  %vm2687_vm7 = vweird.f32 %v3748_v10  ;;  %v1034_v46 = vmul.f32 3.8918573e-05, %v5497_v33 }
 0x224   : > { %v2615_v28 = vsub.f32 %v2583_v49, %v2599_v17  ;;  %v2441_v36 = vsel %vm5439_vm15, %v3744_v53, %v2437_v11  ;;  %v2820_v29 = vmul.f32 %v2669_v14, %v2628_v54  ;;  %v1793_v53 = vmul.f32 0.5, %v5297_v3  ;;  %vm2688_vm9 = vmor %vm2686_vm8, %vm2687_vm7 }
 0x225   : > { %v2446_v40 = vsel %vm2443_vm2, %v2445_v55, %v2441_v36  ;;  %v2682_v17 = vmul.f32 %v3748_v10, %v2681_v34  ;;  %v2675_v5 = vmul.f32 %v5429_v8, %v2674_v58  ;;  %v2630_v36 = vsub.f32 %v4878_v27, %v5396_v19 }
 0x226   : > { %v5427_v6 = vadd.f32 1e-05, %v2615_v28  ;;  %v2447_v56 = vmul.f32 %v2446_v40, %v2422_v63  ;;  %v2839_v61 = vmul.f32 %v5453_v38, %v2820_v29  ;;  %v5507_v29 = vpop.f32.mrf.mxu0  ;;  %v1035_v19 = vadd.f32 0.001143296, %v1034_v46 }
 0x227   : > { %v2683_v3 = vmul.f32 0.5, %v2682_v17  ;;  %v2679_v42 = vsel %vm2678_vm6, %v5429_v8, %v2675_v5 }
 0x228   : > { %3749 = vrsqrt.f32 %v5427_v6  ;;  %v3561_v31 = vclamps-f32 %v2447_v56, 1.0  ;;  %v2858_v30 = vadd.f32 %v5461_v48, %v2839_v61  ;;  %v2821_v47 = vmul.f32 %v2679_v42, %v2629_v59 }
 0x229   : > { %v2684_v35 = vsub.f32 1.5, %v2683_v3  ;;  %vm2696_vm11 = vweird.f32 %v5427_v6 }
 0x22a   : > { %v2465_v28 = vadd.f32 1.0, %v3561_v31  ;;  %2910 = vmatpush.msra.mxu3 %v2858_v30  ;;  %v2840_v11 = vmul.f32 %v5453_v38, %v2821_v47  ;;  %v2631_v31 = vsub.f32 %v4945_v2, %v5406_v25  ;;  %v1036_v30 = vmul.f32 %v1035_v19, %v5497_v33 }
 0x22b   : > { %3562 = vmatmul.msk.f32.vlgmr.msra.gmra.mxu3 %vm2891_vm5, %v2874_v18  ;;  %v2685_v63 = vmul.f32 %v3748_v10, %v2684_v35 }
 0x22c   : > { %v5488_v12 = vmul.f32 %v2465_v28, %v1793_v53  ;;  %v2859_v54 = vadd.f32 %v5461_v48, %v2840_v11  ;;  %v1037_v59 = vadd.f32 0.014752088, %v1036_v30 }
 0x22d   : > { %v2689_v40 = vsel %vm2688_vm9, %v3748_v10, %v2685_v63  ;;  %v1023_v63 = vmul.f32 2.1237322e-06, %v5497_v33 }
 0x22e   : > { %v5464_v24 = vpop.eup %3749  ;;  %v2493_v62 = vpop.xlane.xlu1 %2492  ;;  %2514 = vadd.xlane.f32.xlu2 %v5488_v12  ;;  %v2531_v57 = vmul.f32 %v5488_v12, %v5488_v12  ;;  %2933 = vmatpush.msrb.mxu3 %v2859_v54  ;;  %v2822_v44 = vmul.f32 %v2689_v40, %v2630_v36  ;;  %v1038_v47 = vmul.f32 %v1037_v59, %v5497_v33 }
 0x22f   : > { %v2691_v49 = vmul.f32 %v5464_v24, %v5427_v6  ;;  %v5481_v43 = vmul.f32 0.0078125, %v2493_v62  ;;  %vm2697_vm10 = vweird.f32 %v5464_v24  ;;  %v5523_v6 = vadd.f32 %v5423_v41, %v944_v7  ;;  %v5530_v2 = vpop.f32.mrf.mxu0 }
 0x230   : > { %2562 = vadd.xlane.f32.xlu0 %v2531_v57  ;;  %v2841_v34 = vmul.f32 %v5453_v38, %v2822_v44  ;;  %vm2698_vm12 = vmor %vm2696_vm11, %vm2697_vm10 }
 0x231   : > { %v2692_v16 = vmul.f32 %v5464_v24, %v2691_v49  ;;  %v2600_v45 = vmul.f32 %v5481_v43, %v5481_v43  ;;  %v2541_v21 = vpop.xlane.xlu0 %2540  ;;  %v5534_v7 = vmul.f32 0.70710677, %v5523_v6  ;;  %v2632_v54 = vsub.f32 %v4999_v15, %v5481_v43 }
 0x232   : > { %v2584_v8 = vmul.f32 0.0078125, %v2541_v21  ;;  %v2860_v58 = vadd.f32 %v5461_v48, %v2841_v34  ;;  %v1039_v34 = vadd.f32 0.112945676, %v1038_v47  ;;  %v1024_v43 = vadd.f32 0.00028619796, %v1023_v63 }
 0x233   : > { %v2693_v60 = vmul.f32 0.5, %v2692_v16  ;;  %3563 = vmatmul.msk.f32.vlgmr.msrb.gmra.mxu3 %vm2891_vm5, %v2875_v1  ;;  %v1061_v57 = vmul.f32 %v5534_v7, %v5534_v7  ;;  %v2877_v1 = vld [vmem:[%s6732_s9 + $0x18] sm:$0xff] }
 0x234   : > { %v2616_v55 = vsub.f32 %v2584_v8, %v2600_v45  ;;  %2956 = vmatpush.msra.mxu2 %v2860_v58  ;;  %v1025_v30 = vmul.f32 %v1024_v43, %v5497_v33 }
 0x235   : > { %v2694_v50 = vsub.f32 1.5, %v2693_v60  ;;  %v5551_v46 = vmin.f32 %v1061_v57, 16.0 }
 0x236   : > { %v2648_v14 = vadd.f32 1e-05, %v2616_v55 }
 0x237   : > { %v2695_v56 = vmul.f32 %v5464_v24, %v2694_v50  ;;  %v953_v44 = vpop.f32.mrf.mxu0 }
 0x238   : > { %3751 = vrsqrt.f32 %v2648_v14  ;;  %vm2706_vm14 = vweird.f32 %v2648_v14 }
 0x239   : > { %v2699_v61 = vsel %vm2698_vm12, %v5464_v24, %v2695_v56  ;;  %v2876_v24 = vld [vmem:[%s6732_s9 + $0x10] sm:$0xff] }
 0x23a   : > { %v2495_v27 = vpop.xlane.xlu2 %2494  ;;  %v2823_v28 = vmul.f32 %v2699_v61, %v2631_v31  ;;  %3564 = vmatmul.msk.f32.vlgmr.msra.gmra.mxu2 %vm2891_vm5, %v2876_v24  ;;  %v1063_v61 = vmul.f32 2.1237322e-06, %v5551_v46  ;;  %v1040_v31 = vmul.f32 %v1039_v34, %v5497_v33 }
 0x23b   : > { %v5514_v10 = vmul.f32 0.0078125, %v2495_v27 }
 0x23c   : > { %v2543_v53 = vpop.xlane.xlu1 %2542  ;;  %v2842_v16 = vmul.f32 %v5453_v38, %v2823_v28 }
 0x23d   : > { %v2601_v17 = vmul.f32 %v5514_v10, %v5514_v10  ;;  %v2585_v49 = vmul.f32 0.0078125, %v2543_v53  ;;  %v2633_v24 = vsub.f32 %v5050_v22, %v5514_v10 }
 0x23e   : > { %v3752_v62 = vpop.eup %3751  ;;  %v2861_v52 = vadd.f32 %v5461_v48, %v2842_v16 }
 0x23f   : > { %v2701_v18 = vmul.f32 %v3752_v62, %v2648_v14  ;;  %v2617_v5 = vsub.f32 %v2585_v49, %v2601_v17  ;;  %vm2707_vm13 = vweird.f32 %v3752_v62  ;;  %v5559_v49 = vadd.f32 %v5423_v41, %v5507_v29  ;;  %v956_v59 = vpop.f32.mrf.mxu0 }
 0x240   : > { %2979 = vmatpush.msra.mxu3 %v2861_v52  ;;  %vm2708_vm15 = vmor %vm2706_vm14, %vm2707_vm13 }
 0x241   : > { %v2702_v25 = vmul.f32 %v3752_v62, %v2701_v18  ;;  %v2649_v3 = vadd.f32 1e-05, %v2617_v5  ;;  %3565 = vmatmul.msk.f32.vlgmr.msra.gmra.mxu3 %vm2891_vm5, %v2877_v1  ;;  %v1064_v5 = vadd.f32 0.00028619796, %v1063_v61  ;;  %v5569_v16 = vmul.f32 0.70710677, %v5559_v49 }
 0x243   : > { %v2703_v42 = vmul.f32 0.5, %v2702_v25  ;;  %3753 = vrsqrt.f32 %v2649_v3  ;;  %v2497_v60 = vpop.xlane.xlu2 %2496  ;;  %vm2716_vm1 = vweird.f32 %v2649_v3  ;;  %v1041_v25 = vadd.f32 0.4994258, %v1040_v31 }
 0x244   : > { %v5537_v45 = vmul.f32 0.0078125, %v2497_v60  ;;  %v1065_v60 = vmul.f32 %v1064_v5, %v5551_v46  ;;  %v1101_v57 = vmul.f32 %v5569_v16, %v5569_v16 }
 0x245   : > { %v2704_v35 = vsub.f32 1.5, %v2703_v42  ;;  %v2545_v21 = vpop.xlane.xlu1 %2544  ;;  %v1042_v10 = vmul.f32 %v1041_v25, %v5497_v33  ;;  %v5619_v25 = vadd.f32 %v5423_v41, %v956_v59 }
 0x246   : > { %v2602_v8 = vmul.f32 %v5537_v45, %v5537_v45  ;;  %v2586_v11 = vmul.f32 0.0078125, %v2545_v21 }
 0x247   : > { %v2705_v50 = vmul.f32 %v3752_v62, %v2704_v35  ;;  %v1026_v35 = vadd.f32 0.0036580483, %v1025_v30  ;;  %v5591_v63 = vadd.f32 1.0, %v1042_v10  ;;  %v959_v61 = vpop.f32.mrf.mxu0 }
 0x248   : > { %v2618_v40 = vsub.f32 %v2586_v11, %v2602_v8  ;;  %v2879_v11 = vld [vmem:[%s6732_s9 + $0x28] sm:$0xff] }
 0x249   : > { %v3754_v55 = vpop.eup %3753  ;;  %v2709_v14 = vsel %vm2708_vm15, %v3752_v62, %v2705_v50  ;;  %v2878_v62 = vld [vmem:[%s6732_s9 + $0x20] sm:$0xff]  ;;  %vm1049_vm11 = vweird.f32 %v5591_v63 }
 0x24a   : > { %v2711_v36 = vmul.f32 %v3754_v55, %v2649_v3  ;;  %v2824_v56 = vmul.f32 %v2709_v14, %v2632_v54  ;;  %v2650_v19 = vadd.f32 1e-05, %v2618_v40  ;;  %vm2717_vm0 = vweird.f32 %v3754_v55 }
 0x24b   : > { %vm2718_vm2 = vmor %vm2716_vm1, %vm2717_vm0  ;;  %v5573_v3 = vadd.f32 %v5423_v41, %v5530_v2  ;;  %v1027_v2 = vmul.f32 %v1026_v35, %v5497_v33  ;;  %v1066_v54 = vadd.f32 0.0036580483, %v1065_v60  ;;  %v5594_v40 = vmin.f32 %v1101_v57, 16.0 }
 0x24c   : > { %v2712_v27 = vmul.f32 %v3754_v55, %v2711_v36  ;;  %v2843_v15 = vmul.f32 %v5453_v38, %v2824_v56  ;;  %3755 = vrsqrt.f32 %v2650_v19  ;;  %vm2726_vm4 = vweird.f32 %v2650_v19 }
 0x24d   : > { %v5586_v50 = vmul.f32 0.70710677, %v5573_v3  ;;  %v1028_v34 = vadd.f32 0.05243302, %v1027_v2  ;;  %3757 = vrcp.f32 %v5591_v63  ;;  %v5634_v57 = vmul.f32 0.70710677, %v5619_v25 }
 0x24e   : > { %v2713_v58 = vmul.f32 0.5, %v2712_v27  ;;  %v2862_v53 = vadd.f32 %v5461_v48, %v2843_v15  ;;  %v2634_v15 = vsub.f32 %v5087_v0, %v5537_v45 }
 0x24f   : > { %v1029_v5 = vmul.f32 %v1028_v34, %v5497_v33  ;;  %v962_v2 = vpop.f32.mrf.mxu0 }
 0x250   : > { %v2714_v17 = vsub.f32 1.5, %v2713_v58  ;;  %3002 = vmatpush.msrb.mxu2 %v2862_v53  ;;  %v1067_v58 = vmul.f32 %v1066_v54, %v5551_v46 }
 0x251   : > { %3566 = vmatmul.msk.f32.vlgmr.msrb.gmra.mxu2 %vm2891_vm5, %v2878_v62  ;;  %v1103_v62 = vmul.f32 2.1237322e-06, %v5594_v40 }
 0x252   : > { %v2715_v18 = vmul.f32 %v3754_v55, %v2714_v17  ;;  %v3756_v28 = vpop.eup %3755 }
 0x253   : > { %v2721_v42 = vmul.f32 %v3756_v28, %v2650_v19  ;;  %vm2727_vm3 = vweird.f32 %v3756_v28  ;;  %v5626_v35 = vpop.eup %3757 }
 0x254   : > { %v2719_v29 = vsel %vm2718_vm2, %v3754_v55, %v2715_v18  ;;  %v5589_v55 = vadd.f32 %v5423_v41, %v953_v44  ;;  %v1141_v44 = vmul.f32 %v5586_v50, %v5586_v50  ;;  %vm2728_vm6 = vmor %vm2726_vm4, %vm2727_vm3  ;;  %vm1050_vm9 = vweird.f32 %v5626_v35 }
 0x255   : > { %v2825_v52 = vmul.f32 %v2719_v29, %v2633_v24  ;;  %v2722_v47 = vmul.f32 %v3756_v28, %v2721_v42  ;;  %v1068_v24 = vadd.f32 0.05243302, %v1067_v58  ;;  %v2880_v42 = vld [vmem:[%s6732_s9 + $0x30] sm:$0xff]  ;;  %v1221_v58 = vmul.f32 %v5634_v57, %v5634_v57  ;;  %vm5699_vm13 = vmor %vm1049_vm11, %vm1050_vm9 }
 0x256   : > { %v5601_v27 = vmul.f32 0.70710677, %v5589_v55  ;;  %v5610_v18 = vmin.f32 %v1141_v44, 16.0 }
 0x257   : > { %v2844_v22 = vmul.f32 %v5453_v38, %v2825_v52  ;;  %v2723_v21 = vmul.f32 0.5, %v2722_v47  ;;  %v1104_v52 = vadd.f32 0.00028619796, %v1103_v62  ;;  %v1069_v59 = vmul.f32 %v1068_v24, %v5551_v46 }
 0x258   : > { %v1181_v0 = vmul.f32 %v5601_v27, %v5601_v27  ;;  %v1143_v60 = vmul.f32 2.1237322e-06, %v5610_v18 }
 0x259   : > { %v2863_v8 = vadd.f32 %v5461_v48, %v2844_v22  ;;  %v2724_v1 = vsub.f32 1.5, %v2723_v21  ;;  %v1030_v22 = vadd.f32 0.18741608, %v1029_v5 }
 0x25a   : > { %v2499_v36 = vpop.xlane.xlu0 %2498  ;;  %v5629_v47 = vmin.f32 %v1181_v0, 16.0 }
 0x25b   : > { %3025 = vmatpush.msrb.mxu3 %v2863_v8  ;;  %v2725_v14 = vmul.f32 %v3756_v28, %v2724_v1  ;;  %v5596_v56 = vmul.f32 0.0078125, %v2499_v36  ;;  %v1045_v8 = vmul.f32 %v5626_v35, %v5591_v63  ;;  %v1144_v1 = vadd.f32 0.00028619796, %v1143_v60 }
 0x25c   : > { %3567 = vmatmul.msk.f32.vlgmr.msrb.gmra.mxu3 %vm2891_vm5, %v2879_v11  ;;  %v2547_v43 = vpop.xlane.xlu2 %2546  ;;  %v1105_v11 = vmul.f32 %v1104_v52, %v5594_v40  ;;  %v1183_v36 = vmul.f32 2.1237322e-06, %v5629_v47 }
 0x25d   : > { %v2729_v53 = vsel %vm2728_vm6, %v3756_v28, %v2725_v14  ;;  %v2603_v19 = vmul.f32 %v5596_v56, %v5596_v56  ;;  %v2587_v31 = vmul.f32 0.0078125, %v2547_v43  ;;  %v1070_v43 = vadd.f32 0.18741608, %v1069_v59 }
 0x25e   : > { %v2826_v17 = vmul.f32 %v2729_v53, %v2634_v15  ;;  %v1031_v15 = vmul.f32 %v1030_v22, %v5497_v33  ;;  %v5648_v53 = vadd.f32 %v5423_v41, %v959_v61  ;;  %v1106_v62 = vadd.f32 0.0036580483, %v1105_v11 }
 0x25f   : > { %v2619_v30 = vsub.f32 %v2587_v31, %v2603_v19  ;;  %v1184_v0 = vadd.f32 0.00028619796, %v1183_v36  ;;  %v5655_v33 = vmul.f32 0.5, %v5445_v37  ;;  %v5666_v22 = vmul.f32 0.5, %v5523_v6  ;;  %v965_v6 = vpop.f32.mrf.mxu0 }
 0x260   : > { %v2845_v45 = vmul.f32 %v5453_v38, %v2826_v17  ;;  %v1046_v17 = vsub.f32 1.0, %v1045_v8  ;;  %v1032_v24 = vadd.f32 1.1283791, %v1031_v15  ;;  %v5661_v61 = vmul.f32 0.70710677, %v5648_v53 }
 0x261   : > { %v5616_v28 = vadd.f32 1e-05, %v2619_v30  ;;  %v1145_v30 = vmul.f32 %v1144_v1, %v5610_v18  ;;  %6809 = vst [vmem:[#allocation17_spill] sm:$0xff] %v5666_v22  ;;  %v5669_v59 = vmul.f32 0.5, %v5559_v49  ;;  %v1107_v37 = vmul.f32 %v1106_v62, %v5594_v40 }
 0x262   : > { %v2864_v29 = vadd.f32 %v5461_v48, %v2845_v45  ;;  %v1047_v60 = vmul.f32 %v5626_v35, %v1046_v17  ;;  %v1185_v8 = vmul.f32 %v1184_v0, %v5629_v47  ;;  %v1053_v1 = vand.u32 2147483647, %v5591_v63 }
 0x263   : > { %3759 = vrsqrt.f32 %v5616_v28  ;;  %6810 = vst [vmem:[#allocation18_spill] sm:$0xff] %v5669_v59  ;;  %v1055_v36 = vand.u32 2147483648, %v5591_v63  ;;  %v1261_v49 = vmul.f32 %v5661_v61, %v5661_v61  ;;  %vm2736_vm8 = vweird.f32 %v5616_v28 }
 0x264   : > { %3048 = vmatpush.msra.mxu2 %v2864_v29  ;;  %v1071_v29 = vmul.f32 %v1070_v43, %v5551_v46  ;;  %v1048_v43 = vadd.f32 %v5626_v35, %v1047_v60  ;;  %v1186_v17 = vadd.f32 0.0036580483, %v1185_v8  ;;  %v5690_v62 = vadd.f32 %v5423_v41, %v962_v2 }
 0x265   : > { %v2501_v10 = vpop.xlane.xlu0 %2500  ;;  %3568 = vmatmul.msk.f32.vlgmr.msra.gmra.mxu2 %vm2891_vm5, %v2880_v42  ;;  %v5658_v42 = vmin.f32 %v1221_v58, 16.0  ;;  %v2635_v58 = vsub.f32 %v5201_v20, %v5596_v56  ;;  %vm5693_vm12 = vcmp.eq.f32.partialorder %v1053_v1, 8.507059e+37 }
 0x266   : > { %v5636_v21 = vmul.f32 0.0078125, %v2501_v10  ;;  %v1146_v10 = vadd.f32 0.0036580483, %v1145_v30  ;;  %6811 = vst [vmem:[#allocation19_spill] sm:$0xff] %v5690_v62 }
 0x267   : > { %v2549_v54 = vpop.xlane.xlu2 %2548 }
 0x268   : > { %v2604_v14 = vmul.f32 %v5636_v21, %v5636_v21  ;;  %v2588_v34 = vmul.f32 0.0078125, %v2549_v54  ;;  %v5674_v54 = vmul.f32 %v1032_v24, %v5467_v4  ;;  %v1108_v4 = vadd.f32 0.05243302, %v1107_v37 }
 0x269   : > { %v3760_v44 = vpop.eup %3759 }
 0x26a   : > { %v2731_v19 = vmul.f32 %v3760_v44, %v5616_v28  ;;  %v2620_v31 = vsub.f32 %v2588_v34, %v2604_v14  ;;  %vm2737_vm7 = vweird.f32 %v3760_v44  ;;  %v1072_v14 = vadd.f32 1.1283791, %v1071_v29 }
 0x26b   : > { %v1223_v34 = vmul.f32 2.1237322e-06, %v5658_v42  ;;  %vm2738_vm10 = vmor %vm2736_vm8, %vm2737_vm7  ;;  %v1052_v29 = vsel %vm5699_vm13, %v5626_v35, %v1048_v43 }
 0x26c   : > { %v2732_v45 = vmul.f32 %v3760_v44, %v2731_v19  ;;  %v5652_v5 = vadd.f32 1e-05, %v2620_v31  ;;  %v1147_v31 = vmul.f32 %v1146_v10, %v5610_v18  ;;  %v5704_v24 = vmul.f32 %v1072_v14, %v5534_v7 }
 0x26d   : > { %v1224_v2 = vadd.f32 0.00028619796, %v1223_v34  ;;  %v1109_v10 = vmul.f32 %v1108_v4, %v5594_v40  ;;  %v1187_v7 = vmul.f32 %v1186_v17, %v5629_v47  ;;  %v968_v17 = vpop.f32.mrf.mxu0 }
 0x26e   : > { %v2733_v52 = vmul.f32 0.5, %v2732_v45  ;;  %3761 = vrsqrt.f32 %v5652_v5  ;;  %v1056_v45 = vor.u32 1.1754944e-38, %v1055_v36  ;;  %v1148_v8 = vadd.f32 0.05243302, %v1147_v31 }
 0x26f   : > { %v5721_v36 = vadd.f32 %v5423_v41, %v965_v6  ;;  %v1225_v43 = vmul.f32 %v1224_v2, %v5658_v42  ;;  %v2881_v6 = vld [vmem:[%s6732_s9 + $0x38] sm:$0xff]  ;;  %v1188_v56 = vadd.f32 0.05243302, %v1187_v7  ;;  %vm2746_vm15 = vweird.f32 %v5652_v5 }
 0x270   : > { %v2734_v11 = vsub.f32 1.5, %v2733_v52  ;;  %v1057_v31 = vsel %vm5693_vm12, %v1056_v45, %v1052_v29 }
 0x271   : > { %6816 = vst [vmem:[#allocation20_spill] sm:$0xff] %v5721_v36  ;;  %v1226_v45 = vadd.f32 0.0036580483, %v1225_v43 }
 0x272   : > { %v2735_v15 = vmul.f32 %v3760_v44, %v2734_v11  ;;  %v5718_v11 = vmul.f32 0.70710677, %v5690_v62 }
 0x274   : > { %v5686_v19 = vpop.eup %3761  ;;  %v2739_v30 = vsel %vm2738_vm10, %v3760_v44, %v2735_v15  ;;  %v5706_v44 = vmin.f32 %v1261_v49, 16.0  ;;  %v5726_v15 = vmul.f32 0.5, %v5573_v3  ;;  %v1110_v3 = vadd.f32 0.18741608, %v1109_v10 }
 0x275   : > { %v2741_v0 = vmul.f32 %v5686_v19, %v5652_v5  ;;  %v2827_v20 = vmul.f32 %v2739_v30, %v2635_v58  ;;  %vm2747_vm14 = vweird.f32 %v5686_v19  ;;  %v1301_v2 = vmul.f32 %v5718_v11, %v5718_v11 }
 0x276   : > { %v2503_v63 = vpop.xlane.xlu1 %2502  ;;  %6817 = vst [vmem:[#allocation21_spill] sm:$0xff] %v5726_v15  ;;  %v1263_v4 = vmul.f32 2.1237322e-06, %v5706_v44  ;;  %v2636_v10 = vsub.f32 %v5267_v13, %v5636_v21  ;;  %vm2748_vm0 = vmor %vm2746_vm15, %vm2747_vm14  ;;  %v5763_v13 = vmul.f32 %v1057_v31, %v5674_v54  ;;  %v5778_v54 = vmul.f32 0.5, %v5589_v55 }
 0x277   : > { %v2742_v52 = vmul.f32 %v5686_v19, %v2741_v0  ;;  %v5712_v60 = vmul.f32 0.0078125, %v2503_v63  ;;  %v2846_v37 = vmul.f32 %v5453_v38, %v2827_v20  ;;  %v1149_v20 = vmul.f32 %v1148_v8, %v5610_v18 }
 0x278   : > { %v2551_v1 = vpop.xlane.xlu0 %2550  ;;  %v5741_v63 = vmul.f32 0.70710677, %v5721_v36  ;;  %v1264_v29 = vadd.f32 0.00028619796, %v1263_v4  ;;  %6819 = vst [vmem:[#allocation23_spill] sm:$0xff] %v5778_v54 }
 0x279   : > { %v2743_v14 = vmul.f32 0.5, %v2742_v52  ;;  %v2605_v35 = vmul.f32 %v5712_v60, %v5712_v60  ;;  %v2589_v34 = vmul.f32 0.0078125, %v2551_v1  ;;  %v2553_v49 = vpop.xlane.xlu2 %2552  ;;  %v2865_v58 = vadd.f32 %v5461_v48, %v2846_v37 }
 0x27a   : > { %v5749_v37 = vadd.f32 %v5423_v41, %v968_v17  ;;  %v2590_v1 = vmul.f32 0.0078125, %v2553_v49  ;;  %v1341_v21 = vmul.f32 %v5741_v63, %v5741_v63  ;;  %v1189_v49 = vmul.f32 %v1188_v56, %v5629_v47 }
 0x27b   : > { %v2744_v30 = vsub.f32 1.5, %v2743_v14  ;;  %v2621_v0 = vsub.f32 %v2589_v34, %v2605_v35  ;;  %3071 = vmatpush.msra.mxu3 %v2865_v58  ;;  %v1111_v14 = vmul.f32 %v1110_v3, %v5594_v40  ;;  %v1150_v35 = vadd.f32 0.18741608, %v1149_v20 }
 0x27c   : > { %3569 = vmatmul.msk.f32.vlgmr.msra.gmra.mxu3 %vm2891_vm5, %v2881_v6  ;;  %6818 = vst [vmem:[#allocation22_spill] sm:$0xff] %v5749_v37  ;;  %v5760_v34 = vmin.f32 %v1301_v2, 16.0  ;;  %v1227_v6 = vmul.f32 %v1226_v45, %v5658_v42  ;;  %v5774_v17 = vmul.f32 0.70710677, %v5749_v37  ;;  %v1265_v31 = vmul.f32 %v1264_v29, %v5706_v44  ;;  %v2882_v45 = vld [vmem:[%s6732_s9 + $0x40] sm:$0xff] }
 0x27d   : > { %v2745_v52 = vmul.f32 %v5686_v19, %v2744_v30  ;;  %v5745_v28 = vadd.f32 1e-05, %v2621_v0  ;;  %v1112_v20 = vadd.f32 1.1283791, %v1111_v14  ;;  %v1151_v2 = vmul.f32 %v1150_v35, %v5610_v18 }
 0x27e   : > { %v2505_v8 = vpop.xlane.xlu1 %2504  ;;  %v1303_v56 = vmul.f32 2.1237322e-06, %v5760_v34  ;;  %v1228_v14 = vadd.f32 0.05243302, %v1227_v6  ;;  %v1381_v35 = vmul.f32 %v5774_v17, %v5774_v17 }
 0x27f   : > { %v2749_v7 = vsel %vm2748_vm0, %v5686_v19, %v2745_v52  ;;  %3763 = vrsqrt.f32 %v5745_v28  ;;  %v5757_v5 = vmul.f32 0.0078125, %v2505_v8  ;;  %v5789_v8 = vmin.f32 %v1341_v21, 16.0 }
 0x280   : > { %v2507_v41 = vpop.xlane.xlu0 %2506  ;;  %v2828_v43 = vmul.f32 %v2749_v7, %v2636_v10  ;;  %v1074_v7 = vmul.f32 3.8918573e-05, %v5551_v46  ;;  %v1304_v6 = vadd.f32 0.00028619796, %v1303_v56  ;;  %v5811_v15 = vmin.f32 %v1381_v35, 16.0 }
 0x281   : > { %v2606_v19 = vmul.f32 %v5757_v5, %v5757_v5  ;;  %v5769_v4 = vmul.f32 0.0078125, %v2507_v41  ;;  %v2509_v58 = vpop.xlane.xlu2 %2508  ;;  %vm2756_vm2 = vweird.f32 %v5745_v28 }
 0x282   : > { %v2847_v30 = vmul.f32 %v5453_v38, %v2828_v43  ;;  %v5781_v3 = vmul.f32 0.0078125, %v2509_v58  ;;  %v1075_v62 = vadd.f32 0.001143296, %v1074_v7  ;;  %v1394_v35 = vmul.f32 3.8918573e-05, %v5811_v15 }
 0x283   : > { %v2622_v0 = vsub.f32 %v2590_v1, %v2606_v19  ;;  %v2607_v29 = vmul.f32 %v5769_v4, %v5769_v4  ;;  %v1190_v1 = vadd.f32 0.18741608, %v1189_v49  ;;  %v1266_v19 = vadd.f32 0.0036580483, %v1265_v31 }
 0x284   : > { %v2866_v52 = vadd.f32 %v5461_v48, %v2847_v30  ;;  %v2608_v58 = vmul.f32 %v5781_v3, %v5781_v3  ;;  %v5804_v30 = vmul.f32 %v1112_v20, %v5569_v16  ;;  %v5807_v49 = vmul.f32 0.5, %v5619_v25 }
 0x285   : > { %v3764_v10 = vpop.eup %3763  ;;  %v5791_v55 = vadd.f32 1e-05, %v2622_v0  ;;  %v1191_v54 = vmul.f32 %v1190_v1, %v5629_v47  ;;  %v1229_v16 = vmul.f32 %v1228_v14, %v5658_v42  ;;  %v1267_v20 = vmul.f32 %v1266_v19, %v5706_v44 }
 0x286   : > { %v2751_v41 = vmul.f32 %v3764_v10, %v5745_v28  ;;  %v2555_v43 = vpop.xlane.xlu1 %2554  ;;  %3094 = vmatpush.msrb.mxu2 %v2866_v52  ;;  %6820 = vst [vmem:[#allocation24_spill] sm:$0xff] %v5804_v30  ;;  %v1343_v52 = vmul.f32 2.1237322e-06, %v5789_v8  ;;  %vm2757_vm1 = vweird.f32 %v3764_v10  ;;  %v1076_v14 = vmul.f32 %v1075_v62, %v5551_v46 }
 0x287   : > { %3765 = vrsqrt.f32 %v5791_v55  ;;  %v2591_v21 = vmul.f32 0.0078125, %v2555_v43  ;;  %3570 = vmatmul.msk.f32.vlgmr.msrb.gmra.mxu2 %vm2891_vm5, %v2882_v45  ;;  %6821 = vst [vmem:[#allocation25_spill] sm:$0xff] %v5807_v49  ;;  %v1152_v43 = vadd.f32 1.1283791, %v1151_v2  ;;  %vm2758_vm3 = vmor %vm2756_vm2, %vm2757_vm1  ;;  %vm2766_vm6 = vweird.f32 %v5791_v55 }
 0x288   : > { %v2752_v0 = vmul.f32 %v3764_v10, %v2751_v41  ;;  %v2557_v37 = vpop.xlane.xlu0 %2556  ;;  %v1305_v41 = vmul.f32 %v1304_v6, %v5760_v34  ;;  %v1344_v7 = vadd.f32 0.00028619796, %v1343_v52  ;;  %v5831_v52 = vadd.f32 1.1283791, %v1191_v54 }
 0x289   : > { %v2623_v31 = vsub.f32 %v2591_v21, %v2607_v29  ;;  %v2592_v36 = vmul.f32 0.0078125, %v2557_v37  ;;  %v2559_v29 = vpop.xlane.xlu2 %2558  ;;  %v1114_v37 = vmul.f32 3.8918573e-05, %v5594_v40  ;;  %v1077_v59 = vadd.f32 0.014752088, %v1076_v14 }
 0x28a   : > { %v2753_v45 = vmul.f32 0.5, %v2752_v0  ;;  %v2593_v0 = vmul.f32 0.0078125, %v2559_v29 }
 0x28b   : > { %v5815_v25 = vadd.f32 1e-05, %v2623_v31  ;;  %v2624_v56 = vsub.f32 %v2592_v36, %v2608_v58  ;;  %v2637_v58 = vsub.f32 %v5337_v51, %v5712_v60  ;;  %v5838_v51 = vmul.f32 %v1152_v43, %v5586_v50 }
 0x28c   : > { %v2754_v49 = vsub.f32 1.5, %v2753_v45  ;;  %v1115_v45 = vadd.f32 0.001143296, %v1114_v37  ;;  %v5840_v60 = vadd.f32 0.05243302, %v1267_v20 }
 0x28d   : > { %v3766_v2 = vpop.eup %3765  ;;  %3767 = vrsqrt.f32 %v5815_v25  ;;  %v5820_v1 = vadd.f32 1e-05, %v2624_v56  ;;  %6822 = vst [vmem:[#allocation26_spill] sm:$0xff] %v5838_v51  ;;  %vm2776_vm9 = vweird.f32 %v5815_v25 }
 0x28e   : > { %v2755_v19 = vmul.f32 %v3764_v10, %v2754_v49  ;;  %v2761_v36 = vmul.f32 %v3766_v2, %v5791_v55  ;;  %v2511_v21 = vpop.xlane.xlu1 %2510  ;;  %v5833_v49 = vadd.f32 0.18741608, %v1229_v16  ;;  %v1395_v16 = vadd.f32 0.001143296, %v1394_v35 }
 0x28f   : > { %3769 = vrsqrt.f32 %v5820_v1  ;;  %v5829_v6 = vmul.f32 0.0078125, %v2511_v21  ;;  %v5842_v21 = vadd.f32 0.0036580483, %v1305_v41  ;;  %vm2767_vm4 = vweird.f32 %v3766_v2 }
 0x290   : > { %v2759_v62 = vsel %vm2758_vm3, %v3764_v10, %v2755_v19  ;;  %v2762_v31 = vmul.f32 %v3766_v2, %v2761_v36  ;;  %v5847_v10 = vmul.f32 %v1344_v7, %v5789_v8  ;;  %v1116_v20 = vmul.f32 %v1115_v45, %v5594_v40  ;;  %v2883_v7 = vld [vmem:[%s6732_s9 + $0x48] sm:$0xff]  ;;  %vm2768_vm7 = vmor %vm2766_vm6, %vm2767_vm4 }
 0x291   : > { %v2609_v28 = vmul.f32 %v5829_v6, %v5829_v6  ;;  %v2829_v56 = vmul.f32 %v2759_v62, %v2637_v58  ;;  %v1396_v30 = vmul.f32 %v1395_v16, %v5811_v15  ;;  %vm2786_vm12 = vweird.f32 %v5820_v1 }
 0x292   : > { %v2763_v29 = vmul.f32 0.5, %v2762_v31 }
 0x293   : > { %v5844_v54 = vpop.eup %3767  ;;  %v2848_v37 = vmul.f32 %v5453_v38, %v2829_v56  ;;  %v2625_v19 = vsub.f32 %v2593_v0, %v2609_v28  ;;  %v1078_v0 = vmul.f32 %v1077_v59, %v5551_v46  ;;  %v2638_v56 = vsub.f32 %v5340_v9, %v5757_v5 }
 0x294   : > { %v2764_v36 = vsub.f32 1.5, %v2763_v29  ;;  %v2771_v50 = vmul.f32 %v5844_v54, %v5815_v25  ;;  %v2513_v43 = vpop.xlane.xlu0 %2512  ;;  %v1154_v29 = vmul.f32 3.8918573e-05, %v5610_v18  ;;  %vm2777_vm8 = vweird.f32 %v5844_v54  ;;  %v2884_v25 = vld [vmem:[%s6732_s9 + $0x50] sm:$0xff] }
 0x295   : > { %v5853_v41 = vpop.eup %3769  ;;  %v2867_v14 = vadd.f32 %v5461_v48, %v2848_v37  ;;  %v5856_v58 = vadd.f32 1e-05, %v2625_v19  ;;  %v5861_v35 = vmul.f32 0.0078125, %v2513_v43  ;;  %v1079_v5 = vadd.f32 0.112945676, %v1078_v0  ;;  %vm2778_vm11 = vmor %vm2776_vm9, %vm2777_vm8 }
 0x296   : > { %v2765_v62 = vmul.f32 %v3766_v2, %v2764_v36  ;;  %v2772_v31 = vmul.f32 %v5844_v54, %v2771_v50  ;;  %v2781_v45 = vmul.f32 %v5853_v41, %v5820_v1  ;;  %v2561_v28 = vpop.xlane.xlu1 %2560  ;;  %v1383_v50 = vmul.f32 2.1237322e-06, %v5811_v15 }
 0x297   : > { %3117 = vmatpush.msrb.mxu3 %v2867_v14  ;;  %3771 = vrsqrt.f32 %v5856_v58  ;;  %v2610_v59 = vmul.f32 %v5861_v35, %v5861_v35  ;;  %v2594_v36 = vmul.f32 0.0078125, %v2561_v28  ;;  %v1117_v43 = vadd.f32 0.014752088, %v1116_v20 }
 0x298   : > { %v2769_v55 = vsel %vm2768_vm7, %v3766_v2, %v2765_v62  ;;  %v2773_v37 = vmul.f32 0.5, %v2772_v31  ;;  %v2782_v19 = vmul.f32 %v5853_v41, %v2781_v45  ;;  %3571 = vmatmul.msk.f32.vlgmr.msrb.gmra.mxu3 %vm2891_vm5, %v2883_v7  ;;  %v1155_v62 = vadd.f32 0.001143296, %v1154_v29 }
 0x299   : > { %v2830_v9 = vmul.f32 %v2769_v55, %v2638_v56  ;;  %v2626_v22 = vsub.f32 %v2594_v36, %v2610_v59  ;;  %vm2787_vm10 = vweird.f32 %v5853_v41  ;;  %v2639_v0 = vsub.f32 %v5358_v26, %v5769_v4 }
 0x29a   : > { %v2774_v14 = vsub.f32 1.5, %v2773_v37  ;;  %v2783_v51 = vmul.f32 0.5, %v2782_v19  ;;  %v1080_v28 = vmul.f32 %v1079_v5, %v5551_v46  ;;  %v2640_v4 = vsub.f32 %v5364_v23, %v5781_v3  ;;  %vm2788_vm13 = vmor %vm2786_vm12, %vm2787_vm10 }
 0x29b   : > { %v2849_v2 = vmul.f32 %v5453_v38, %v2830_v9  ;;  %v5884_v45 = vadd.f32 1e-05, %v2626_v22  ;;  %v1156_v29 = vmul.f32 %v1155_v62, %v5610_v18  ;;  %v1384_v55 = vadd.f32 0.00028619796, %v1383_v50 }
 0x29c   : > { %v2775_v7 = vmul.f32 %v5844_v54, %v2774_v14  ;;  %v2784_v31 = vsub.f32 1.5, %v2783_v51  ;;  %v1118_v51 = vmul.f32 %v1117_v43, %v5594_v40  ;;  %v1194_v1 = vmul.f32 3.8918573e-05, %v5629_v47 }
 0x29d   : > { %v5886_v20 = vpop.eup %3771  ;;  %v2868_v16 = vadd.f32 %v5461_v48, %v2849_v2  ;;  %3773 = vrsqrt.f32 %v5884_v45  ;;  %v1346_v19 = vadd.f32 0.0036580483, %v5847_v10  ;;  %v1397_v36 = vadd.f32 0.014752088, %v1396_v30  ;;  %v2885_v10 = vld [vmem:[%s6732_s9 + $0x58] sm:$0xff] }
 0x29e   : > { %v2779_v56 = vsel %vm2778_vm11, %v5844_v54, %v2775_v7  ;;  %v2785_v22 = vmul.f32 %v5853_v41, %v2784_v31  ;;  %v2791_v26 = vmul.f32 %v5886_v20, %v5856_v58  ;;  %v5913_v9 = vmul.f32 %v5833_v49, %v5658_v42 }
 0x29f   : > { %3140 = vmatpush.msra.mxu2 %v2868_v16  ;;  %v2831_v59 = vmul.f32 %v2779_v56, %v2639_v0  ;;  %v1081_v43 = vadd.f32 0.4994258, %v1080_v28  ;;  %v1157_v62 = vadd.f32 0.014752088, %v1156_v29  ;;  %v1385_v7 = vmul.f32 %v1384_v55, %v5811_v15 }
 0x2a0   : > { %v2789_v54 = vsel %vm2788_vm13, %v5853_v41, %v2785_v22  ;;  %v2792_v37 = vmul.f32 %v5886_v20, %v2791_v26  ;;  %3572 = vmatmul.msk.f32.vlgmr.msra.gmra.mxu2 %vm2891_vm5, %v2884_v25  ;;  %v1119_v41 = vadd.f32 0.112945676, %v1118_v51  ;;  %vm2797_vm14 = vweird.f32 %v5886_v20 }
 0x2a1   : > { %v2850_v23 = vmul.f32 %v5453_v38, %v2831_v59  ;;  %v2832_v3 = vmul.f32 %v2789_v54, %v2640_v4  ;;  %v2515_v50 = vpop.xlane.xlu2 %2514  ;;  %v1195_v0 = vadd.f32 0.001143296, %v1194_v1  ;;  %v1398_v25 = vmul.f32 %v1397_v36, %v5811_v15 }
 0x2a2   : > { %v2793_v5 = vmul.f32 0.5, %v2792_v37  ;;  %v5915_v14 = vmul.f32 0.0078125, %v2515_v50  ;;  %vm2796_vm15 = vweird.f32 %v5856_v58  ;;  %v1082_v4 = vmul.f32 %v1081_v43, %v5551_v46 }
 0x2a3   : > { %v2869_v2 = vadd.f32 %v5461_v48, %v2850_v23  ;;  %v2851_v30 = vmul.f32 %v5453_v38, %v2832_v3  ;;  %v2563_v49 = vpop.xlane.xlu0 %2562  ;;  %v5924_v16 = vpop.eup %3773  ;;  %v2886_v38 = vld [vmem:[%s6732_s9 + $0x60] sm:$0xff]  ;;  %v2641_v59 = vsub.f32 %v5377_v39, %v5829_v6  ;;  %vm2798_vm0 = vmor %vm2796_vm15, %vm2797_vm14  ;;  %v1120_v29 = vmul.f32 %v1119_v41, %v5594_v40 }
 0x2a4   : > { %v2794_v31 = vsub.f32 1.5, %v2793_v5  ;;  %v2611_v28 = vmul.f32 %v5915_v14, %v5915_v14  ;;  %v2595_v51 = vmul.f32 0.0078125, %v2563_v49  ;;  %v2801_v26 = vmul.f32 %v5924_v16, %v5884_v45  ;;  %v971_v5 = vpop.f32.mrf.mxu0  ;;  %v5976_v49 = vld [vmem:[%s6731_s8] ss:$0 sm:$0xff] }
 0x2a5   : > { %3163 = vmatpush.msra.mxu3 %v2869_v2  ;;  %v2870_v56 = vadd.f32 %v5461_v48, %v2851_v30  ;;  %v1158_v55 = vmul.f32 %v1157_v62, %v5610_v18  ;;  %v1307_v58 = vmul.f32 %v5842_v21, %v5760_v34  ;;  %v1196_v39 = vmul.f32 %v1195_v0, %v5629_v47 }
 0x2a6   : > { %v2795_v22 = vmul.f32 %v5886_v20, %v2794_v31  ;;  %3573 = vmatmul.msk.f32.vlgmr.msra.gmra.mxu3 %vm2891_vm5, %v2885_v10  ;;  %v2627_v48 = vsub.f32 %v2595_v51, %v2611_v28  ;;  %v2802_v37 = vmul.f32 %v5924_v16, %v2801_v26  ;;  %v1347_v46 = vmul.f32 %v1346_v19, %v5789_v8 }
 0x2a7   : > { %3186 = vmatpush.msrb.mxu2 %v2870_v56  ;;  %v1234_v36 = vmul.f32 3.8918573e-05, %v5658_v42  ;;  %v1386_v23 = vadd.f32 0.0036580483, %v1385_v7  ;;  %v1399_v3 = vadd.f32 0.112945676, %v1398_v25  ;;  %vm2807_vm1 = vweird.f32 %v5924_v16 }
 0x2a8   : > { %v2799_v54 = vsel %vm2798_vm0, %v5886_v20, %v2795_v22  ;;  %3574 = vmatmul.msk.f32.vlgmr.msrb.gmra.mxu2 %vm2891_vm5, %v2886_v38  ;;  %v5952_v6 = vadd.f32 1e-05, %v2627_v48  ;;  %v2803_v50 = vmul.f32 0.5, %v2802_v37  ;;  %v5955_v21 = vadd.f32 1.0, %v1082_v4  ;;  %v5961_v20 = vld [vmem:[%s6730_s7] ss:$0 sm:$0xff] }
 0x2a9   : > { %v2833_v1 = vmul.f32 %v2799_v54, %v2641_v59  ;;  %v1121_v43 = vadd.f32 0.4994258, %v1120_v29  ;;  %v1159_v41 = vadd.f32 0.112945676, %v1158_v55  ;;  %v1308_v2 = vadd.f32 0.05243302, %v1307_v58 }
 0x2aa   : > { %3775 = vrsqrt.f32 %v5952_v6  ;;  %v2804_v10 = vsub.f32 1.5, %v2803_v50  ;;  %v1197_v30 = vadd.f32 0.014752088, %v1196_v39  ;;  %v1348_v62 = vadd.f32 0.05243302, %v1347_v46  ;;  %v2887_v25 = vld [vmem:[%s6732_s9 + $0x68] sm:$0xff] }
 0x2ab   : > { %v2852_v19 = vmul.f32 %v5961_v20, %v2833_v1  ;;  %v5968_v7 = vld [vmem:[%s6727_s4] ss:$0 sm:$0xff]  ;;  %v1235_v28 = vadd.f32 0.001143296, %v1234_v36  ;;  %v1400_v51 = vmul.f32 %v1399_v3, %v5811_v15  ;;  %vm2806_vm2 = vweird.f32 %v5884_v45 }
 0x2ac   : > { %v5971_v31 = vadd.f32 %v5968_v7, %v971_v5  ;;  %v2805_v56 = vmul.f32 %v5924_v16, %v2804_v10  ;;  %3777 = vrcp.f32 %v5955_v21  ;;  %v1387_v38 = vmul.f32 %v1386_v23, %v5811_v15  ;;  %vm2808_vm3 = vmor %vm2806_vm2, %vm2807_vm1 }
 0x2ad   : > { %v2871_v0 = vadd.f32 %v5976_v49, %v2852_v19  ;;  %v2642_v22 = vsub.f32 %v5418_v32, %v5861_v35  ;;  %v1122_v26 = vmul.f32 %v1121_v43, %v5594_v40  ;;  %v1160_v4 = vmul.f32 %v1159_v41, %v5610_v18 }
 0x2ae   : > { %v1269_v59 = vmul.f32 %v5840_v60, %v5706_v44  ;;  %v2809_v45 = vsel %vm2808_vm3, %v5924_v16, %v2805_v56  ;;  %v1198_v48 = vmul.f32 %v1197_v30, %v5629_v47  ;;  %v1274_v29 = vmul.f32 3.8918573e-05, %v5706_v44 }
 0x2af   : > { %3209 = vmatpush.msrb.mxu3 %v2871_v0  ;;  %v6002_v35 = vadd.f32 1.1283791, %v5913_v9  ;;  %v1309_v40 = vmul.f32 %v1308_v2, %v5760_v34  ;;  %v2834_v55 = vmul.f32 %v2809_v45, %v2642_v22  ;;  %v1236_v58 = vmul.f32 %v1235_v28, %v5658_v42  ;;  %v2888_v2 = vld [vmem:[%s6732_s9 + $0x70] sm:$0xff]  ;;  %v6029_v28 = vld [vmem:[#allocation7 + $0x78] sm:$0xff]  ;;  %v974_v45 = vpop.f32.mrf.mxu0 }
 0x2b0   : > { %3575 = vmatmul.msk.f32.vlgmr.msrb.gmra.mxu3 %vm2891_vm5, %v2887_v25  ;;  %v5999_v32 = vpop.eup %3775  ;;  %v1349_v60 = vmul.f32 %v1348_v62, %v5789_v8  ;;  %v1401_v54 = vadd.f32 0.4994258, %v1400_v51  ;;  %v6008_v16 = vmul.f32 0.70710677, %v5971_v31  ;;  %v1388_v39 = vadd.f32 0.05243302, %v1387_v38 }
 0x2b1   : > { %v2811_v37 = vmul.f32 %v5999_v32, %v5952_v6  ;;  %v2853_v46 = vmul.f32 %v5961_v20, %v2834_v55  ;;  %v6013_v1 = vadd.f32 1.0, %v1122_v26  ;;  %v1161_v9 = vadd.f32 0.4994258, %v1160_v4  ;;  %v6038_v38 = vld [vmem:[#allocation7 + $0x70] sm:$0xff] }
 0x2b2   : > { %v6015_v36 = vpop.eup %3777  ;;  %v1270_v23 = vadd.f32 0.18741608, %v1269_v59  ;;  %v1199_v5 = vadd.f32 0.112945676, %v1198_v48  ;;  %v1275_v50 = vadd.f32 0.001143296, %v1274_v29  ;;  %v6020_v19 = vmul.f32 %v5831_v52, %v5601_v27 }
 0x2b3   : > { %v2812_v3 = vmul.f32 %v5999_v32, %v2811_v37  ;;  %v1310_v43 = vadd.f32 0.18741608, %v1309_v40  ;;  %v2872_v41 = vadd.f32 %v5976_v49, %v2853_v46  ;;  %v1237_v10 = vadd.f32 0.014752088, %v1236_v58  ;;  %v6053_v58 = vld [vmem:[#allocation7 + $0x68] sm:$0xff] }
 0x2b4   : > { %v1350_v30 = vadd.f32 0.18741608, %v1349_v60  ;;  %v1402_v62 = vmul.f32 %v1401_v54, %v5811_v15  ;;  %v1421_v0 = vmul.f32 %v6008_v16, %v6008_v16  ;;  %v1389_v27 = vmul.f32 %v1388_v39, %v5811_v15 }
 0x2b5   : > { %v2813_v25 = vmul.f32 0.5, %v2812_v3  ;;  %3232 = vmatpush.msra.mxu2 %v2872_v41  ;;  %v1085_v52 = vmul.f32 %v6015_v36, %v5955_v21  ;;  %3779 = vrcp.f32 %v6013_v1  ;;  %v1162_v51 = vmul.f32 %v1161_v9, %v5610_v18  ;;  %v6064_v9 = vld [vmem:[#allocation7 + $0x60] sm:$0xff] }
 0x2b6   : > { %vm2817_vm4 = vweird.f32 %v5999_v32  ;;  %3576 = vmatmul.msk.f32.vlgmr.msra.gmra.mxu2 %vm2891_vm5, %v2888_v2  ;;  %v1200_v22 = vmul.f32 %v1199_v5, %v5629_v47  ;;  %v1276_v26 = vmul.f32 %v1275_v50, %v5706_v44  ;;  %v1271_v4 = vmul.f32 %v1270_v23, %v5706_v44 }
 0x2b7   : > { %v2814_v56 = vsub.f32 1.5, %v2813_v25  ;;  %v1311_v59 = vmul.f32 %v1310_v43, %v5760_v34  ;;  %3296 = vmatpush.msrb.mxu2 %v6029_v28  ;;  %v1238_v18 = vmul.f32 %v1237_v10, %v5658_v42  ;;  %v1314_v48 = vmul.f32 3.8918573e-05, %v5760_v34  ;;  %v6074_v10 = vld [vmem:[#allocation7 + $0x58] sm:$0xff]  ;;  %v6080_v25 = vld [vmem:[#allocation7 + $0x50] sm:$0xff] }
 0x2b8   : > { %v6047_v29 = vadd.f32 1.0, %v1402_v62  ;;  %v6049_v40 = vmin.f32 %v1421_v0, 16.0  ;;  %vm2816_vm6 = vweird.f32 %v5952_v6  ;;  %v1351_v60 = vmul.f32 %v1350_v30, %v5789_v8 }
 0x2b9   : > { %v2815_v55 = vmul.f32 %v5999_v32, %v2814_v56  ;;  %v1390_v54 = vadd.f32 0.18741608, %v1389_v27  ;;  %v2643_v37 = vsub.f32 %v5488_v12, %v5915_v14  ;;  %vm2818_vm7 = vmor %vm2816_vm6, %vm2817_vm4  ;;  %3297 = vmatpush.msrb.mxu2 %v6038_v38  ;;  %v6061_v39 = vadd.f32 1.0, %v1162_v51 }
 0x2ba   : > { %v1086_v6 = vsub.f32 1.0, %v1085_v52  ;;  %v1201_v23 = vadd.f32 0.4994258, %v1200_v22  ;;  %v1277_v3 = vadd.f32 0.014752088, %v1276_v26  ;;  %v6070_v41 = vmul.f32 0.5, %v5648_v53 }
 0x2bb   : > { %v2819_v46 = vsel %vm2818_vm7, %v5999_v32, %v2815_v55  ;;  %v6066_v5 = vpop.eup %3779  ;;  %v1272_v50 = vadd.f32 1.1283791, %v1271_v4  ;;  %3298 = vmatpush.msrb.mxu2 %v6053_v58  ;;  %v1239_v12 = vadd.f32 0.112945676, %v1238_v18  ;;  %v1315_v14 = vadd.f32 0.001143296, %v1314_v48 }
 0x2bc   : > { %v2835_v43 = vmul.f32 %v2819_v46, %v2643_v37  ;;  %v1312_v2 = vadd.f32 1.1283791, %v1311_v59  ;;  %3781 = vrcp.f32 %v6047_v29  ;;  %v1423_v32 = vmul.f32 2.1237322e-06, %v6049_v40  ;;  %v6105_v18 = vld [vmem:[#allocation7 + $0x48] sm:$0xff] }
 0x2bd   : > { %v1352_v30 = vadd.f32 1.1283791, %v1351_v60  ;;  %v1391_v62 = vmul.f32 %v1390_v54, %v5811_v15  ;;  %3299 = vmatpush.msrb.mxu2 %v6064_v9  ;;  %3783 = vrcp.f32 %v6061_v39  ;;  %v1087_v53 = vmul.f32 %v6015_v36, %v1086_v6  ;;  %v2889_v15 = vld [vmem:[%s6732_s9 + $0x78] sm:$0xff]  ;;  %v977_v54 = vpop.f32.mrf.mxu0 }
 0x2be   : > { %v2854_v0 = vmul.f32 %v5961_v20, %v2835_v43  ;;  %v1125_v27 = vmul.f32 %v6066_v5, %v6013_v1  ;;  %v1202_v52 = vmul.f32 %v1201_v23, %v5629_v47  ;;  %v1278_v51 = vmul.f32 %v1277_v3, %v5706_v44 }
 0x2bf   : > { %3300 = vmatpush.msrb.mxu2 %v6074_v10  ;;  %v1240_v20 = vmul.f32 %v1239_v12, %v5658_v42  ;;  %v1316_v22 = vmul.f32 %v1315_v14, %v5760_v34  ;;  %v1354_v26 = vmul.f32 3.8918573e-05, %v5789_v8  ;;  %v6097_v4 = vmul.f32 %v6002_v35, %v5634_v57  ;;  %v6130_v14 = vld [vmem:[#allocation7 + $0x38] sm:$0xff] }
 0x2c0   : > { %v2873_v56 = vadd.f32 %v5976_v49, %v2854_v0  ;;  %v6100_v47 = vmul.f32 %v1272_v50, %v5661_v61  ;;  %v6103_v49 = vmul.f32 %v1312_v2, %v5718_v11  ;;  %v1424_v59 = vadd.f32 0.00028619796, %v1423_v32  ;;  %v6116_v61 = vld [vmem:[#allocation7 + $0x40] sm:$0xff]  ;;  %v6151_v0 = vld [vmem:[#allocation7 + $0x30] sm:$0xff] }
 0x2c1   : > { %v1392_v48 = vadd.f32 1.1283791, %v1391_v62  ;;  %v1415_v55 = vand.u32 2147483648, %v6047_v29  ;;  %v6109_v60 = vadd.f32 %v5968_v7, %v974_v45  ;;  %3301 = vmatpush.msrb.mxu2 %v6080_v25  ;;  %vm1090_vm8 = vweird.f32 %v6015_v36 }
 0x2c2   : > { %3255 = vmatpush.msra.mxu3 %v2873_v56  ;;  %v6113_v57 = vpop.eup %3781  ;;  %v1088_v11 = vadd.f32 %v6015_v36, %v1087_v53  ;;  %v1126_v35 = vsub.f32 1.0, %v1125_v27  ;;  %v6119_v37 = vadd.f32 1.0, %v1202_v52  ;;  %v1279_v46 = vadd.f32 0.112945676, %v1278_v51 }
 0x2c3   : > { %3577 = vmatmul.msk.f32.vlgmr.msra.gmra.mxu3 %vm2891_vm5, %v2889_v15  ;;  %v6121_v45 = vpop.eup %3783  ;;  %v6124_v6 = vmul.f32 %v1352_v30, %v5741_v63  ;;  %3302 = vmatpush.msrb.mxu2 %v6105_v18  ;;  %v1241_v23 = vadd.f32 0.4994258, %v1240_v20  ;;  %v1317_v3 = vadd.f32 0.014752088, %v1316_v22  ;;  %v1355_v50 = vadd.f32 0.001143296, %v1354_v26 }
 0x2c4   : > { %3585 = vmatpush.msrb.mxu3 %v6029_v28  ;;  %v1413_v43 = vand.u32 2147483647, %v6047_v29  ;;  %v1425_v12 = vmul.f32 %v1424_v59, %v6049_v40  ;;  %vm1089_vm5 = vweird.f32 %v5955_v21  ;;  %v1095_v2 = vand.u32 2147483648, %v5955_v21  ;;  %v6171_v20 = vld [vmem:[#allocation7 + $0x28] sm:$0xff]  ;;  %v6179_v59 = vld [vmem:[#allocation7 + $0x20] sm:$0xff] }
 0x2c5   : > { %v6135_v63 = vmul.f32 %v1392_v48, %v5774_v17  ;;  %v6137_v32 = vor.u32 1.1754944e-38, %v1415_v55  ;;  %v6140_v28 = vmul.f32 0.70710677, %v6109_v60  ;;  %3303 = vmatpush.msrb.mxu2 %v6116_v61  ;;  %vm6145_vm9 = vmor %vm1089_vm5, %vm1090_vm8  ;;  %v1093_v62 = vand.u32 2147483647, %v5955_v21 }
 0x2c6   : > { %3586 = vmatpush.msrb.mxu3 %v6038_v38  ;;  %v1092_v17 = vsel %vm6145_vm9, %v6015_v36, %v1088_v11  ;;  %v1127_v53 = vmul.f32 %v6066_v5, %v1126_v35  ;;  %v1165_v27 = vmul.f32 %v6121_v45, %v6061_v39  ;;  %v1280_v52 = vmul.f32 %v1279_v46, %v5706_v44  ;;  %v980_v11 = vpop.f32.mrf.mxu0  ;;  %v2912_v35 = vpop.f32.mrf.mxu3 }
 0x2c7   : > { %3304 = vmatpush.msrb.mxu2 %v6130_v14  ;;  %3785 = vrcp.f32 %v6119_v37  ;;  %v1242_v21 = vmul.f32 %v1241_v23, %v5658_v42  ;;  %v1318_v38 = vmul.f32 %v1317_v3, %v5760_v34  ;;  %v1356_v51 = vmul.f32 %v1355_v50, %v5789_v8 }
 0x2c8   : > { %3587 = vmatpush.msrb.mxu3 %v6053_v58  ;;  %v1405_v36 = vmul.f32 %v6113_v57, %v6047_v29  ;;  %v1426_v56 = vadd.f32 0.0036580483, %v1425_v12  ;;  %v6169_v15 = vadd.f32 %v5968_v7, %v977_v54  ;;  %v1096_v22 = vor.u32 1.1754944e-38, %v1095_v2  ;;  %v6188_v12 = vld [vmem:[#allocation7 + $0x18] sm:$0xff] }
 0x2c9   : > { %v1461_v26 = vmul.f32 %v6140_v28, %v6140_v28  ;;  %3305 = vmatpush.msrb.mxu2 %v6151_v0  ;;  %v3530_v42 = vclamps-f32 %v5763_v13, 1.0  ;;  %vm1094_vm10 = vcmp.eq.f32.partialorder %v1093_v62, 8.507059e+37  ;;  %v1135_v58 = vand.u32 2147483648, %v6013_v1 }
 0x2ca   : > { %3588 = vmatpush.msrb.mxu3 %v6064_v9  ;;  %v1097_v48 = vsel %vm1094_vm10, %v1096_v22, %v1092_v17  ;;  %v1128_v55 = vadd.f32 %v6066_v5, %v1127_v53  ;;  %vm1130_vm11 = vweird.f32 %v6066_v5  ;;  %v1281_v54 = vadd.f32 0.4994258, %v1280_v52  ;;  %v6212_v52 = vld [vmem:[#allocation7 + $0x10] sm:$0xff] }
 0x2cb   : > { %3306 = vmatpush.msrb.mxu2 %v6171_v20  ;;  %v1166_v46 = vsub.f32 1.0, %v1165_v27  ;;  %v6184_v23 = vadd.f32 1.0, %v1242_v21  ;;  %v1319_v13 = vadd.f32 0.112945676, %v1318_v38  ;;  %v1357_v3 = vadd.f32 0.014752088, %v1356_v51 }
 0x2cc   : > { %3589 = vmatpush.msrb.mxu3 %v6074_v10  ;;  %v1406_v9 = vsub.f32 1.0, %v1405_v36  ;;  %v1427_v50 = vmul.f32 %v1426_v56, %v6049_v40  ;;  %vm1129_vm12 = vweird.f32 %v6013_v1  ;;  %v1133_v2 = vand.u32 2147483647, %v6013_v1  ;;  %v6202_v10 = vld [vmem:[%s6733_s10] sm:$0xff] }
 0x2cd   : > { %v6192_v30 = vpop.eup %3785  ;;  %v6194_v62 = vmin.f32 %v1461_v26, 16.0  ;;  %v6197_v17 = vmul.f32 0.70710677, %v6169_v15  ;;  %v1661_v53 = vadd.f32 1.0, %v3530_v42  ;;  %3307 = vmatpush.msrb.mxu2 %v6179_v59  ;;  %vm6207_vm13 = vmor %vm1129_vm12, %vm1130_vm11  ;;  %v1136_v1 = vor.u32 1.1754944e-38, %v1135_v58 }
 0x2ce   : > { %3590 = vmatpush.msrb.mxu3 %v6080_v25  ;;  %v1098_v21 = vmul.f32 %v1097_v48, %v5704_v24  ;;  %v1132_v38 = vsel %vm6207_vm13, %v6066_v5, %v1128_v55  ;;  %v1282_v51 = vmul.f32 %v1281_v54, %v5706_v44  ;;  %v1434_v36 = vmul.f32 3.8918573e-05, %v6049_v40  ;;  %v6230_v44 = vld [vmem:[#allocation7 + $0x8] sm:$0xff]  ;;  %v6239_v55 = vld [vmem:[#allocation7] sm:$0xff] }
 0x2cf   : > { %3308 = vmatpush.msrb.mxu2 %v6188_v12  ;;  %v1167_v56 = vmul.f32 %v6121_v45, %v1166_v46  ;;  %3787 = vrcp.f32 %v6184_v23  ;;  %v1320_v25 = vmul.f32 %v1319_v13, %v5760_v34  ;;  %v1358_v24 = vmul.f32 %v1357_v3, %v5789_v8 }
 0x2d0   : > { %3591 = vmatpush.msrb.mxu3 %v6105_v18  ;;  %v6227_v22 = vmul.f32 %v6113_v57, %v1406_v9  ;;  %v2913_v5 = vadd.f32 %v2912_v35, %v6202_v10  ;;  %vm1134_vm14 = vcmp.eq.f32.partialorder %v1133_v2, 8.507059e+37  ;;  %v1205_v26 = vmul.f32 %v6192_v30, %v6119_v37 }
 0x2d1   : > { %v1428_v42 = vadd.f32 0.05243302, %v1427_v50  ;;  %v1501_v58 = vmul.f32 %v6197_v17, %v6197_v17  ;;  %v1677_v18 = vmul.f32 %v1661_v53, %v5655_v33  ;;  %3309 = vmatpush.msrb.mxu2 %v6212_v52  ;;  %v1137_v48 = vsel %vm1134_vm14, %v1136_v1, %v1132_v38  ;;  %v983_v38 = vpop.f32.mrf.mxu0 }
 0x2d2   : > { %3592 = vmatpush.msrb.mxu3 %v6116_v61  ;;  %v3531_v54 = vclamps-f32 %v1098_v21, 1.0  ;;  %vm1170_vm15 = vweird.f32 %v6121_v45  ;;  %v6242_v35 = vadd.f32 1.0, %v1282_v51  ;;  %v1435_v46 = vadd.f32 0.001143296, %v1434_v36  ;;  %v2935_v51 = vpop.f32.mrf.mxu3 }
 0x2d3   : > { %3310 = vmatpush.msrb.mxu2 %v6230_v44  ;;  %v1168_v13 = vadd.f32 %v6121_v45, %v1167_v56  ;;  %v1321_v33 = vadd.f32 0.4994258, %v1320_v25  ;;  %v1359_v3 = vadd.f32 0.112945676, %v1358_v24  ;;  %v1474_v9 = vmul.f32 3.8918573e-05, %v6194_v62 }
 0x2d4   : > { %3593 = vmatpush.msrb.mxu3 %v6130_v14  ;;  %v1463_v61 = vmul.f32 2.1237322e-06, %v6194_v62  ;;  %v3260_v50 = vmul.f32 %v2913_v5, %v1677_v18  ;;  %v1175_v2 = vand.u32 2147483648, %v6061_v39  ;;  %v1206_v53 = vsub.f32 1.0, %v1205_v26  ;;  %v6827_v56 = vld [vmem:[#allocation24_spill] sm:$0xff]  ;;  %v6831_v24 = vld [vmem:[#allocation26_spill] sm:$0xff] }
 0x2d5   : > { %v6250_v27 = vpop.eup %3787  ;;  %v6252_v1 = vmin.f32 %v1501_v58, 16.0  ;;  %v6255_v21 = vadd.f32 %v5968_v7, %v980_v11  ;;  %3311 = vmatpush.msrb.mxu2 %v6239_v55  ;;  %vm1169_vm0 = vweird.f32 %v6061_v39  ;;  %v1173_v14 = vand.u32 2147483647, %v6061_v39 }
 0x2d6   : > { %3594 = vmatpush.msrb.mxu3 %v6151_v0  ;;  %3312 = vmatmul.f32.vlgmr.msrb.gmra.mxu2 %v3260_v50  ;;  %v1662_v36 = vadd.f32 1.0, %v3531_v54  ;;  %v1138_v25 = vmul.f32 %v1137_v48, %v6827_v56  ;;  %vm6264_vm1 = vmor %vm1169_vm0, %vm1170_vm15  ;;  %3789 = vrcp.f32 %v6242_v35  ;;  %v1436_v11 = vmul.f32 %v1435_v46, %v6049_v40 }
 0x2d7   : > { %v1172_v39 = vsel %vm6264_vm1, %v6121_v45, %v1168_v13  ;;  %v1322_v0 = vmul.f32 %v1321_v33, %v5760_v34  ;;  %v1360_v5 = vmul.f32 %v1359_v3, %v5789_v8  ;;  %v1475_v26 = vadd.f32 0.001143296, %v1474_v9  ;;  %v6830_v34 = vld [vmem:[#allocation17_spill] sm:$0xff] }
 0x2d8   : > { %3595 = vmatpush.msrb.mxu3 %v6171_v20  ;;  %v2936_v58 = vadd.f32 %v2935_v51, %v6202_v10  ;;  %v1176_v18 = vor.u32 1.1754944e-38, %v1175_v2  ;;  %v1207_v48 = vmul.f32 %v6192_v30, %v1206_v53  ;;  %v1245_v54 = vmul.f32 %v6250_v27, %v6184_v23 }
 0x2d9   : > { %v6281_v46 = vmul.f32 %v1428_v42, %v6049_v40  ;;  %v6283_v50 = vadd.f32 0.00028619796, %v1463_v61  ;;  %v6286_v45 = vmul.f32 0.70710677, %v6255_v21  ;;  %vm1174_vm2 = vcmp.eq.f32.partialorder %v1173_v14, 8.507059e+37 }
 0x2da   : > { %3596 = vmatpush.msrb.mxu3 %v6179_v59  ;;  %v1678_v20 = vmul.f32 %v1662_v36, %v6830_v34  ;;  %v3532_v13 = vclamps-f32 %v1138_v25, 1.0  ;;  %v1177_v33 = vsel %vm1174_vm2, %v1176_v18, %v1172_v39  ;;  %v1437_v3 = vadd.f32 0.014752088, %v1436_v11  ;;  %v2958_v25 = vpop.f32.mrf.mxu2 }
 0x2db   : > { %vm1210_vm3 = vweird.f32 %v6192_v30  ;;  %v6291_v9 = vadd.f32 1.0, %v1322_v0  ;;  %v1361_v42 = vadd.f32 0.4994258, %v1360_v5  ;;  %v1476_v61 = vmul.f32 %v1475_v26, %v6194_v62  ;;  %v986_v26 = vpop.f32.mrf.mxu0 }
 0x2dc   : > { %3597 = vmatpush.msrb.mxu3 %v6188_v12  ;;  %v6295_v2 = vpop.eup %3789  ;;  %v3261_v53 = vmul.f32 %v2936_v58, %v1678_v20  ;;  %v1208_v51 = vadd.f32 %v6192_v30, %v1207_v48  ;;  %v1246_v59 = vsub.f32 1.0, %v1245_v54  ;;  %v1514_v14 = vmul.f32 3.8918573e-05, %v6252_v1 }
 0x2dd   : > { %v1541_v36 = vmul.f32 %v6286_v45, %v6286_v45  ;;  %v6302_v56 = vadd.f32 %v5968_v7, %v983_v38  ;;  %v1178_v12 = vmul.f32 %v1177_v33, %v6831_v24  ;;  %v1215_v11 = vand.u32 2147483648, %v6119_v37  ;;  %v2981_v24 = vpop.f32.mrf.mxu3 }
 0x2de   : > { %3598 = vmatpush.msrb.mxu3 %v6212_v52  ;;  %3315 = vmatmul.f32.gmra.mxu2 %v3261_v53  ;;  %v1663_v39 = vadd.f32 1.0, %v3532_v13  ;;  %vm1209_vm4 = vweird.f32 %v6119_v37  ;;  %v1213_v0 = vand.u32 2147483647, %v6119_v37  ;;  %v1438_v5 = vmul.f32 %v1437_v3, %v6049_v40 }
 0x2df   : > { %vm6312_vm6 = vmor %vm1209_vm4, %vm1210_vm3  ;;  %v1285_v58 = vmul.f32 %v6295_v2, %v6242_v35  ;;  %3791 = vrcp.f32 %v6291_v9  ;;  %v1362_v52 = vmul.f32 %v1361_v42, %v5789_v8  ;;  %v1477_v18 = vadd.f32 0.014752088, %v1476_v61 }
 0x2e0   : > { %3599 = vmatpush.msrb.mxu3 %v6230_v44  ;;  %v2959_v37 = vadd.f32 %v2958_v25, %v6202_v10  ;;  %v1212_v48 = vsel %vm6312_vm6, %v6192_v30, %v1208_v51  ;;  %v1247_v54 = vmul.f32 %v6250_v27, %v1246_v59  ;;  %v1515_v34 = vadd.f32 0.001143296, %v1514_v14  ;;  %v6834_v44 = vld [vmem:[#allocation18_spill] sm:$0xff] }
 0x2e1   : > { %v6326_v20 = vmin.f32 %v1541_v36, 16.0  ;;  %v6329_v13 = vmul.f32 0.70710677, %v6302_v56  ;;  %v3533_v33 = vclamps-f32 %v1178_v12, 1.0  ;;  %v1216_v3 = vor.u32 1.1754944e-38, %v1215_v11 }
 0x2e2   : > { %3600 = vmatpush.msrb.mxu3 %v6239_v55  ;;  %v6333_v8 = vadd.f32 %v5968_v7, %v986_v26  ;;  %v1679_v42 = vmul.f32 %v1663_v39, %v6834_v44  ;;  %vm1214_vm7 = vcmp.eq.f32.partialorder %v1213_v0, 8.507059e+37  ;;  %v1439_v61 = vadd.f32 0.112945676, %v1438_v5  ;;  %v6837_v44 = vld [vmem:[#allocation21_spill] sm:$0xff] }
 0x2e3   : > { %v1217_v30 = vsel %vm1214_vm7, %v1216_v3, %v1212_v48  ;;  %v1286_v53 = vsub.f32 1.0, %v1285_v58  ;;  %v6336_v51 = vadd.f32 1.0, %v1362_v52  ;;  %v1478_v59 = vmul.f32 %v1477_v18, %v6194_v62 }
 0x2e4   : > { %v3262_v14 = vmul.f32 %v2959_v37, %v1679_v42  ;;  %v1248_v36 = vadd.f32 %v6250_v27, %v1247_v54  ;;  %vm1250_vm8 = vweird.f32 %v6250_v27  ;;  %v1516_v55 = vmul.f32 %v1515_v34, %v6252_v1 }
 0x2e5   : > { %v6342_v25 = vpop.eup %3791  ;;  %v1581_v7 = vmul.f32 %v6329_v13, %v6329_v13  ;;  %v1664_v12 = vadd.f32 1.0, %v3533_v33  ;;  %v1255_v11 = vand.u32 2147483648, %v6184_v23  ;;  %v1554_v39 = vmul.f32 3.8918573e-05, %v6326_v20 }
 0x2e6   : > { %3318 = vmatmul.f32.gmra.mxu2 %v3262_v14  ;;  %v1218_v0 = vmul.f32 %v1217_v30, %v6020_v19  ;;  %vm1249_vm5 = vweird.f32 %v6184_v23  ;;  %v1253_v5 = vand.u32 2147483647, %v6184_v23  ;;  %v1440_v26 = vmul.f32 %v1439_v61, %v6049_v40 }
 0x2e7   : > { %v6353_v38 = vmul.f32 0.70710677, %v6333_v8  ;;  %vm6355_vm9 = vmor %vm1249_vm5, %vm1250_vm8  ;;  %v1287_v52 = vmul.f32 %v6295_v2, %v1286_v53  ;;  %3793 = vrcp.f32 %v6336_v51  ;;  %v1479_v18 = vadd.f32 0.112945676, %v1478_v59 }
 0x2e8   : > { %v2982_v19 = vadd.f32 %v2981_v24, %v6202_v10  ;;  %v1252_v23 = vsel %vm6355_vm9, %v6250_v27, %v1248_v36  ;;  %v1325_v37 = vmul.f32 %v6342_v25, %v6291_v9  ;;  %v1517_v48 = vadd.f32 0.014752088, %v1516_v55  ;;  %v3004_v24 = vpop.f32.mrf.mxu2 }
 0x2e9   : > { %v1465_v54 = vmul.f32 %v6283_v50, %v6194_v62  ;;  %v6369_v34 = vmin.f32 %v1581_v7, 16.0  ;;  %v1256_v33 = vor.u32 1.1754944e-38, %v1255_v11  ;;  %v1555_v3 = vadd.f32 0.001143296, %v1554_v39 }
 0x2ea   : > { %v1680_v42 = vmul.f32 %v1664_v12, %v6837_v44  ;;  %v3534_v61 = vclamps-f32 %v1218_v0, 1.0  ;;  %vm1254_vm10 = vcmp.eq.f32.partialorder %v1253_v5, 8.507059e+37  ;;  %v1441_v30 = vadd.f32 0.4994258, %v1440_v26 }
 0x2eb   : > { %v1257_v53 = vsel %vm1254_vm10, %v1256_v33, %v1252_v23  ;;  %v1288_v59 = vadd.f32 %v6295_v2, %v1287_v52  ;;  %vm1290_vm11 = vweird.f32 %v6295_v2  ;;  %v1480_v27 = vmul.f32 %v1479_v18, %v6194_v62 }
 0x2ec   : > { %v1621_v14 = vmul.f32 %v6353_v38, %v6353_v38  ;;  %v3263_v50 = vmul.f32 %v2982_v19, %v1680_v42  ;;  %v1326_v36 = vsub.f32 1.0, %v1325_v37  ;;  %v1518_v55 = vmul.f32 %v1517_v48, %v6252_v1 }
 0x2ed   : > { %v6378_v7 = vpop.eup %3793  ;;  %vm1289_vm12 = vweird.f32 %v6242_v35  ;;  %v1295_v12 = vand.u32 2147483648, %v6242_v35  ;;  %v1556_v11 = vmul.f32 %v1555_v3, %v6326_v20  ;;  %v1594_v39 = vmul.f32 3.8918573e-05, %v6369_v34 }
 0x2ee   : > { %3321 = vmatmul.f32.gmra.mxu2 %v3263_v50  ;;  %v1665_v0 = vadd.f32 1.0, %v3534_v61  ;;  %v1258_v5 = vmul.f32 %v1257_v53, %v6097_v4  ;;  %vm6387_vm13 = vmor %vm1289_vm12, %vm1290_vm11  ;;  %v1293_v58 = vand.u32 2147483647, %v6242_v35  ;;  %v1442_v52 = vmul.f32 %v1441_v30, %v6049_v40  ;;  %v6840_v61 = vld [vmem:[#allocation23_spill] sm:$0xff] }
 0x2ef   : > { %v1466_v18 = vadd.f32 0.0036580483, %v1465_v54  ;;  %v1503_v19 = vmul.f32 2.1237322e-06, %v6252_v1  ;;  %v1292_v23 = vsel %vm6387_vm13, %v6295_v2, %v1288_v59  ;;  %v1481_v37 = vadd.f32 0.4994258, %v1480_v27 }
 0x2f0   : > { %v3005_v4 = vadd.f32 %v3004_v24, %v6202_v10  ;;  %v1327_v48 = vmul.f32 %v6342_v25, %v1326_v36  ;;  %v1365_v33 = vmul.f32 %v6378_v7, %v6336_v51  ;;  %v1519_v3 = vadd.f32 0.112945676, %v1518_v55 }
 0x2f1   : > { %v6401_v44 = vmin.f32 %v1621_v14, 16.0  ;;  %v1296_v35 = vor.u32 1.1754944e-38, %v1295_v12  ;;  %v1557_v42 = vadd.f32 0.014752088, %v1556_v11  ;;  %v1595_v54 = vadd.f32 0.001143296, %v1594_v39  ;;  %v3027_v12 = vpop.f32.mrf.mxu3 }
 0x2f2   : > { %v1681_v30 = vmul.f32 %v1665_v0, %v6840_v61  ;;  %v3535_v53 = vclamps-f32 %v1258_v5, 1.0  ;;  %vm1294_vm14 = vcmp.eq.f32.partialorder %v1293_v58, 8.507059e+37  ;;  %v6404_v50 = vadd.f32 1.0, %v1442_v52  ;;  %v6843_v61 = vld [vmem:[#allocation25_spill] sm:$0xff] }
 0x2f3   : > { %vm1410_vm15 = vweird.f32 %v6113_v57  ;;  %v1297_v2 = vsel %vm1294_vm14, %v1296_v35, %v1292_v23  ;;  %vm1330_vm0 = vweird.f32 %v6342_v25  ;;  %v1335_v59 = vand.u32 2147483648, %v6291_v9 }
 0x2f4   : > { %v1482_v27 = vmul.f32 %v1481_v37, %v6194_v62  ;;  %v3264_v14 = vmul.f32 %v3005_v4, %v1681_v30  ;;  %v1328_v36 = vadd.f32 %v6342_v25, %v1327_v48  ;;  %v1366_v55 = vsub.f32 1.0, %v1365_v33 }
 0x2f5   : > { %v1520_v24 = vmul.f32 %v1519_v3, %v6252_v1  ;;  %vm1409_vm1 = vweird.f32 %v6047_v29  ;;  %vm1329_vm2 = vweird.f32 %v6291_v9  ;;  %v1558_v11 = vmul.f32 %v1557_v42, %v6326_v20 }
 0x2f6   : > { %v1596_v39 = vmul.f32 %v1595_v54, %v6369_v34  ;;  %v1634_v0 = vmul.f32 3.8918573e-05, %v6401_v44  ;;  %3324 = vmatmul.f32.gmra.mxu2 %v3264_v14  ;;  %v1666_v5 = vadd.f32 1.0, %v3535_v53  ;;  %v1298_v26 = vmul.f32 %v1297_v2, %v6100_v47  ;;  %vm6423_vm3 = vmor %vm1329_vm2, %vm1330_vm0 }
 0x2f7   : > { %v1333_v58 = vand.u32 2147483647, %v6291_v9  ;;  %3795 = vrcp.f32 %v6404_v50  ;;  %v1467_v52 = vmul.f32 %v1466_v18, %v6194_v62  ;;  %v1504_v23 = vadd.f32 0.00028619796, %v1503_v19  ;;  %vm6453_vm7 = vmor %vm1409_vm1, %vm1410_vm15 }
 0x2f8   : > { %v1336_v4 = vor.u32 1.1754944e-38, %v1335_v59  ;;  %v6427_v48 = vadd.f32 1.0, %v1482_v27  ;;  %v3028_v33 = vadd.f32 %v3027_v12, %v6202_v10  ;;  %v1332_v47 = vsel %vm6423_vm3, %v6342_v25, %v1328_v36 }
 0x2f9   : > { %v1367_v9 = vmul.f32 %v6378_v7, %v1366_v55  ;;  %v1521_v3 = vadd.f32 0.4994258, %v1520_v24  ;;  %v1408_v18 = vadd.f32 %v6113_v57, %v6227_v22  ;;  %v1559_v19 = vadd.f32 0.112945676, %v1558_v11  ;;  %v3050_v55 = vpop.f32.mrf.mxu2 }
 0x2fa   : > { %v1597_v35 = vadd.f32 0.014752088, %v1596_v39  ;;  %v1635_v42 = vadd.f32 0.001143296, %v1634_v0  ;;  %v1430_v54 = vadd.f32 0.18741608, %v6281_v46  ;;  %v1682_v30 = vmul.f32 %v1666_v5, %v6843_v61 }
 0x2fb   : > { %v3536_v53 = vclamps-f32 %v1298_v26, 1.0  ;;  %vm1334_vm4 = vcmp.eq.f32.partialorder %v1333_v58, 8.507059e+37  ;;  %v1468_v2 = vadd.f32 0.05243302, %v1467_v52  ;;  %v1375_v27 = vand.u32 2147483648, %v6336_v51  ;;  %v6849_v39 = vld [vmem:[#allocation20_spill] sm:$0xff] }
 0x2fc   : > { %v1337_v59 = vsel %vm1334_vm4, %v1336_v4, %v1332_v47  ;;  %3797 = vrcp.f32 %v6427_v48  ;;  %v3265_v14 = vmul.f32 %v3028_v33, %v1682_v30  ;;  %v1368_v22 = vadd.f32 %v6378_v7, %v1367_v9 }
 0x2fd   : > { %v6440_v25 = vpop.eup %3795  ;;  %vm1370_vm6 = vweird.f32 %v6378_v7  ;;  %v1522_v36 = vmul.f32 %v1521_v3, %v6252_v1  ;;  %v1505_v46 = vmul.f32 %v1504_v23, %v6252_v1  ;;  %v1560_v24 = vmul.f32 %v1559_v19, %v6326_v20 }
 0x2fe   : > { %v1598_v12 = vmul.f32 %v1597_v35, %v6369_v34  ;;  %v1636_v11 = vmul.f32 %v1635_v42, %v6401_v44  ;;  %3327 = vmatmul.f32.gmra.mxu2 %v3265_v14  ;;  %v1667_v0 = vadd.f32 1.0, %v3536_v53  ;;  %v1338_v5 = vmul.f32 %v1337_v59, %v6103_v49 }
 0x2ff   : > { %vm1369_vm8 = vweird.f32 %v6336_v51  ;;  %v1373_v26 = vand.u32 2147483647, %v6336_v51  ;;  %v1412_v58 = vsel %vm6453_vm7, %v6113_v57, %v1408_v18  ;;  %v1431_v52 = vmul.f32 %v1430_v54, %v6049_v40 }
 0x300   : > { %v1543_v23 = vmul.f32 2.1237322e-06, %v6326_v20  ;;  %vm6467_vm5 = vmor %vm1369_vm8, %vm1370_vm6  ;;  %v1445_v49 = vmul.f32 %v6440_v25, %v6404_v50  ;;  %v3051_v4 = vadd.f32 %v3050_v55, %v6202_v10  ;;  %v1376_v57 = vor.u32 1.1754944e-38, %v1375_v27  ;;  %v3073_v27 = vpop.f32.mrf.mxu3 }
 0x301   : > { %v1372_v51 = vsel %vm6467_vm5, %v6378_v7, %v1368_v22  ;;  %v6477_v33 = vadd.f32 1.0, %v1522_v36  ;;  %v1469_v47 = vmul.f32 %v1468_v2, %v6194_v62  ;;  %v1561_v9 = vadd.f32 0.4994258, %v1560_v24 }
 0x302   : > { %v6479_v40 = vpop.eup %3797  ;;  %v1599_v3 = vadd.f32 0.112945676, %v1598_v12  ;;  %v1637_v18 = vadd.f32 0.014752088, %v1636_v11  ;;  %v1506_v19 = vadd.f32 0.0036580483, %v1505_v46  ;;  %v1683_v35 = vmul.f32 %v1667_v0, %v6070_v41 }
 0x303   : > { %v3537_v42 = vclamps-f32 %v1338_v5, 1.0  ;;  %vm1374_vm9 = vcmp.eq.f32.partialorder %v1373_v26, 8.507059e+37  ;;  %vm1414_vm10 = vcmp.eq.f32.partialorder %v1413_v43, 8.507059e+37  ;;  %v1544_v54 = vadd.f32 0.00028619796, %v1543_v23  ;;  %v6848_v46 = vld [vmem:[#allocation19_spill] sm:$0xff] }
 0x304   : > { %v1377_v7 = vsel %vm1374_vm9, %v1376_v57, %v1372_v51  ;;  %v1446_v61 = vsub.f32 1.0, %v1445_v49  ;;  %v1417_v30 = vsel %vm1414_vm10, %v6137_v32, %v1412_v58  ;;  %v1432_v53 = vadd.f32 1.1283791, %v1431_v52 }
 0x305   : > { %v3266_v59 = vmul.f32 %v3051_v4, %v1683_v35  ;;  %v1485_v2 = vmul.f32 %v6479_v40, %v6427_v48  ;;  %3799 = vrcp.f32 %v6477_v33  ;;  %v1562_v41 = vmul.f32 %v1561_v9, %v6326_v20 }
 0x306   : > { %v1600_v14 = vmul.f32 %v1599_v3, %v6369_v34  ;;  %v1638_v29 = vmul.f32 %v1637_v18, %v6401_v44  ;;  %v1470_v43 = vadd.f32 0.18741608, %v1469_v47  ;;  %v1507_v22 = vmul.f32 %v1506_v19, %v6252_v1 }
 0x307   : > { %3330 = vmatmul.f32.gmra.mxu2 %v3266_v59  ;;  %v1668_v36 = vadd.f32 1.0, %v3537_v42  ;;  %v1378_v32 = vmul.f32 %v1377_v7, %v6124_v6  ;;  %v996_v55 = vmul.f32 0.5, %v6848_v46  ;;  %v1545_v24 = vmul.f32 %v1544_v54, %v6326_v20 }
 0x308   : > { %v1583_v12 = vmul.f32 2.1237322e-06, %v6369_v34  ;;  %v1447_v11 = vmul.f32 %v6440_v25, %v1446_v61  ;;  %v997_v0 = vmul.f32 0.5, %v6849_v39  ;;  %v1418_v5 = vmul.f32 %v1417_v30, %v6135_v63 }
 0x309   : > { %v1433_v26 = vmul.f32 %v1432_v53, %v6008_v16  ;;  %v3074_v58 = vadd.f32 %v3073_v27, %v6202_v10  ;;  %v1486_v52 = vsub.f32 1.0, %v1485_v2  ;;  %v6502_v23 = vadd.f32 1.0, %v1562_v41 }
 0x30a   : > { %v1601_v6 = vadd.f32 0.4994258, %v1600_v14  ;;  %v1639_v37 = vadd.f32 0.112945676, %v1638_v29  ;;  %v1471_v49 = vmul.f32 %v1470_v43, %v6194_v62  ;;  %v1508_v4 = vadd.f32 0.05243302, %v1507_v22  ;;  %v3096_v35 = vpop.f32.mrf.mxu2 }
 0x30b   : > { %v1684_v51 = vmul.f32 %v1668_v36, %v996_v55  ;;  %v3538_v57 = vclamps-f32 %v1378_v32, 1.0  ;;  %v6505_v47 = vpop.eup %3799  ;;  %v1546_v9 = vadd.f32 0.0036580483, %v1545_v24  ;;  %v1584_v3 = vadd.f32 0.00028619796, %v1583_v12 }
 0x30c   : > { %v1448_v63 = vadd.f32 %v6440_v25, %v1447_v11  ;;  %vm1450_vm11 = vweird.f32 %v6440_v25  ;;  %vm1449_vm12 = vweird.f32 %v6404_v50  ;;  %v1453_v18 = vand.u32 2147483647, %v6404_v50 }
 0x30d   : > { %v3267_v16 = vmul.f32 %v3074_v58, %v1684_v51  ;;  %v1455_v19 = vand.u32 2147483648, %v6404_v50  ;;  %v1487_v62 = vmul.f32 %v6479_v40, %v1486_v52  ;;  %3801 = vrcp.f32 %v6502_v23  ;;  %vm6517_vm13 = vmor %vm1449_vm12, %vm1450_vm11 }
 0x30e   : > { %v1602_v42 = vmul.f32 %v1601_v6, %v6369_v34  ;;  %v1640_v54 = vmul.f32 %v1639_v37, %v6401_v44  ;;  %v1472_v7 = vadd.f32 1.1283791, %v1471_v49  ;;  %v1509_v61 = vmul.f32 %v1508_v4, %v6252_v1 }
 0x30f   : > { %3333 = vmatmul.f32.gmra.mxu2 %v3267_v16  ;;  %v1669_v30 = vadd.f32 1.0, %v3538_v57  ;;  %v1525_v50 = vmul.f32 %v6505_v47, %v6477_v33  ;;  %v1547_v59 = vmul.f32 %v1546_v9, %v6326_v20  ;;  %v1585_v2 = vmul.f32 %v1584_v3, %v6369_v34  ;;  %v6854_v3 = vld [vmem:[#allocation22_spill] sm:$0xff] }
 0x310   : > { %v1623_v27 = vmul.f32 2.1237322e-06, %v6401_v44  ;;  %v1452_v41 = vsel %vm6517_vm13, %v6440_v25, %v1448_v63  ;;  %v3097_v14 = vadd.f32 %v3096_v35, %v6202_v10  ;;  %v3539_v29 = vclamps-f32 %v1418_v5, 1.0 }
 0x311   : > { %vm1454_vm14 = vcmp.eq.f32.partialorder %v1453_v18, 8.507059e+37  ;;  %v1456_v43 = vor.u32 1.1754944e-38, %v1455_v19  ;;  %v1488_v22 = vadd.f32 %v6479_v40, %v1487_v62  ;;  %vm1490_vm15 = vweird.f32 %v6479_v40 }
 0x312   : > { %v6532_v36 = vadd.f32 1.0, %v1602_v42  ;;  %v1641_v32 = vadd.f32 0.4994258, %v1640_v54  ;;  %v1685_v46 = vmul.f32 %v1669_v30, %v997_v0  ;;  %v1495_v24 = vand.u32 2147483648, %v6427_v48 }
 0x313   : > { %v1457_v55 = vsel %vm1454_vm14, %v1456_v43, %v1452_v41  ;;  %v1526_v12 = vsub.f32 1.0, %v1525_v50  ;;  %v6535_v11 = vpop.eup %3801  ;;  %v1510_v25 = vadd.f32 0.18741608, %v1509_v61  ;;  %v1548_v39 = vadd.f32 0.05243302, %v1547_v59 }
 0x314   : > { %vm1489_vm0 = vweird.f32 %v6427_v48  ;;  %v1493_v5 = vand.u32 2147483647, %v6427_v48  ;;  %v1586_v58 = vadd.f32 0.0036580483, %v1585_v2  ;;  %v1624_v52 = vadd.f32 0.00028619796, %v1623_v27 }
 0x315   : > { %v1670_v6 = vadd.f32 1.0, %v3539_v29  ;;  %v3268_v37 = vmul.f32 %v3097_v14, %v1685_v46  ;;  %vm6541_vm1 = vmor %vm1489_vm0, %vm1490_vm15  ;;  %v1458_v49 = vmul.f32 %v1457_v55, %v1433_v26  ;;  %3803 = vrcp.f32 %v6532_v36 }
 0x316   : > { %v1492_v4 = vsel %vm6541_vm1, %v6479_v40, %v1488_v22  ;;  %v1642_v51 = vmul.f32 %v1641_v32, %v6401_v44  ;;  %v1496_v48 = vor.u32 1.1754944e-38, %v1495_v24  ;;  %v1527_v57 = vmul.f32 %v6505_v47, %v1526_v12 }
 0x317   : > { %3336 = vmatmul.f32.gmra.mxu2 %v3268_v37  ;;  %v1565_v9 = vmul.f32 %v6535_v11, %v6502_v23  ;;  %v998_v63 = vmul.f32 0.5, %v6854_v3  ;;  %v1511_v16 = vmul.f32 %v1510_v25, %v6252_v1  ;;  %vm1494_vm2 = vcmp.eq.f32.partialorder %v1493_v5, 8.507059e+37 }
 0x318   : > { %v1473_v26 = vmul.f32 %v1472_v7, %v6140_v28  ;;  %v1549_v40 = vmul.f32 %v1548_v39, %v6326_v20  ;;  %v1587_v18 = vmul.f32 %v1586_v58, %v6369_v34  ;;  %v1497_v19 = vsel %vm1494_vm2, %v1496_v48, %v1492_v4 }
 0x319   : > { %v1625_v35 = vmul.f32 %v1624_v52, %v6401_v44  ;;  %v1686_v62 = vmul.f32 %v1670_v6, %v998_v63  ;;  %v3540_v54 = vclamps-f32 %v1458_v49, 1.0  ;;  %v6559_v61 = vadd.f32 1.0, %v1642_v51 }
 0x31a   : > { %v1528_v53 = vadd.f32 %v6505_v47, %v1527_v57  ;;  %vm1530_vm3 = vweird.f32 %v6505_v47  ;;  %v1566_v1 = vsub.f32 1.0, %v1565_v9  ;;  %v1512_v7 = vadd.f32 1.1283791, %v1511_v16 }
 0x31b   : > { %v3119_v42 = vpop.f32.mrf.mxu3  ;;  %v6564_v28 = vpop.eup %3803  ;;  %v1498_v50 = vmul.f32 %v1497_v19, %v1473_v26  ;;  %v1535_v59 = vand.u32 2147483648, %v6477_v33  ;;  %v1550_v2 = vadd.f32 0.18741608, %v1549_v40  ;;  %vm1529_vm4 = vweird.f32 %v6477_v33 }
 0x31c   : > { %v3120_v30 = vadd.f32 %v3119_v42, %v6202_v10  ;;  %v1533_v41 = vand.u32 2147483647, %v6477_v33  ;;  %v1588_v14 = vadd.f32 0.05243302, %v1587_v18  ;;  %v1626_v29 = vadd.f32 0.0036580483, %v1625_v35  ;;  %vm6569_vm6 = vmor %vm1529_vm4, %vm1530_vm3 }
 0x31d   : > { %v1671_v43 = vadd.f32 1.0, %v3540_v54  ;;  %3805 = vrcp.f32 %v6559_v61  ;;  %v1532_v32 = vsel %vm6569_vm6, %v6505_v47, %v1528_v53  ;;  %v1567_v46 = vmul.f32 %v6535_v11, %v1566_v1 }
 0x31e   : > { %v3269_v27 = vmul.f32 %v3120_v30, %v1686_v62  ;;  %v1605_v55 = vmul.f32 %v6564_v28, %v6532_v36  ;;  %v999_v33 = vmul.f32 0.5, %v5971_v31  ;;  %v3541_v24 = vclamps-f32 %v1498_v50, 1.0 }
 0x31f   : > { %v1536_v12 = vor.u32 1.1754944e-38, %v1535_v59  ;;  %v1513_v25 = vmul.f32 %v1512_v7, %v6197_v17  ;;  %v1551_v39 = vmul.f32 %v1550_v2, %v6326_v20  ;;  %vm1534_vm7 = vcmp.eq.f32.partialorder %v1533_v41, 8.507059e+37 }
 0x320   : > { %3339 = vmatmul.f32.vlgmr.msrb.gmra.mxu3 %v3269_v27  ;;  %v1589_v5 = vmul.f32 %v1588_v14, %v6369_v34  ;;  %v1627_v58 = vmul.f32 %v1626_v29, %v6401_v44  ;;  %v1687_v47 = vmul.f32 %v1671_v43, %v999_v33  ;;  %v1568_v0 = vadd.f32 %v6535_v11, %v1567_v46 }
 0x321   : > { %v1537_v6 = vsel %vm1534_vm7, %v1536_v12, %v1532_v32  ;;  %vm1570_vm8 = vweird.f32 %v6535_v11  ;;  %v1606_v31 = vsub.f32 1.0, %v1605_v55  ;;  %v1672_v17 = vadd.f32 1.0, %v3541_v24 }
 0x322   : > { %v1575_v20 = vand.u32 2147483648, %v6502_v23  ;;  %v1538_v51 = vmul.f32 %v1537_v6, %v1513_v25  ;;  %vm1569_vm5 = vweird.f32 %v6502_v23  ;;  %v1573_v48 = vand.u32 2147483647, %v6502_v23 }
 0x323   : > { %v3142_v52 = vpop.f32.mrf.mxu2  ;;  %v6588_v49 = vpop.eup %3805  ;;  %v1552_v57 = vadd.f32 1.1283791, %v1551_v39  ;;  %v1590_v9 = vadd.f32 0.18741608, %v1589_v5  ;;  %v1628_v3 = vadd.f32 0.05243302, %v1627_v58  ;;  %vm6593_vm9 = vmor %vm1569_vm5, %vm1570_vm8  ;;  %v1607_v40 = vmul.f32 %v6564_v28, %v1606_v31 }
 0x324   : > { %v3143_v37 = vadd.f32 %v3142_v52, %v6202_v10  ;;  %v1000_v16 = vmul.f32 0.5, %v6109_v60  ;;  %v1572_v26 = vsel %vm6593_vm9, %v6535_v11, %v1568_v0  ;;  %v1645_v18 = vmul.f32 %v6588_v49, %v6559_v61 }
 0x325   : > { %v1576_v19 = vor.u32 1.1754944e-38, %v1575_v20  ;;  %v3542_v42 = vclamps-f32 %v1538_v51, 1.0  ;;  %vm1574_vm10 = vcmp.eq.f32.partialorder %v1573_v48, 8.507059e+37  ;;  %v1553_v54 = vmul.f32 %v1552_v57, %v6286_v45 }
 0x326   : > { %v3270_v4 = vmul.f32 %v3143_v37, %v1687_v47  ;;  %v1688_v62 = vmul.f32 %v1672_v17, %v1000_v16  ;;  %v1591_v60 = vmul.f32 %v1590_v9, %v6369_v34  ;;  %v1629_v30 = vmul.f32 %v1628_v3, %v6401_v44 }
 0x327   : > { %v1577_v53 = vsel %vm1574_vm10, %v1576_v19, %v1572_v26  ;;  %v1608_v1 = vadd.f32 %v6564_v28, %v1607_v40  ;;  %vm1610_vm11 = vweird.f32 %v6564_v28  ;;  %v1646_v7 = vsub.f32 1.0, %v1645_v18 }
 0x328   : > { %3342 = vmatmul.f32.gmra.mxu3 %v3270_v4  ;;  %v1615_v59 = vand.u32 2147483648, %v6532_v36  ;;  %v1673_v2 = vadd.f32 1.0, %v3542_v42  ;;  %v1578_v27 = vmul.f32 %v1577_v53, %v1553_v54  ;;  %vm1609_vm12 = vweird.f32 %v6532_v36 }
 0x329   : > { %v3165_v23 = vpop.f32.mrf.mxu3  ;;  %v1613_v45 = vand.u32 2147483647, %v6532_v36  ;;  %v1001_v34 = vmul.f32 0.5, %v6169_v15  ;;  %v1592_v41 = vadd.f32 1.1283791, %v1591_v60  ;;  %vm1611_vm13 = vmor %vm1609_vm12, %vm1610_vm11  ;;  %v1647_v22 = vmul.f32 %v6588_v49, %v1646_v7  ;;  %v3363_v60 = vld [vmem:[%s4160_s17 + $0x10] sm:$0xff] }
 0x32a   : > { %v3166_v35 = vadd.f32 %v3165_v23, %v6202_v10  ;;  %v1630_v14 = vadd.f32 0.18741608, %v1629_v30  ;;  %v1612_v43 = vsel %vm1611_vm13, %v6564_v28, %v1608_v1  ;;  %v1616_v32 = vor.u32 1.1754944e-38, %v1615_v59  ;;  %v3361_v23 = vld [vmem:[%s4160_s17] sm:$0xff]  ;;  %v3364_v1 = vld [vmem:[%s4160_s17 + $0x18] sm:$0xff] }
 0x32b   : > { %v3188_v50 = vpop.f32.mrf.mxu2  ;;  %v1689_v46 = vmul.f32 %v1673_v2, %v1001_v34  ;;  %v3543_v55 = vclamps-f32 %v1578_v27, 1.0  ;;  %vm1614_vm14 = vcmp.eq.f32.partialorder %v1613_v45, 8.507059e+37  ;;  %v1593_v33 = vmul.f32 %v1592_v41, %v6329_v13  ;;  %v3365_v2 = vld [vmem:[%s4160_s17 + $0x20] sm:$0xff]  ;;  %v3366_v41 = vld [vmem:[%s4160_s17 + $0x28] sm:$0xff] }
 0x32c   : > { %v3271_v11 = vmul.f32 %v3166_v35, %v1688_v62  ;;  %v3189_v29 = vadd.f32 %v3188_v50, %v6202_v10  ;;  %v1617_v24 = vsel %vm1614_vm14, %v1616_v32, %v1612_v43  ;;  %v1631_v36 = vmul.f32 %v1630_v14, %v6401_v44 }
 0x32d   : > { %v1648_v12 = vadd.f32 %v6588_v49, %v1647_v22  ;;  %vm1650_vm15 = vweird.f32 %v6588_v49  ;;  %v1655_v39 = vand.u32 2147483648, %v6559_v61  ;;  %v1674_v28 = vadd.f32 1.0, %v3543_v55  ;;  %v3367_v22 = vld [vmem:[%s4160_s17 + $0x30] sm:$0xff] }
 0x32e   : > { %v3272_v15 = vmul.f32 %v3189_v29, %v1689_v46  ;;  %v1618_v5 = vmul.f32 %v1617_v24, %v1593_v33  ;;  %vm1649_vm0 = vweird.f32 %v6559_v61  ;;  %v1653_v58 = vand.u32 2147483647, %v6559_v61  ;;  %v3368_v33 = vld [vmem:[%s4160_s17 + $0x38] sm:$0xff] }
 0x32f   : > { %vm1651_vm1 = vmor %vm1649_vm0, %vm1650_vm15  ;;  %v1002_v13 = vmul.f32 0.5, %v6255_v21  ;;  %v1632_v52 = vadd.f32 1.1283791, %v1631_v36  ;;  %v1656_v6 = vor.u32 1.1754944e-38, %v1655_v39  ;;  %v1003_v48 = vmul.f32 0.5, %v6302_v56 }
 0x330   : > { %3345 = vmatmul.f32.gmra.mxu3 %v3271_v11  ;;  %v1652_v47 = vsel %vm1651_vm1, %v6588_v49, %v1648_v12  ;;  %v3544_v0 = vclamps-f32 %v1618_v5, 1.0  ;;  %vm1654_vm2 = vcmp.eq.f32.partialorder %v1653_v58, 8.507059e+37  ;;  %v1004_v16 = vmul.f32 0.5, %v6333_v8  ;;  %v6635_v56 = vld [vmem:[%s6735_s12] ss:$0 sm:$0xff]  ;;  %v3362_v8 = vld [vmem:[%s4160_s17 + $0x8] sm:$0xff] }
 0x331   : > { %v1690_v37 = vmul.f32 %v1674_v28, %v1002_v13  ;;  %v1657_v31 = vsel %vm1654_vm2, %v1656_v6, %v1652_v47  ;;  %v1633_v17 = vmul.f32 %v1632_v52, %v6353_v38  ;;  %v3369_v12 = vld [vmem:[%s4160_s17 + $0x40] sm:$0xff]  ;;  %v3370_v5 = vld [vmem:[%s4160_s17 + $0x48] sm:$0xff] }
 0x332   : > { %v1675_v51 = vadd.f32 1.0, %v3544_v0  ;;  %v3372_v0 = vld [vmem:[%s4160_s17 + $0x58] sm:$0xff] }
 0x333   : > { %v3211_v25 = vpop.f32.mrf.mxu3  ;;  %v1658_v61 = vmul.f32 %v1657_v31, %v1633_v17 }
 0x334   : > { %v3212_v44 = vadd.f32 %v3211_v25, %v6202_v10  ;;  %v1691_v57 = vmul.f32 %v1675_v51, %v1003_v48 }
 0x335   : > { %v3545_v49 = vclamps-f32 %v1658_v61, 1.0 }
 0x336   : > { %v3273_v20 = vmul.f32 %v3212_v44, %v1690_v37  ;;  %v3371_v44 = vld [vmem:[%s4160_s17 + $0x50] sm:$0xff] }
 0x337   : > { %v1676_v3 = vadd.f32 1.0, %v3545_v49 }
 0x338   : > { %3348 = vmatmul.f32.gmra.mxu3 %v3272_v15 }
 0x339   : > { %v3234_v4 = vpop.f32.mrf.mxu2  ;;  %v1692_v26 = vmul.f32 %v1676_v3, %v1004_v16  ;;  %v3375_v3 = vld [vmem:[%s4160_s17 + $0x70] sm:$0xff] }
 0x33a   : > { %v3235_v21 = vadd.f32 %v3234_v4, %v6202_v10  ;;  %v3373_v4 = vld [vmem:[%s4160_s17 + $0x60] sm:$0xff] }
 0x33c   : > { %v3274_v9 = vmul.f32 %v3235_v21, %v1691_v57  ;;  %v3374_v21 = vld [vmem:[%s4160_s17 + $0x68] sm:$0xff] }
 0x340   : > { %3351 = vmatmul.f32.gmra.mxu3 %v3273_v20 }
 0x346   : > { %v3257_v63 = vpop.f32.mrf.mxu3 }
 0x347   : > { %v3258_v38 = vadd.f32 %v3257_v63, %v6202_v10 }
 0x348   : > { %3354 = vmatmul.f32.gmra.mxu3 %v3274_v9 }
 0x349   : > { %v3275_v40 = vmul.f32 %v3258_v38, %v1692_v26  ;;  %v3376_v26 = vld [vmem:[%s4160_s17 + $0x78] sm:$0xff] }
 0x350   : > { %3357 = vmatmul.f32.gmra.mxu3 %v3275_v40 }
 0x359   : > { %v3313_v18 = vpop.f32.mrf.mxu2 }
 0x35a   : > { %v3314_v19 = vadd.f32 %v6635_v56, %v3313_v18 }
 0x35c   : > { %v3377_v35 = vadd.f32 %v3361_v23, %v3314_v19 }
 0x35e   : > { %3393 = vst [vmem:[%s6641_s5] sm:$0xff] %v3377_v35 }
 0x361   : > { %v3316_v10 = vpop.f32.mrf.mxu2 }
 0x362   : > { %v3317_v62 = vadd.f32 %v6635_v56, %v3316_v10 }
 0x364   : > { %v3378_v42 = vadd.f32 %v3362_v8, %v3317_v62 }
 0x366   : > { %3394 = vst [vmem:[%s6641_s5 + $0x8] sm:$0xff] %v3378_v42 }
 0x369   : > { %v3319_v54 = vpop.f32.mrf.mxu2 }
 0x36a   : > { %v3320_v30 = vadd.f32 %v6635_v56, %v3319_v54 }
 0x36c   : > { %v3379_v53 = vadd.f32 %v3363_v60, %v3320_v30 }
 0x36e   : > { %3395 = vst [vmem:[%s6641_s5 + $0x10] sm:$0xff] %v3379_v53 }
 0x371   : > { %v3322_v11 = vpop.f32.mrf.mxu2 }
 0x372   : > { %v3323_v7 = vadd.f32 %v6635_v56, %v3322_v11 }
 0x374   : > { %v3380_v50 = vadd.f32 %v3364_v1, %v3323_v7 }
 0x376   : > { %3396 = vst [vmem:[%s6641_s5 + $0x18] sm:$0xff] %v3380_v50 }
 0x379   : > { %v3325_v59 = vpop.f32.mrf.mxu2 }
 0x37a   : > { %v3326_v27 = vadd.f32 %v6635_v56, %v3325_v59 }
 0x37c   : > { %v3381_v45 = vadd.f32 %v3365_v2, %v3326_v27 }
 0x37e   : > { %3397 = vst [vmem:[%s6641_s5 + $0x20] sm:$0xff] %v3381_v45 }
 0x381   : > { %v3328_v34 = vpop.f32.mrf.mxu2 }
 0x382   : > { %v3329_v14 = vadd.f32 %v6635_v56, %v3328_v34 }
 0x384   : > { %v3382_v29 = vadd.f32 %v3366_v41, %v3329_v14 }
 0x386   : > { %3398 = vst [vmem:[%s6641_s5 + $0x28] sm:$0xff] %v3382_v29 }
 0x38a   : > { %v3331_v43 = vpop.f32.mrf.mxu2 }
 0x38b   : > { %v3332_v32 = vadd.f32 %v6635_v56, %v3331_v43 }
 0x38d   : > { %v3383_v46 = vadd.f32 %v3367_v22, %v3332_v32 }
 0x38f   : > { %3399 = vst [vmem:[%s6641_s5 + $0x30] sm:$0xff] %v3383_v46 }
 0x392   : > { %v3334_v55 = vpop.f32.mrf.mxu2 }
 0x393   : > { %v3335_v24 = vadd.f32 %v6635_v56, %v3334_v55 }
 0x395   : > { %v3384_v36 = vadd.f32 %v3368_v33, %v3335_v24 }
 0x397   : > { %3400 = vst [vmem:[%s6641_s5 + $0x38] sm:$0xff] %v3384_v36 }
 0x39a   : > { %v3337_v15 = vpop.f32.mrf.mxu2 }
 0x39b   : > { %v3338_v25 = vadd.f32 %v6635_v56, %v3337_v15 }
 0x39d   : > { %v3385_v39 = vadd.f32 %v3369_v12, %v3338_v25 }
 0x39f   : > { %3401 = vst [vmem:[%s6641_s5 + $0x40] sm:$0xff] %v3385_v39 }
 0x3a3   : > { %v3340_v28 = vpop.f32.mrf.mxu3 }
 0x3a4   : > { %v3341_v58 = vadd.f32 %v6635_v56, %v3340_v28 }
 0x3a6   : > { %v3386_v13 = vadd.f32 %v3370_v5, %v3341_v58 }
 0x3a8   : > { %3402 = vst [vmem:[%s6641_s5 + $0x48] sm:$0xff] %v3386_v13 }
 0x3ab   : > { %v3343_v52 = vpop.f32.mrf.mxu3 }
 0x3ac   : > { %v3344_v47 = vadd.f32 %v6635_v56, %v3343_v52 }
 0x3ae   : > { %v3387_v6 = vadd.f32 %v3371_v44, %v3344_v47 }
 0x3b0   : > { %3403 = vst [vmem:[%s6641_s5 + $0x50] sm:$0xff] %v3387_v6 }
 0x3b3   : > { %v3346_v37 = vpop.f32.mrf.mxu3 }
 0x3b4   : > { %v3347_v31 = vadd.f32 %v6635_v56, %v3346_v37 }
 0x3b6   : > { %v3388_v17 = vadd.f32 %v3372_v0, %v3347_v31 }
 0x3b8   : > { %3404 = vst [vmem:[%s6641_s5 + $0x58] sm:$0xff] %v3388_v17 }
 0x3bb   : > { %v3349_v20 = vpop.f32.mrf.mxu3 }
 0x3bc   : > { %v3350_v51 = vadd.f32 %v6635_v56, %v3349_v20 }
 0x3be   : > { %v3389_v61 = vadd.f32 %v3373_v4, %v3350_v51 }
 0x3c0   : > { %3405 = vst [vmem:[%s6641_s5 + $0x60] sm:$0xff] %v3389_v61 }
 0x3c3   : > { %v3352_v48 = vpop.f32.mrf.mxu3 }
 0x3c4   : > { %v3353_v57 = vadd.f32 %v6635_v56, %v3352_v48 }
 0x3c6   : > { %v3390_v49 = vadd.f32 %v3374_v21, %v3353_v57 }
 0x3c8   : > { %3406 = vst [vmem:[%s6641_s5 + $0x68] sm:$0xff] %v3390_v49 }
 0x3cb   : > { %v3355_v9 = vpop.f32.mrf.mxu3 }
 0x3cc   : > { %v3356_v63 = vadd.f32 %v6635_v56, %v3355_v9 }
 0x3ce   : > { %v3391_v16 = vadd.f32 %v3375_v3, %v3356_v63 }
 0x3d0   : > { %3407 = vst [vmem:[%s6641_s5 + $0x70] sm:$0xff] %v3391_v16 }
 0x3d3   : > { %v3358_v38 = vpop.f32.mrf.mxu3 }
 0x3d4   : > { %v3359_v40 = vadd.f32 %v6635_v56, %v3358_v38 }
 0x3d6   : > { %v3392_v18 = vadd.f32 %v3376_v26, %v3359_v40 }
 0x3d8   : > { %3408 = vst [vmem:[%s6641_s5 + $0x78] sm:$0xff] %v3392_v18 }
 0x3d9   : > { %3928 = shalt.err (!%p3925_p10)
}
 0x3da   : > { %s3977_s30 = smov 128   ;;  %s3978_s5 = smov 8  }
 0x3db   : > { %3611 = dma.vmem_to_hbm [thread:$0]  (%p4121_p3), %s3423_s24, 2048, %s3425_s21, %s3410_s20, %s3977_s30, %s3977_s30, %s3978_s5  }
 0x3dc PF: > { %s6859_s27 = sld [smem:[#allocation12_spill]]  ;;  %p6861_p12 = scmp.ge.s32.totalorder %s3971_s28, 2 }
 0x3de   : > { %p3625_p13 = pnand %p6861_p12, %p4084_p6 }
 0x3e0   : > { %p3626_p0 = pneg %p3625_p13 }
 0x3e2   : > { %s3439_s16 = sand.u32 1, %s6859_s27  }
 0x3e3   : > { %s3440_s22 = scalar_lea.sflag [#allocation4], %s3439_s16 }
 0x3e4   : > { %3954 = dma.done.wait (%p3626_p0), %s3440_s22, 2048  }
 0x3e5   : > { %3956 = vsyncadd (%p3626_p0), %s3440_s22, 4294965248  ;;  %s6862_s28 = sld [smem:[#allocation15_spill]]  ;;  %s6865_s25 = smov %s3963_s26 }
 0x3e6   : > { %s6863_s18 = sld [smem:[#allocation13_spill]] }
 0x3e7   : > { %s6864_s27 = sld [smem:[#allocation16_spill]] }
 0x3eb   : > { %p27_p5 = scmp.ge.s32.totalorder %s6862_s28, 4  }
 0x3ec   : > { %s6866_s26 = smov %s6863_s18 }
 0x3ed   :  { %29 = sbr.rel (!%p27_p5) target bundleno = 9 (0x9), region = 125 }
 0x3f2   :  { %3446 = vsyncpa [#allocation3], 1 }
 0x3f3   :  { %3448 = vsyncpa [#allocation3 + $0x1], 1 }
 0x3f4   :  { %3449 = vsyncpa [#allocation6], 1 }
 0x3f5   :  { %3450 = vsyncpa [#allocation4], 1 }
 0x3f6   :  { %3452 = vsyncpa [#allocation4 + $0x1], 1 }

</bundles_post_ra>
